<compile_context>
chip_gen: v5e
topology: v5e:2x2
jax: 0.10.0
libtpu: 0.0.40
codegen_flags: <defaults>
</compile_context>

<pallas_src>
import jax
import jax.numpy as jnp
from jax.experimental import pallas as pl
from jax.experimental.pallas import tpu as pltpu

EMOTION_LABELS = ['angry', 'disgust', 'fearful', 'happy', 'neutral', 'sad']
NUM_CLASSES = len(EMOTION_LABELS)      # 6
VIDEO_DIM = 512                        # R3D-18 embedding size
HUBERT_DIM = 768                       # hubert-base hidden size
FUSION_DIM = 512
HEAD_PAD = 128                         # lane-dense fused-head output width


def _round_up(x, m):
    return ((x + m - 1) // m) * m


def _fusion_kernel(video_ref, hidden_ref, mask_ref,
                   w1v_ref, w1h_ref, b1_ref,
                   w_heads_ref, b_heads_ref,
                   out_ref, pooled_acc):
    t = pl.program_id(0)

    # --- init accumulator on first T chunk ---
    @pl.when(t == 0)
    def _():
        pooled_acc[...] = jnp.zeros_like(pooled_acc)

    # --- HubertSER._pool: weighted sum over this T chunk (mask pre-normalized) ---
    hidden = hidden_ref[...].astype(jnp.float32)          # (B, Tt, Dh) bf16 -> f32
    mask = mask_ref[...]                                  # (B, Tt), already / count
    pooled_acc[...] += jnp.sum(hidden * mask[:, :, None], axis=1)   # (B, Dh)

    # --- finalize on last T chunk: fusion layer + fused heads ---
    @pl.when(t == pl.num_programs(0) - 1)
    def _():
        video = video_ref[...]                            # (B, Dv)
        # Linear(Dv+Dh -> F) on concat == split matmul (exactly equivalent)
        fused = (jnp.dot(video, w1v_ref[...], preferred_element_type=jnp.float32)
                 + jnp.dot(pooled_acc[...], w1h_ref[...],
                           preferred_element_type=jnp.float32)
                 + b1_ref[...])                           # (B, F)
        h = jnp.maximum(fused, 0.0)                       # ReLU (Dropout = identity)
        # fused heads: columns [0:C] = emotion logits, [C] = laugh logit, rest 0
        out_ref[...] = (jnp.dot(h, w_heads_ref[...],
                                preferred_element_type=jnp.float32)
                        + b_heads_ref[...])               # (B, 128) lane-dense store


def fusion_forward(video_features, hubert_last_hidden, audio_attention_mask,
                   params, *, t_tile=128):
    """Fused post-backbone forward pass in one Pallas call."""
    assert t_tile % 128 == 0, "t_tile must be a multiple of 128"
    B, Dv = video_features.shape
    _, T, Dh = hubert_last_hidden.shape
    F = params["w1v"].shape[1]
    C = params["we"].shape[1]

    # Pre-normalize the mask in the wrapper: kernel does a pure weighted sum.
    mask = audio_attention_mask.astype(jnp.float32)
    mask_norm = mask / jnp.maximum(jnp.sum(mask, axis=1, keepdims=True), 1.0)

    # Stream activations as bf16 (halves HBM traffic); accumulate in f32 in-kernel.
    hidden = hubert_last_hidden.astype(jnp.bfloat16)

    # T tiling: either a 128-multiple tile or a single full (8-aligned) tile.
    tile = min(t_tile, _round_up(T, 8))
    Tp = _round_up(T, tile)
    if Tp != T:
        hidden = jnp.pad(hidden, ((0, 0), (0, Tp - T), (0, 0)))
        mask_norm = jnp.pad(mask_norm, ((0, 0), (0, Tp - T)))
    n_t = Tp // tile

    # Fuse both heads into one lane-dense (F, 128) weight / (1, 128) bias.
    w_heads = jnp.zeros((F, HEAD_PAD), jnp.float32)
    w_heads = w_heads.at[:, :C].set(params["we"]).at[:, C:C + 1].set(params["wh"])
    b_heads = jnp.zeros((1, HEAD_PAD), jnp.float32)
    b_heads = b_heads.at[:, :C].set(params["be"]).at[:, C:C + 1].set(params["bh"])

    out = pl.pallas_call(
        _fusion_kernel,
        out_shape=jax.ShapeDtypeStruct((B, HEAD_PAD), jnp.float32),
        grid_spec=pltpu.PrefetchScalarGridSpec(
            num_scalar_prefetch=0,
            grid=(n_t,),
            in_specs=[
                pl.BlockSpec((B, Dv), lambda t: (0, 0)),          # video features
                pl.BlockSpec((B, tile, Dh), lambda t: (0, t, 0)),  # hidden chunk
                pl.BlockSpec((B, tile), lambda t: (0, t)),         # mask chunk
                pl.BlockSpec((Dv, F), lambda t: (0, 0)),           # W1 (video slice)
                pl.BlockSpec((Dh, F), lambda t: (0, 0)),           # W1 (hubert slice)
                pl.BlockSpec((1, F), lambda t: (0, 0)),            # b1
                pl.BlockSpec((F, HEAD_PAD), lambda t: (0, 0)),     # fused head W
                pl.BlockSpec((1, HEAD_PAD), lambda t: (0, 0)),     # fused head b
            ],
            out_specs=pl.BlockSpec((B, HEAD_PAD), lambda t: (0, 0)),
            scratch_shapes=[pltpu.VMEM((B, Dh), jnp.float32)],     # pooled accumulator
        ),
        compiler_params=pltpu.CompilerParams(
            dimension_semantics=("arbitrary",),        # accumulator carried over T
            vmem_limit_bytes=48 * 1024 * 1024,         # headroom on v7x's 64 MiB VMEM
        ),
    )(video_features.astype(jnp.float32), hidden, mask_norm,
      params["w1v"], params["w1h"], params["b1"], w_heads, b_heads)

    return {
        "emotion_logits": out[:, :C],     # (B, num_classes)
        "laugh_logits": out[:, C],        # (B,)  == .squeeze(-1)
    }


def init_params(key):
    """Deterministic synthetic weights matching the FusionModel head shapes."""
    k1, k2, k3, k4, k5 = jax.random.split(key, 5)
    in_dim = VIDEO_DIM + HUBERT_DIM
    scale1 = 1.0 / jnp.sqrt(in_dim)
    scale2 = 1.0 / jnp.sqrt(FUSION_DIM)
    w1 = jax.random.uniform(k1, (in_dim, FUSION_DIM), jnp.float32, -scale1, scale1)
    return {
        "w1v": w1[:VIDEO_DIM, :],                                            # (512, 512)
        "w1h": w1[VIDEO_DIM:, :],                                            # (768, 512)
        "b1": jax.random.uniform(k2, (1, FUSION_DIM), jnp.float32, -scale1, scale1),
        "we": jax.random.uniform(k3, (FUSION_DIM, NUM_CLASSES), jnp.float32, -scale2, scale2),
        "be": jnp.zeros((1, NUM_CLASSES), jnp.float32),
        "wh": jax.random.uniform(k4, (FUSION_DIM, 1), jnp.float32, -scale2, scale2),
        "bh": jnp.zeros((1, 1), jnp.float32),
    }


def _reference(video_features, hidden_f32, attention_mask, params):
    """Pure-JAX reference for correctness check (f32, highest matmul precision)."""
    mask = attention_mask.astype(jnp.float32)
    pooled = (hidden_f32 * mask[:, :, None]).sum(1) / jnp.maximum(
        mask.sum(1, keepdims=True), 1.0)
    fused = jnp.concatenate([video_features, pooled], axis=1)
    w1 = jnp.concatenate([params["w1v"], params["w1h"]], axis=0)
    h = jnp.maximum(jnp.dot(fused, w1, precision="highest") + params["b1"], 0.0)
    emo = jnp.dot(h, params["we"], precision="highest") + params["be"]
    laugh = (jnp.dot(h, params["wh"], precision="highest") + params["bh"])[:, 0]
    return emo, laugh


if __name__ == "__main__":
    B, T = 2, 200   # T > 128 so the kernel exercises the tiled / padded T path
    key = jax.random.PRNGKey(0)
    kv, kh, kp = jax.random.split(key, 3)

    video_features = jax.random.normal(kv, (B, VIDEO_DIM), jnp.float32)
    hubert_last_hidden = jax.random.normal(kh, (B, T, HUBERT_DIM), jnp.float32)
    # deterministic attention mask: sample 0 fully valid, sample 1 valid for 120 frames
    valid_lens = jnp.array([T, 120], jnp.int32)
    audio_attention_mask = (jnp.arange(T)[None, :] < valid_lens[:, None]).astype(jnp.float32)

    params = init_params(kp)

    out = fusion_forward(video_features, hubert_last_hidden, audio_attention_mask, params)
    jax.block_until_ready(out)

    # Reference sees the same bf16-rounded hidden states the kernel streams.
    hidden_as_seen = hubert_last_hidden.astype(jnp.bfloat16).astype(jnp.float32)
    ref_emo, ref_laugh = _reference(video_features, hidden_as_seen,
                                    audio_attention_mask, params)

    assert out["emotion_logits"].shape == (B, NUM_CLASSES)
    assert out["laugh_logits"].shape == (B,)
    assert jnp.allclose(out["emotion_logits"], ref_emo, atol=1e-3, rtol=1e-3)
    assert jnp.allclose(out["laugh_logits"], ref_laugh, atol=1e-3, rtol=1e-3)

    print("KERNEL_OK")
</pallas_src>

<mosaic_0001>
module attributes {stable_mosaic.version = 11 : i64} {
  func.func @_fusion_kernel(%arg0: i32, %arg1: memref<2x512xf32, #tpu.memory_space<vmem>>, %arg2: memref<2x128x768xbf16, #tpu.memory_space<vmem>>, %arg3: memref<2x128xf32, #tpu.memory_space<vmem>>, %arg4: memref<512x512xf32, #tpu.memory_space<vmem>>, %arg5: memref<768x512xf32, #tpu.memory_space<vmem>>, %arg6: memref<1x512xf32, #tpu.memory_space<vmem>>, %arg7: memref<512x128xf32, #tpu.memory_space<vmem>>, %arg8: memref<1x128xf32, #tpu.memory_space<vmem>>, %arg9: memref<2x128xf32, #tpu.memory_space<vmem>>, %arg10: memref<2x768xf32, #tpu.memory_space<vmem>>) attributes {dimension_semantics = [#tpu.dimension_semantics<arbitrary>], iteration_bounds = array<i64: 2>, scalar_prefetch = 0 : i64, scratch_operands = 1 : i64, tpu.core_type = #tpu.core_type<tc>, window_params = [{pipeline_mode = #tpu.pipeline_mode<synchronous>, transform_indices = @transform_0, window_bounds = array<i64: 2, 512>}, {transform_indices = @transform_1, window_bounds = array<i64: 2, 128, 768>}, {transform_indices = @transform_2, window_bounds = array<i64: 2, 128>}, {pipeline_mode = #tpu.pipeline_mode<synchronous>, transform_indices = @transform_3, window_bounds = array<i64: 512, 512>}, {pipeline_mode = #tpu.pipeline_mode<synchronous>, transform_indices = @transform_4, window_bounds = array<i64: 768, 512>}, {pipeline_mode = #tpu.pipeline_mode<synchronous>, transform_indices = @transform_5, window_bounds = array<i64: 1, 512>}, {pipeline_mode = #tpu.pipeline_mode<synchronous>, transform_indices = @transform_6, window_bounds = array<i64: 512, 128>}, {pipeline_mode = #tpu.pipeline_mode<synchronous>, transform_indices = @transform_7, window_bounds = array<i64: 1, 128>}, {pipeline_mode = #tpu.pipeline_mode<synchronous>, transform_indices = @transform_8, window_bounds = array<i64: 2, 128>}]} {
    %c0_i32 = arith.constant 0 : i32
    %0 = arith.cmpi eq, %arg0, %c0_i32 : i32
    %1 = arith.extui %0 : i1 to i32
    %c0_i32_0 = arith.constant 0 : i32
    %2 = arith.cmpi ne, %1, %c0_i32_0 : i32
    scf.if %2 {
      %cst_10 = arith.constant 0.000000e+00 : f32
      %16 = vector.broadcast %cst_10 : f32 to vector<2x768xf32>
      %c0_11 = arith.constant 0 : index
      %c0_12 = arith.constant 0 : index
      %17 = vector.load %arg10[%c0_11, %c0_12] : memref<2x768xf32, #tpu.memory_space<vmem>>, vector<2x768xf32>
      tpu.vector_store %arg10[%c0_11, %c0_12], %16 {strides = array<i32>} : memref<2x768xf32, #tpu.memory_space<vmem>>, vector<2x768xf32>,
    } else {
    }
    %c0 = arith.constant 0 : index
    %c0_1 = arith.constant 0 : index
    %c0_2 = arith.constant 0 : index
    %3 = vector.load %arg2[%c0, %c0_1, %c0_2] : memref<2x128x768xbf16, #tpu.memory_space<vmem>>, vector<2x128x768xbf16>
    %4 = arith.extf %3 : vector<2x128x768xbf16> to vector<2x128x768xf32>
    %c0_3 = arith.constant 0 : index
    %c0_4 = arith.constant 0 : index
    %5 = vector.load %arg3[%c0_3, %c0_4] : memref<2x128xf32, #tpu.memory_space<vmem>>, vector<2x128xf32>
    %c0_5 = arith.constant 0 : index
    %c0_6 = arith.constant 0 : index
    %6 = vector.load %arg10[%c0_5, %c0_6] : memref<2x768xf32, #tpu.memory_space<vmem>>, vector<2x768xf32>
    %7 = vector.shape_cast %5 : vector<2x128xf32> to vector<2x128x1xf32>
    %8 = vector.broadcast %7 : vector<2x128x1xf32> to vector<2x128x768xf32>
    %9 = arith.mulf %4, %8 : vector<2x128x768xf32>
    %cst = arith.constant dense<0.000000e+00> : vector<2x768xf32>
    %10 = vector.multi_reduction <add>, %9, %cst [1] : vector<2x128x768xf32> to vector<2x768xf32>
    %11 = arith.addf %6, %10 : vector<2x768xf32>
    %c0_7 = arith.constant 0 : index
    %c0_8 = arith.constant 0 : index
    %12 = vector.load %arg10[%c0_7, %c0_8] : memref<2x768xf32, #tpu.memory_space<vmem>>, vector<2x768xf32>
    tpu.vector_store %arg10[%c0_7, %c0_8], %11 {strides = array<i32>} : memref<2x768xf32, #tpu.memory_space<vmem>>, vector<2x768xf32>,
    %c1_i32 = arith.constant 1 : i32
    %13 = arith.cmpi eq, %arg0, %c1_i32 : i32
    %14 = arith.extui %13 : i1 to i32
    %c0_i32_9 = arith.constant 0 : i32
    %15 = arith.cmpi ne, %14, %c0_i32_9 : i32
    scf.if %15 {
      %c0_10 = arith.constant 0 : index
      %c0_11 = arith.constant 0 : index
      %16 = vector.load %arg1[%c0_10, %c0_11] : memref<2x512xf32, #tpu.memory_space<vmem>>, vector<2x512xf32>
      %c0_12 = arith.constant 0 : index
      %c0_13 = arith.constant 0 : index
      %17 = vector.load %arg4[%c0_12, %c0_13] : memref<512x512xf32, #tpu.memory_space<vmem>>, vector<512x512xf32>
      %cst_14 = arith.constant dense<0.000000e+00> : vector<2x512xf32>
      %18 = tpu.matmul %16, %17, %cst_14 {dimension_numbers = #tpu.dot_dimension_numbers<[1], [0], [0], [1], [0, 0, 1, 1], [], []>} : vector<2x512xf32>, vector<512x512xf32>, vector<2x512xf32> -> vector<2x512xf32>
      %c0_15 = arith.constant 0 : index
      %c0_16 = arith.constant 0 : index
      %19 = vector.load %arg10[%c0_15, %c0_16] : memref<2x768xf32, #tpu.memory_space<vmem>>, vector<2x768xf32>
      %c0_17 = arith.constant 0 : index
      %c0_18 = arith.constant 0 : index
      %20 = vector.load %arg5[%c0_17, %c0_18] : memref<768x512xf32, #tpu.memory_space<vmem>>, vector<768x512xf32>
      %cst_19 = arith.constant dense<0.000000e+00> : vector<2x512xf32>
      %21 = tpu.matmul %19, %20, %cst_19 {dimension_numbers = #tpu.dot_dimension_numbers<[1], [0], [0], [1], [0, 0, 1, 1], [], []>} : vector<2x768xf32>, vector<768x512xf32>, vector<2x512xf32> -> vector<2x512xf32>
      %22 = arith.addf %18, %21 : vector<2x512xf32>
      %c0_20 = arith.constant 0 : index
      %c0_21 = arith.constant 0 : index
      %23 = vector.load %arg6[%c0_20, %c0_21] : memref<1x512xf32, #tpu.memory_space<vmem>>, vector<1x512xf32>
      %24 = vector.broadcast %23 : vector<1x512xf32> to vector<2x512xf32>
      %25 = arith.addf %22, %24 : vector<2x512xf32>
      %cst_22 = arith.constant 0.000000e+00 : f32
      %26 = vector.broadcast %cst_22 : f32 to vector<2x512xf32>
      %27 = arith.maximumf %25, %26 : vector<2x512xf32>
      %c0_23 = arith.constant 0 : index
      %c0_24 = arith.constant 0 : index
      %28 = vector.load %arg7[%c0_23, %c0_24] : memref<512x128xf32, #tpu.memory_space<vmem>>, vector<512x128xf32>
      %cst_25 = arith.constant dense<0.000000e+00> : vector<2x128xf32>
      %29 = tpu.matmul %27, %28, %cst_25 {dimension_numbers = #tpu.dot_dimension_numbers<[1], [0], [0], [1], [0, 0, 1, 1], [], []>} : vector<2x512xf32>, vector<512x128xf32>, vector<2x128xf32> -> vector<2x128xf32>
      %c0_26 = arith.constant 0 : index
      %c0_27 = arith.constant 0 : index
      %30 = vector.load %arg8[%c0_26, %c0_27] : memref<1x128xf32, #tpu.memory_space<vmem>>, vector<1x128xf32>
      %31 = vector.broadcast %30 : vector<1x128xf32> to vector<2x128xf32>
      %32 = arith.addf %29, %31 : vector<2x128xf32>
      %c0_28 = arith.constant 0 : index
      %c0_29 = arith.constant 0 : index
      %33 = vector.load %arg9[%c0_28, %c0_29] : memref<2x128xf32, #tpu.memory_space<vmem>>, vector<2x128xf32>
      tpu.vector_store %arg9[%c0_28, %c0_29], %32 {strides = array<i32>} : memref<2x128xf32, #tpu.memory_space<vmem>>, vector<2x128xf32>,
    } else {
    }
    return
  }
  func.func @transform_0(%arg0: i32) -> (i32, i32) {
    %c0_i32 = arith.constant 0 : i32
    %c0_i32_0 = arith.constant 0 : i32
    %c0_i32_1 = arith.constant 0 : i32
    return %c0_i32, %c0_i32_0 : i32, i32
  }
  func.func @transform_1(%arg0: i32) -> (i32, i32, i32) {
    %c0_i32 = arith.constant 0 : i32
    %c0_i32_0 = arith.constant 0 : i32
    %c0_i32_1 = arith.constant 0 : i32
    return %c0_i32, %arg0, %c0_i32_0 : i32, i32, i32
  }
  func.func @transform_2(%arg0: i32) -> (i32, i32) {
    %c0_i32 = arith.constant 0 : i32
    %c0_i32_0 = arith.constant 0 : i32
    return %c0_i32, %arg0 : i32, i32
  }
  func.func @transform_3(%arg0: i32) -> (i32, i32) {
    %c0_i32 = arith.constant 0 : i32
    %c0_i32_0 = arith.constant 0 : i32
    %c0_i32_1 = arith.constant 0 : i32
    return %c0_i32, %c0_i32_0 : i32, i32
  }
  func.func @transform_4(%arg0: i32) -> (i32, i32) {
    %c0_i32 = arith.constant 0 : i32
    %c0_i32_0 = arith.constant 0 : i32
    %c0_i32_1 = arith.constant 0 : i32
    return %c0_i32, %c0_i32_0 : i32, i32
  }
  func.func @transform_5(%arg0: i32) -> (i32, i32) {
    %c0_i32 = arith.constant 0 : i32
    %c0_i32_0 = arith.constant 0 : i32
    %c0_i32_1 = arith.constant 0 : i32
    return %c0_i32, %c0_i32_0 : i32, i32
  }
  func.func @transform_6(%arg0: i32) -> (i32, i32) {
    %c0_i32 = arith.constant 0 : i32
    %c0_i32_0 = arith.constant 0 : i32
    %c0_i32_1 = arith.constant 0 : i32
    return %c0_i32, %c0_i32_0 : i32, i32
  }
  func.func @transform_7(%arg0: i32) -> (i32, i32) {
    %c0_i32 = arith.constant 0 : i32
    %c0_i32_0 = arith.constant 0 : i32
    %c0_i32_1 = arith.constant 0 : i32
    return %c0_i32, %c0_i32_0 : i32, i32
  }
  func.func @transform_8(%arg0: i32) -> (i32, i32) {
    %c0_i32 = arith.constant 0 : i32
    %c0_i32_0 = arith.constant 0 : i32
    %c0_i32_1 = arith.constant 0 : i32
    return %c0_i32, %c0_i32_0 : i32, i32
  }
}

</mosaic_0001>

<bundles_post_ra>
// kernel: tpu_custom_call.1
= control target key start
LH: loop header
LB: loop body
LE: loop exit
PB: predicated region body
PF: predicated region fallthrough
CT: control target
= control target key end

     0   :  { %s4486_s0 = inlined_call_operand.hbm [shape: f32[2,512], index: 0, kind: input, shape index: {}]   ;;  %s4487_s1 = inlined_call_operand.hbm [shape: bf16[2,256,768], index: 1, kind: input, shape index: {}]   ;;  %s4488_s2 = inlined_call_operand.hbm [shape: f32[2,256], index: 2, kind: input, shape index: {}]   ;;  %s4489_s3 = inlined_call_operand.hbm [shape: f32[512,512], index: 3, kind: input, shape index: {}]   ;;  %s4490_s4 = inlined_call_operand.hbm [shape: f32[768,512], index: 4, kind: input, shape index: {}]   ;;  %s4491_s5 = inlined_call_operand.hbm [shape: f32[1,512], index: 5, kind: input, shape index: {}]   ;;  %s4492_s6 = inlined_call_operand.hbm [shape: f32[512,128], index: 6, kind: input, shape index: {}]   ;;  %s4493_s7 = inlined_call_operand.hbm [shape: f32[1,128], index: 7, kind: input, shape index: {}]   ;;  %s4494_s8 = inlined_call_operand.hbm [shape: f32[2,128], index: 8, kind: output, shape index: {}]  }
   0x1   :  { %4495 = sst [smem:[#allocation28_spill]] %s4486_s0 }
   0x2   :  { %4496 = sst [smem:[#allocation29_spill]] %s4489_s3 }
   0x3   :  { %4497 = sst [smem:[#allocation30_spill]] %s4491_s5 }
   0x4   :  { %13 = vsyncpa [#allocation4], 0 }
   0x5   :  { %14 = vsyncpa [#allocation7], 0 }
   0x6   :  { %16 = vsyncpa [#allocation7 + $0x1], 0 }
   0x7   :  { %17 = vsyncpa [#allocation10], 0 }
   0x8   :  { %18 = vsyncpa [#allocation13], 0 }
   0x9   :  { %19 = vsyncpa [#allocation16], 0 }
   0xa   :  { %20 = vsyncpa [#allocation5], 0  ;;  %s3789_s27 = smov 0   ;;  %s3791_s28 = smov 0  }
   0xb   :  { %s3793_s29 = smov 0   ;;  %s3795_s30 = smov 0  }
   0xc LB: > { %s3808_s9 = sadd.s32 4294967295, %s3724_s30   ;;  %s3811_s10 = sadd.s32 1, %s3724_s30   ;;  %s3724_s30 = sphi %s3795_s30, %s4510_s30   ;;  %s3720_s29 = sphi %s3793_s29, %s4509_s29   ;;  %s3716_s28 = sphi %s3791_s28, %s4508_s28   ;;  %s3712_s27 = sphi %s3789_s27, %s4507_s27  }
   0xd   : > { %s51_s11 = ssub.s32 %s3724_s30, %s3811_s10  ;;  %s54_s12 = sadd.s32 1, %s3720_s29 }
   0xe   : > { %p52_p0 = scmp.eq.s32.totalorder %s51_s11, 0  ;;  %p61_p1 = scmp.ne.s32.totalorder %s3720_s29, %s3716_s28 }
   0xf   : > { %p62_p2 = scmp.eq.s32.totalorder %s3724_s30, 0  ;;  %p67_p3 = scmp.ne.s32.totalorder %s3716_s28, %s3712_s27 }
  0x10   : > { %s3821_s13 = scalar_select %p52_p0, %s3720_s29, %s54_s12  }
  0x11   : > { %p3823_p4 = por %p62_p2, %p61_p1  ;;  %p68_p5 = scmp.eq.s32.totalorder %s3808_s9, 0 }
  0x12   : > { %4498 = sst [smem:[#allocation27_spill]] %s3821_s13  ;;  %p3244_p6 = scmp.ge.s32.totalorder %s3724_s30, 1 }
  0x13   : > { %p230_p7 = scmp.lt.s32.totalorder %s3724_s30, 3  ;;  %p3832_p8 = por %p68_p5, %p67_p3 }
  0x14   : > { %p3245_p9 = scmp.ne.s32.totalorder %s3808_s9, 0  ;;  %s4502_s3 = sld [smem:[#allocation29_spill]] }
  0x15   : > { %p3837_p10 = pnand %p3244_p6, %p230_p7  ;;  %s3726_s20 = smov [#allocation9]  }
  0x16   : > { %s255_s21 = sshll.u32 %s3726_s20, 4  ;;  %s4504_s5 = sld [smem:[#allocation30_spill]]  ;;  %s256_s21 = int_to_ptr.vmem [resolvable:$true] %s255_s21 }
  0x17   : > { %p3315_p11 = pneg %p3837_p10  ;;  %s3727_s26 = smov 512  }
  0x18   : > { %s3728_s27 = smov 32   ;;  %s3729_s11 = smov [#allocation12]  }
  0x19   : > { %p3848_p12 = pnand %p3315_p11, %p68_p5  ;;  %s284_s12 = sshll.u32 %s3729_s11, 4  ;;  %s285_s12 = int_to_ptr.vmem [resolvable:$true] %s284_s12 }
  0x1a   : > { %s253_s19 = sshll.u32 %s4502_s3, 4  ;;  %s4505_s0 = sld [smem:[#allocation28_spill]]  ;;  %s254_s19 = int_to_ptr.hbm [resolvable:$true] %s253_s19 }
  0x1b   : > { %3321 = dma.hbm_to_vmem [thread:$0]  (!%p3848_p12), %s254_s19, 32768, %s256_s21, [#allocation10], %s3727_s26, %s3727_s26, %s3728_s27  }
  0x1c   : > { %s282_s25 = sshll.u32 %s4504_s5, 4  ;;  %s267_s3 = sshll.u32 %s4490_s4, 4  ;;  %s283_s25 = int_to_ptr.hbm [resolvable:$true] %s282_s25  ;;  %s268_s3 = int_to_ptr.hbm [resolvable:$true] %s267_s3 }
  0x1d   : > { %3327 = dma.hbm_to_vmem [thread:$0]  (!%p3848_p12), %s283_s25, 64, %s285_s12, [#allocation13]  }
  0x1e   : > { %s3730_s5 = smov [#allocation3]   ;;  %s3731_s19 = smov [#allocation11]  }
  0x1f   : > { %s244_s13 = sshll.u32 %s3730_s5, 4  ;;  %s269_s21 = sshll.u32 %s3731_s19, 4  ;;  %s245_s13 = int_to_ptr.vmem [resolvable:$true] %s244_s13  ;;  %s270_s21 = int_to_ptr.vmem [resolvable:$true] %s269_s21 }
  0x20   : > { %s242_s20 = sshll.u32 %s4505_s0, 4  ;;  %s293_s18 = sshll.u32 %s4492_s6, 4  ;;  %s243_s20 = int_to_ptr.hbm [resolvable:$true] %s242_s20  ;;  %s294_s18 = int_to_ptr.hbm [resolvable:$true] %s293_s18 }
  0x21   : > { %3318 = dma.hbm_to_vmem [thread:$0]  (!%p3848_p12), %s243_s20, 128, %s245_s13, [#allocation4]  }
  0x22   : > { %3324 = dma.hbm_to_vmem [thread:$0]  (!%p3848_p12), %s268_s3, 49152, %s270_s21, [#allocation10], %s3727_s26, %s3727_s26, %s3728_s27  }
  0x23   : > { %s3732_s25 = smov [#allocation14]   ;;  %s308_s24 = sshll.u32 %s4493_s7, 4  ;;  %s309_s24 = int_to_ptr.hbm [resolvable:$true] %s308_s24 }
  0x24   : > { %s295_s12 = sshll.u32 %s3732_s25, 4  ;;  %s3733_s0 = smov 128   ;;  %s296_s12 = int_to_ptr.vmem [resolvable:$true] %s295_s12 }
  0x25   : > { %s3734_s13 = smov 8   ;;  %s3735_s20 = smov [#allocation15]  }
  0x26   : > { %3330 = dma.hbm_to_vmem [thread:$0]  (!%p3848_p12), %s294_s18, 8192, %s296_s12, [#allocation13], %s3733_s0, %s3733_s0, %s3734_s13  }
  0x27   : > { %s310_s19 = sshll.u32 %s3735_s20, 4  ;;  %p3251_p13 = scmp.ge.s32.totalorder %s3724_s30, 2  ;;  %s311_s19 = int_to_ptr.vmem [resolvable:$true] %s310_s19 }
  0x28   : > { %3333 = dma.hbm_to_vmem [thread:$0]  (!%p3848_p12), %s309_s24, 16, %s311_s19, [#allocation16]  }
  0x29   : > { %317 = sbr.rel (%p3251_p13) target bundleno = 74 (0x4a), region = 40 }
  0x2e   : > { %s323_s3 = sand.u32 1, %s3720_s29   ;;  %s321_s26 = sand.u32 1, %s3724_s30  }
  0x2f   : > { %s3273_s0 = smul.u32 768, %s323_s3  ;;  %s3736_s21 = smov 12288  }
  0x30   : > { %s3274_s27 = smul.u32 384, %s3724_s30  ;;  %3289 = sst [smem:[#allocation19]] (%p3823_p4), %s3736_s21 }
  0x31   : > { %s325_s18 = scalar_lea.vmem [#allocation6], %s3273_s0  ;;  %s3737_s24 = smov 6144  }
  0x32   : > { %s331_s17 = scalar_lea.hbm %s4487_s1, %s3274_s27  ;;  %s346_s25 = sshll.u32 %s325_s18, 4  ;;  %s347_s25 = int_to_ptr.vmem [resolvable:$true] %s346_s25 }
  0x33   : > { %s3288_s12 = scalar_select %p3823_p4, [#allocation0], [#allocation20] }
  0x34   : > { %s344_s5 = sshll.u32 %s331_s17, 4  ;;  %3290 = sst [smem:[#allocation19 + $0x1]] (%p3823_p4), %s3737_s24  ;;  %s345_s5 = int_to_ptr.hbm [resolvable:$true] %s344_s5 }
  0x35   : > { %s336_s23 = sld [smem:[%s3288_s12]]   ;;  %s3738_s13 = smov 16  }
  0x36   : > { %3291 = sst [smem:[#allocation19 + $0x2]] (%p3823_p4), %s3738_s13  ;;  %s3739_s20 = smov 384  }
  0x37   : > { %3292 = sst [smem:[#allocation19 + $0x3]] (%p3823_p4), %s3739_s20  ;;  %s3740_s0 = smov 24  }
  0x38   : > { %3293 = sst [smem:[#allocation19 + $0x4]] (%p3823_p4), %s3739_s20  ;;  %s322_s21 = scalar_lea.sflag [#allocation7], %s321_s26 }
  0x39   : > { %3294 = sst [smem:[#allocation19 + $0x5]] (%p3823_p4), %s3740_s0  ;;  %s3741_s22 = smov [#allocation18]  }
  0x3a   : > { %s3257_s11 = sshll.u32 %s323_s3, 1  ;;  %s3258_s17 = sshll.u32 %s3724_s30, 1 }
  0x3b   : > { %s3255_s19 = sshll.u32 %s336_s23, 26  ;;  %s377_s24 = scalar_lea.hbm %s4488_s2, %s3258_s17 }
  0x3c   : > { %s3256_s27 = sadd.s32 134217728, %s3255_s19  ;;  %s379_s13 = sshll.u32 %s377_s24, 4  ;;  %s380_s13 = int_to_ptr.hbm [resolvable:$true] %s379_s13 }
  0x3d   : > { %3295 = dma.general (%p3823_p4), %s345_s5, 12288, %s347_s25, %s322_s21, %s3741_s22, [#allocation19], %s3256_s27, 0  }
  0x3e   : > { %s373_s23 = scalar_lea.vmem [#allocation8], %s3257_s11  ;;  %s3614_s19 = sshra.s32 %s380_s13, 4  ;;  %s3615_s19 = int_to_ptr.hbm [resolvable:$true] %s3614_s19 }
  0x3f   : > { %s381_s20 = sshll.u32 %s373_s23, 4  ;;  %s3616_s26 = scalar_lea.hbm %s3615_s19, 2  ;;  %s382_s20 = int_to_ptr.vmem [resolvable:$true] %s381_s20 }
  0x40   : > { %p3617_p0 = scmp.ne.s32.totalorder %s3615_s19, %s3616_s26  ;;  %s3620_s30 = scalar_lea.hbm %s4488_s2, 4 }
  0x41   : > { %p3621_p3 = scmp.lt.s32.totalorder %s3615_s19, %s4488_s2  ;;  %p3622_p6 = scmp.lt.s32.totalorder %s3620_s30, %s3616_s26 }
  0x42   : > { %p3618_p1 = pnand %p3617_p0, %p3823_p4 }
  0x43   : > { %p3623_p7 = por %p3622_p6, %p3621_p3 }
  0x44   : > { %p3619_p2 = pneg %p3618_p1 }
  0x46   : > { %p3624_p11 = pnand %p3623_p7, %p3619_p2 }
  0x48   : > { %3627 = shalt.err (!%p3624_p11)
}
  0x49   : > { %3296 = dma.hbm_to_vmem [thread:$0]  (%p3823_p4), %s380_s13, 32, %s382_s20, %s322_s21  }
  0x4a PF: > { %390 = sbr.rel (%p3837_p10) target bundleno = 1110 (0x456), region = 52 }
  0x4f   : > { %3687 = dma.done.wait (%p68_p5), [#allocation4], 128  }
  0x50   : > { %3689 = vsyncadd (%p68_p5), [#allocation4], 4294967168  ;;  %s397_s27 = sand.u32 1, %s3808_s9   ;;  %s399_s22 = sand.u32 1, %s3716_s28  }
  0x51   : > { %s3275_s11 = smul.u32 768, %s399_s22  ;;  %s398_s17 = scalar_lea.sflag [#allocation7], %s397_s27 }
  0x53   : > { %s3928_s18 = scalar_lea.vmem [#allocation6], %s3275_s11 }
  0x54   : > { %3691 = dma.done.wait (%p3832_p8), %s398_s17, 12320  }
  0x55   : > { %3693 = vsyncadd (%p3832_p8), %s398_s17, 4294954976  ;;  %s3261_s14 = sshll.u32 %s399_s22, 1 }
  0x56   : > { %s411_s16 = scalar_lea.vmem [#allocation8], %s3261_s14 }
  0x57   : > { %3695 = dma.done.wait (%p68_p5), [#allocation10], 81920  }
  0x58   : > { %3697 = vsyncadd (%p68_p5), [#allocation10], 4294885376 }
  0x59   : > { %3699 = dma.done.wait (%p68_p5), [#allocation13], 8256  }
  0x5a   : > { %3701 = vsyncadd (%p68_p5), [#allocation13], 4294959040 }
  0x5b   : > { %3703 = dma.done.wait (%p68_p5), [#allocation16], 16  }
  0x5c   : > { %3705 = vsyncadd (%p68_p5), [#allocation16], 4294967280  ;;  %474 = sbr.rel (%p3245_p9) target bundleno = 100 (0x64), region = 88 }
  0x61   : > { %v3742_v0 = vmov 0.0  }
  0x62   : > { %475 = vst [vmem:[#allocation2] sm:$0xff] %v3742_v0 }
  0x63   : > { %476 = vst [vmem:[#allocation2 + $0x8] sm:$0xf] %v3742_v0 }
  0x64 PF: > { %v769_v1 = vlaneseq  ;;  %v765_v5 = vld [vmem:[%s411_s16] sm:$0x3]  ;;  %v3985_v21 = vld [vmem:[%s3928_s18 + $0x30] sm:$0xff]  ;;  %v490_v24 = vld [vmem:[%s3928_s18 + $0x68] sm:$0xff]  ;;  %vm1426_vm0 = vcmask 1041408   ;;  %vm1428_vm1 = vcmask 1045508  }
  0x65   : > { %v768_v6 = vperm.slane %v765_v5, 0  ;;  %v3969_v18 = vperm.slane %v765_v5, 1  ;;  %v489_v23 = vld [vmem:[%s3928_s18 + $0x60] sm:$0xff]  ;;  %v3991_v25 = vld [vmem:[%s3928_s18 + $0x38] sm:$0xff]  ;;  %v491_v26 = vld [vmem:[%s3928_s18 + $0x70] sm:$0xff]  ;;  %v585_v28 = vunpack.c.l.bf16 %v3985_v21  ;;  %v586_v31 = vunpack.c.h.bf16 %v3985_v21  ;;  %p3268_p4 = scmp.ne.s32.totalorder %s3808_s9, 1 }
  0x66   : > { %v770_v2 = vshrl.u32 %v769_v1, 7  ;;  %v3995_v27 = vld [vmem:[%s3928_s18 + $0x40] sm:$0xff]  ;;  %v597_v30 = vunpack.c.l.bf16 %v489_v23  ;;  %v478_v32 = vld [vmem:[%s3928_s18 + $0x8] sm:$0xff]  ;;  %v4004_v33 = vld [vmem:[%s3928_s18 + $0x10] sm:$0xff]  ;;  %v598_v34 = vunpack.c.h.bf16 %v489_v23  ;;  %v599_v35 = vunpack.c.l.bf16 %v490_v24 }
  0x67   : > { %v3999_v29 = vld [vmem:[%s3928_s18] sm:$0xff]  ;;  %v600_v36 = vunpack.c.h.bf16 %v490_v24  ;;  %v587_v37 = vunpack.c.l.bf16 %v3991_v25  ;;  %v588_v38 = vunpack.c.h.bf16 %v3991_v25  ;;  %v601_v39 = vunpack.c.l.bf16 %v491_v26  ;;  %v480_v46 = vld [vmem:[%s3928_s18 + $0x18] sm:$0xff]  ;;  %v482_v58 = vld [vmem:[%s3928_s18 + $0x28] sm:$0xff] }
  0x68   : > { %3398 = vset.pattern.permute.xlu0 %v770_v2  ;;  %v783_v3 = vadd.s32 16, %v770_v2  ;;  %v795_v4 = vadd.s32 32, %v770_v2  ;;  %v777_v7 = vadd.s32 8, %v770_v2  ;;  %v789_v8 = vadd.s32 24, %v770_v2  ;;  %v492_v47 = vld [vmem:[%s3928_s18 + $0x78] sm:$0xff]  ;;  %v493_v52 = vld [vmem:[%s3928_s18 + $0x80] sm:$0xff] }
  0x69   : > { %v3948_v9 = vadd.s32 40, %v770_v2  ;;  %v3951_v10 = vadd.s32 64, %v770_v2  ;;  %v3953_v11 = vadd.s32 48, %v770_v2  ;;  %v813_v12 = vadd.s32 56, %v770_v2  ;;  %v481_v57 = vld [vmem:[%s3928_s18 + $0x20] sm:$0xff]  ;;  %v486_v62 = vld [vmem:[%s3928_s18 + $0x48] sm:$0xff] }
  0x6a   : > { %3400 = vset.pattern.permute.xlu1 %v783_v3  ;;  %3402 = vset.pattern.permute.xlu2 %v795_v4  ;;  %v3957_v13 = vadd.s32 104, %v770_v2  ;;  %v3959_v14 = vadd.s32 72, %v770_v2  ;;  %v3961_v15 = vadd.s32 80, %v770_v2  ;;  %v3966_v16 = vadd.s32 88, %v770_v2  ;;  %v487_v63 = vld [vmem:[%s3928_s18 + $0x50] sm:$0xff]  ;;  %v4039_v5 = vld [vmem:[%s3928_s18 + $0x88] sm:$0xff] }
  0x6b   : > { %v843_v17 = vadd.s32 96, %v770_v2  ;;  %v3972_v19 = vadd.s32 112, %v770_v2  ;;  %v3974_v20 = vadd.s32 120, %v770_v2  ;;  %v602_v40 = vunpack.c.h.bf16 %v491_v26 }
  0x6c   : > { %v589_v41 = vunpack.c.l.bf16 %v3995_v27  ;;  %v590_v42 = vunpack.c.h.bf16 %v3995_v27  ;;  %v573_v44 = vunpack.c.l.bf16 %v3999_v29  ;;  %v574_v45 = vunpack.c.h.bf16 %v3999_v29 }
  0x6d   : > { %v575_v48 = vunpack.c.l.bf16 %v478_v32  ;;  %v576_v49 = vunpack.c.h.bf16 %v478_v32  ;;  %v577_v50 = vunpack.c.l.bf16 %v4004_v33  ;;  %v578_v53 = vunpack.c.h.bf16 %v4004_v33 }
  0x6e   : > { %v579_v61 = vunpack.c.l.bf16 %v480_v46  ;;  %v603_v0 = vunpack.c.l.bf16 %v492_v47  ;;  %v592_v23 = vunpack.c.h.bf16 %v486_v62  ;;  %v593_v24 = vunpack.c.l.bf16 %v487_v63 }
  0x6f   : > { %v594_v26 = vunpack.c.h.bf16 %v487_v63  ;;  %v607_v32 = vunpack.c.l.bf16 %v4039_v5  ;;  %v608_v63 = vunpack.c.h.bf16 %v4039_v5  ;;  %vm1430_vm2 = vcmask 1043456  }
  0x70   : > { %773 = vperm.xlu0 %3398, %v768_v6   ;;  %vm1442_vm3 = vcmask 1041409   ;;  %vm1444_vm4 = vcmask 1043459   ;;  %vm1446_vm5 = vcmask 1045509   ;;  %vm1448_vm6 = vcmask 1047559  }
  0x72   : > { %785 = vperm.xlu1 %3400, %v768_v6   ;;  %797 = vperm.xlu2 %3402, %v768_v6  }
  0x78   : > { %3399 = vset.pattern.permute.xlu0 %v777_v7 }
  0x7a   : > { %3401 = vset.pattern.permute.xlu1 %v789_v8  ;;  %3403 = vset.pattern.permute.xlu2 %v3948_v9 }
  0x80   : > { %779 = vperm.xlu0 %3399, %v768_v6  }
  0x82   : > { %791 = vperm.xlu1 %3401, %v768_v6   ;;  %803 = vperm.xlu2 %3403, %v768_v6  }
  0x88   : > { %3406 = vset.pattern.permute.xlu0 %v3951_v10 }
  0x8a   : > { %3404 = vset.pattern.permute.xlu1 %v3953_v11  ;;  %3405 = vset.pattern.permute.xlu2 %v813_v12 }
  0x90   : > { %821 = vperm.xlu0 %3406, %v768_v6  }
  0x92   : > { %809 = vperm.xlu1 %3404, %v768_v6   ;;  %815 = vperm.xlu2 %3405, %v768_v6  }
  0x98   : > { %3411 = vset.pattern.permute.xlu0 %v3957_v13 }
  0x9a   : > { %3407 = vset.pattern.permute.xlu1 %v3959_v14  ;;  %3408 = vset.pattern.permute.xlu2 %v3961_v15 }
  0xa0   : > { %851 = vperm.xlu0 %3411, %v768_v6  }
  0xa2   : > { %827 = vperm.xlu1 %3407, %v768_v6   ;;  %833 = vperm.xlu2 %3408, %v768_v6  }
  0xa8   : > { %3416 = vset.pattern.permute.xlu0 %v783_v3  ;;  %v488_v3 = vld [vmem:[%s3928_s18 + $0x58] sm:$0xff] }
  0xa9   : > { %v595_v29 = vunpack.c.l.bf16 %v488_v3 }
  0xaa   : > { %3409 = vset.pattern.permute.xlu1 %v3966_v16  ;;  %3410 = vset.pattern.permute.xlu2 %v843_v17 }
  0xb0   : > { %882 = vperm.xlu0 %3416, %v3969_v18  }
  0xb2   : > { %839 = vperm.xlu1 %3409, %v768_v6   ;;  %845 = vperm.xlu2 %3410, %v768_v6  }
  0xb8   : > { %3421 = vset.pattern.permute.xlu0 %v813_v12  ;;  %v583_v12 = vunpack.c.l.bf16 %v482_v58 }
  0xba   : > { %3412 = vset.pattern.permute.xlu1 %v3972_v19  ;;  %3413 = vset.pattern.permute.xlu2 %v3974_v20 }
  0xc0   : > { %912 = vperm.xlu0 %3421, %v3969_v18  }
  0xc2   : > { %857 = vperm.xlu1 %3412, %v768_v6   ;;  %863 = vperm.xlu2 %3413, %v768_v6   ;;  %v604_v6 = vunpack.c.h.bf16 %v492_v47 }
  0xc8   : > { %3426 = vset.pattern.permute.xlu0 %v843_v17  ;;  %v584_v17 = vunpack.c.h.bf16 %v482_v58 }
  0xca   : > { %3414 = vset.pattern.permute.xlu1 %v770_v2  ;;  %3415 = vset.pattern.permute.xlu2 %v777_v7  ;;  %v580_v2 = vunpack.c.h.bf16 %v480_v46  ;;  %v605_v7 = vunpack.c.l.bf16 %v493_v52 }
  0xcc   : > { %v798_v22 = vpop.permute.xlu2 %797 }
  0xcd   : > { %v4015_v51 = vmul.f32 %v798_v22, %v597_v30  ;;  %v4020_v54 = vmul.f32 %v798_v22, %v598_v34  ;;  %v4022_v55 = vmul.f32 %v798_v22, %v599_v35  ;;  %v4024_v56 = vmul.f32 %v798_v22, %v600_v36 }
  0xce   : > { %v4029_v59 = vmul.f32 %v798_v22, %v601_v39  ;;  %v4031_v60 = vmul.f32 %v798_v22, %v602_v40  ;;  %v591_v22 = vunpack.c.l.bf16 %v486_v62  ;;  %v596_v30 = vunpack.c.h.bf16 %v488_v3 }
  0xd0   : > { %942 = vperm.xlu0 %3426, %v3969_v18  }
  0xd2   : > { %870 = vperm.xlu1 %3414, %v3969_v18   ;;  %876 = vperm.xlu2 %3415, %v3969_v18  }
  0xd8   : > { %3430 = vset.pattern.permute.xlu0 %v3974_v20 }
  0xda   : > { %3417 = vset.pattern.permute.xlu1 %v789_v8  ;;  %3418 = vset.pattern.permute.xlu2 %v795_v4  ;;  %v606_v8 = vunpack.c.h.bf16 %v493_v52 }
  0xdc   : > { %v4036_v4 = vpop.permute.xlu2 %803 }
  0xdd   : > { %v992_v33 = vmul.f32 %v4036_v4, %v603_v0  ;;  %v993_v35 = vmul.f32 %v4036_v4, %v604_v6  ;;  %v994_v36 = vmul.f32 %v4036_v4, %v605_v7  ;;  %v995_v39 = vmul.f32 %v4036_v4, %v606_v8 }
  0xe2   : > { %888 = vperm.xlu1 %3417, %v3969_v18   ;;  %894 = vperm.xlu2 %3418, %v3969_v18   ;;  %v774_v43 = vpop.permute.xlu0 %773 }
  0xe3   : > { %v962_v34 = vmul.f32 %v774_v43, %v573_v44  ;;  %v963_v40 = vmul.f32 %v774_v43, %v574_v45  ;;  %v964_v46 = vmul.f32 %v774_v43, %v575_v48  ;;  %v965_v47 = vmul.f32 %v774_v43, %v576_v49 }
  0xe4   : > { %v786_v1 = vpop.permute.xlu1 %785  ;;  %v966_v52 = vmul.f32 %v774_v43, %v577_v50  ;;  %v967_v62 = vmul.f32 %v774_v43, %v578_v53 }
  0xe5   : > { %v975_v58 = vmul.f32 %v786_v1, %v586_v31  ;;  %v976_v49 = vmul.f32 %v786_v1, %v587_v37  ;;  %v978_v5 = vmul.f32 %v786_v1, %v589_v41 }
  0xea   : > { %3419 = vset.pattern.permute.xlu1 %v3948_v9  ;;  %3420 = vset.pattern.permute.xlu2 %v3953_v11  ;;  %v581_v9 = vunpack.c.l.bf16 %v481_v57  ;;  %v582_v11 = vunpack.c.h.bf16 %v481_v57  ;;  %v974_v57 = vmul.f32 %v786_v1, %v585_v28  ;;  %v977_v28 = vmul.f32 %v786_v1, %v588_v38 }
  0xf2   : > { %900 = vperm.xlu1 %3419, %v3969_v18   ;;  %v780_v44 = vpop.permute.xlu0 %779  ;;  %906 = vperm.xlu2 %3420, %v3969_v18  }
  0xf3   : > { %v968_v0 = vmul.f32 %v780_v44, %v579_v61  ;;  %v969_v3 = vmul.f32 %v780_v44, %v580_v2  ;;  %v970_v45 = vmul.f32 %v780_v44, %v581_v9  ;;  %v971_v48 = vmul.f32 %v780_v44, %v582_v11 }
  0xf4   : > { %v972_v21 = vmul.f32 %v780_v44, %v583_v12  ;;  %v973_v31 = vmul.f32 %v780_v44, %v584_v17  ;;  %v792_v43 = vpop.permute.xlu1 %791  ;;  %v979_v61 = vmul.f32 %v786_v1, %v590_v42  ;;  %v996_v1 = vmul.f32 %v4036_v4, %v607_v32 }
  0xf5   : > { %v1154_v50 = vadd.f32 %v968_v0, %v962_v34  ;;  %v1175_v53 = vadd.f32 %v969_v3, %v963_v40  ;;  %v1196_v6 = vadd.f32 %v970_v45, %v964_v46  ;;  %v1217_v7 = vadd.f32 %v971_v48, %v965_v47  ;;  %v497_v48 = vld [vmem:[%s3928_s18 + $0xa0] sm:$0xff] }
  0xf6   : > { %v1238_v2 = vadd.f32 %v972_v21, %v966_v52  ;;  %v1259_v8 = vadd.f32 %v973_v31, %v967_v62  ;;  %v980_v9 = vmul.f32 %v792_v43, %v591_v22  ;;  %v981_v37 = vmul.f32 %v792_v43, %v592_v23  ;;  %v496_v62 = vld [vmem:[%s3928_s18 + $0x98] sm:$0xff] }
  0xf7   : > { %v982_v11 = vmul.f32 %v792_v43, %v593_v24  ;;  %v983_v25 = vmul.f32 %v792_v43, %v594_v26  ;;  %v1155_v38 = vadd.f32 %v1154_v50, %v974_v57  ;;  %v1176_v12 = vadd.f32 %v1175_v53, %v975_v58  ;;  %v495_v58 = vld [vmem:[%s3928_s18 + $0x90] sm:$0xff]  ;;  %v4080_v53 = vld [vmem:[%s3928_s18 + $0xa8] sm:$0xff] }
  0xf8   : > { %v1197_v17 = vadd.f32 %v1196_v6, %v976_v49  ;;  %v1218_v44 = vadd.f32 %v1217_v7, %v977_v28  ;;  %v984_v34 = vmul.f32 %v792_v43, %v595_v29  ;;  %v985_v40 = vmul.f32 %v792_v43, %v596_v30 }
  0xf9   : > { %v1239_v46 = vadd.f32 %v1238_v2, %v978_v5  ;;  %v1260_v47 = vadd.f32 %v1259_v8, %v979_v61  ;;  %v1156_v0 = vadd.f32 %v1155_v38, %v980_v9  ;;  %v1177_v3 = vadd.f32 %v1176_v12, %v981_v37  ;;  %v4091_v38 = vld [vmem:[%s3928_s18 + $0xc0] sm:$0xff]  ;;  %v503_v12 = vld [vmem:[%s3928_s18 + $0xd0] sm:$0xff] }
  0xfa   : > { %v1198_v41 = vadd.f32 %v1197_v17, %v982_v11  ;;  %v1219_v45 = vadd.f32 %v1218_v44, %v983_v25  ;;  %3422 = vset.pattern.permute.xlu1 %v3951_v10  ;;  %v997_v22 = vmul.f32 %v4036_v4, %v608_v63  ;;  %3423 = vset.pattern.permute.xlu2 %v3959_v14  ;;  %v609_v49 = vunpack.c.l.bf16 %v495_v58 }
  0xfb   : > { %v1240_v27 = vadd.f32 %v1239_v46, %v984_v34  ;;  %v1261_v42 = vadd.f32 %v1260_v47, %v985_v40  ;;  %v1157_v23 = vadd.f32 %v1156_v0, %v4015_v51  ;;  %v1178_v24 = vadd.f32 %v1177_v3, %v4020_v54  ;;  %v500_v51 = vld [vmem:[%s3928_s18 + $0xb8] sm:$0xff]  ;;  %v506_v3 = vld [vmem:[%s3928_s18 + $0xe8] sm:$0xff] }
  0xfc   : > { %v1199_v26 = vadd.f32 %v1198_v41, %v4022_v55  ;;  %v1220_v10 = vadd.f32 %v1219_v45, %v4024_v56  ;;  %v610_v54 = vunpack.c.h.bf16 %v495_v58  ;;  %v611_v55 = vunpack.c.l.bf16 %v496_v62  ;;  %v4100_v0 = vld [vmem:[%s3928_s18 + $0xd8] sm:$0xff]  ;;  %v509_v58 = vld [vmem:[%s3928_s18 + $0x100] sm:$0xff] }
  0xfd   : > { %v1241_v29 = vadd.f32 %v1240_v27, %v4029_v59  ;;  %v1262_v30 = vadd.f32 %v1261_v42, %v4031_v60  ;;  %v1158_v52 = vadd.f32 %v1157_v23, %v992_v33  ;;  %v1179_v32 = vadd.f32 %v1178_v24, %v993_v35  ;;  %v4076_v33 = vpop.permute.xlu2 %815  ;;  %v499_v23 = vld [vmem:[%s3928_s18 + $0xb0] sm:$0xff] }
  0xfe   : > { %v1200_v57 = vadd.f32 %v1199_v26, %v994_v36  ;;  %v1221_v4 = vadd.f32 %v1220_v10, %v995_v39  ;;  %v612_v28 = vunpack.c.h.bf16 %v496_v62  ;;  %v613_v56 = vunpack.c.l.bf16 %v497_v48 }
  0xff   : > { %v1242_v14 = vadd.f32 %v1241_v29, %v996_v1  ;;  %v1263_v63 = vadd.f32 %v1262_v30, %v997_v22  ;;  %v614_v59 = vunpack.c.h.bf16 %v497_v48  ;;  %v619_v60 = vunpack.c.l.bf16 %v500_v51  ;;  %v507_v29 = vld [vmem:[%s3928_s18 + $0xf0] sm:$0xff]  ;;  %v502_v48 = vld [vmem:[%s3928_s18 + $0xc8] sm:$0xff] }
 0x100   : > { %v615_v37 = vunpack.c.l.bf16 %v4080_v53  ;;  %v620_v11 = vunpack.c.h.bf16 %v500_v51  ;;  %v621_v44 = vunpack.c.l.bf16 %v4091_v38  ;;  %v625_v46 = vunpack.c.l.bf16 %v503_v12 }
 0x101   : > { %v1008_v6 = vmul.f32 %v4076_v33, %v619_v60  ;;  %v626_v47 = vunpack.c.h.bf16 %v503_v12  ;;  %v631_v27 = vunpack.c.l.bf16 %v506_v3  ;;  %v632_v22 = vunpack.c.h.bf16 %v506_v3 }
 0x102   : > { %918 = vperm.xlu1 %3422, %v3969_v18   ;;  %924 = vperm.xlu2 %3423, %v3969_v18   ;;  %v1004_v17 = vmul.f32 %v4076_v33, %v615_v37  ;;  %v1009_v34 = vmul.f32 %v4076_v33, %v620_v11  ;;  %v822_v40 = vpop.permute.xlu0 %821  ;;  %v616_v62 = vunpack.c.h.bf16 %v4080_v53  ;;  %v510_v11 = vld [vmem:[%s3928_s18 + $0x108] sm:$0xff] }
 0x103   : > { %v1010_v45 = vmul.f32 %v822_v40, %v621_v44  ;;  %v1014_v42 = vmul.f32 %v822_v40, %v625_v46  ;;  %v1015_v1 = vmul.f32 %v822_v40, %v626_v47  ;;  %v514_v47 = vld [vmem:[%s3928_s18 + $0x128] sm:$0xff] }
 0x104   : > { %v810_v35 = vpop.permute.xlu1 %809 }
 0x105   : > { %v998_v36 = vmul.f32 %v810_v35, %v609_v49  ;;  %v999_v39 = vmul.f32 %v810_v35, %v610_v54  ;;  %v1000_v21 = vmul.f32 %v810_v35, %v611_v55  ;;  %v1001_v31 = vmul.f32 %v810_v35, %v612_v28  ;;  %v505_v28 = vld [vmem:[%s3928_s18 + $0xe0] sm:$0xff] }
 0x106   : > { %v1002_v43 = vmul.f32 %v810_v35, %v613_v56  ;;  %v1003_v50 = vmul.f32 %v810_v35, %v614_v59  ;;  %v633_v55 = vunpack.c.l.bf16 %v507_v29  ;;  %v834_v56 = vpop.permute.xlu2 %833  ;;  %v634_v59 = vunpack.c.h.bf16 %v507_v29 }
 0x107   : > { %v1159_v7 = vadd.f32 %v1158_v52, %v998_v36  ;;  %v4083_v5 = vadd.f32 %v1179_v32, %v999_v39  ;;  %v4085_v61 = vadd.f32 %v1200_v57, %v1000_v21  ;;  %v4087_v2 = vadd.f32 %v1221_v4, %v1001_v31  ;;  %v508_v4 = vld [vmem:[%s3928_s18 + $0xf8] sm:$0xff] }
 0x108   : > { %v1243_v8 = vadd.f32 %v1242_v14, %v1002_v43  ;;  %v1264_v9 = vadd.f32 %v1263_v63, %v1003_v50  ;;  %v617_v14 = vunpack.c.l.bf16 %v499_v23  ;;  %v618_v63 = vunpack.c.h.bf16 %v499_v23 }
 0x109   : > { %v1160_v41 = vadd.f32 %v1159_v7, %v1004_v17  ;;  %v635_v60 = vunpack.c.l.bf16 %v508_v4  ;;  %v636_v35 = vunpack.c.h.bf16 %v508_v4  ;;  %v637_v36 = vunpack.c.l.bf16 %v509_v58  ;;  %v513_v17 = vld [vmem:[%s3928_s18 + $0x120] sm:$0xff] }
 0x10a   : > { %v1244_v25 = vadd.f32 %v1243_v8, %v1008_v6  ;;  %3424 = vset.pattern.permute.xlu1 %v3961_v15  ;;  %3425 = vset.pattern.permute.xlu2 %v3966_v16  ;;  %v627_v15 = vunpack.c.l.bf16 %v4100_v0  ;;  %v1265_v16 = vadd.f32 %v1264_v9, %v1009_v34  ;;  %v622_v39 = vunpack.c.h.bf16 %v4091_v38 }
 0x10b   : > { %v1161_v26 = vadd.f32 %v1160_v41, %v1010_v45  ;;  %v623_v21 = vunpack.c.l.bf16 %v502_v48  ;;  %v624_v31 = vunpack.c.h.bf16 %v502_v48  ;;  %v638_v43 = vunpack.c.h.bf16 %v509_v58  ;;  %v517_v48 = vld [vmem:[%s3928_s18 + $0x140] sm:$0xff] }
 0x10c   : > { %v1245_v30 = vadd.f32 %v1244_v25, %v1014_v42  ;;  %v1266_v52 = vadd.f32 %v1265_v16, %v1015_v1  ;;  %v1005_v50 = vmul.f32 %v4076_v33, %v616_v62  ;;  %v1006_v53 = vmul.f32 %v4076_v33, %v617_v14  ;;  %v512_v16 = vld [vmem:[%s3928_s18 + $0x118] sm:$0xff] }
 0x10d   : > { %v1007_v6 = vmul.f32 %v4076_v33, %v618_v63  ;;  %v628_v7 = vunpack.c.h.bf16 %v4100_v0  ;;  %v629_v8 = vunpack.c.l.bf16 %v505_v28  ;;  %v630_v9 = vunpack.c.h.bf16 %v505_v28  ;;  %v511_v33 = vld [vmem:[%s3928_s18 + $0x110] sm:$0xff] }
 0x10e   : > { %v4131_v37 = vmul.f32 %v834_v56, %v633_v55  ;;  %v1023_v25 = vmul.f32 %v834_v56, %v634_v59  ;;  %v4134_v38 = vmul.f32 %v834_v56, %v635_v60  ;;  %v4138_v12 = vmul.f32 %v834_v56, %v637_v36  ;;  %v518_v55 = vld [vmem:[%s3928_s18 + $0x148] sm:$0xff] }
 0x10f   : > { %v1012_v44 = vmul.f32 %v822_v40, %v623_v21  ;;  %v1013_v34 = vmul.f32 %v822_v40, %v624_v31  ;;  %v4142_v46 = vmul.f32 %v834_v56, %v638_v43  ;;  %v1181_v0 = vadd.f32 %v4083_v5, %v1005_v50  ;;  %v516_v5 = vld [vmem:[%s3928_s18 + $0x138] sm:$0xff] }
 0x110   : > { %v1202_v3 = vadd.f32 %v4085_v61, %v1006_v53  ;;  %v639_v41 = vunpack.c.l.bf16 %v510_v11  ;;  %v640_v45 = vunpack.c.h.bf16 %v510_v11  ;;  %v641_v42 = vunpack.c.l.bf16 %v511_v33 }
 0x111   : > { %v645_v1 = vunpack.c.l.bf16 %v513_v17  ;;  %v648_v29 = vunpack.c.h.bf16 %v514_v47  ;;  %v643_v4 = vunpack.c.l.bf16 %v512_v16  ;;  %v644_v58 = vunpack.c.h.bf16 %v512_v16 }
 0x112   : > { %930 = vperm.xlu1 %3424, %v3969_v18   ;;  %936 = vperm.xlu2 %3425, %v3969_v18   ;;  %v651_v28 = vunpack.c.l.bf16 %v516_v5  ;;  %v852_v43 = vpop.permute.xlu0 %851  ;;  %v653_v50 = vunpack.c.l.bf16 %v517_v48  ;;  %v654_v53 = vunpack.c.h.bf16 %v517_v48 }
 0x114   : > { %v4107_v24 = vpop.permute.xlu1 %827 }
 0x115   : > { %v1016_v10 = vmul.f32 %v4107_v24, %v627_v15  ;;  %v1020_v32 = vmul.f32 %v4107_v24, %v631_v27  ;;  %v1021_v57 = vmul.f32 %v4107_v24, %v632_v22  ;;  %v515_v15 = vld [vmem:[%s3928_s18 + $0x130] sm:$0xff]  ;;  %v1223_v27 = vadd.f32 %v4087_v2, %v1007_v6 }
 0x116   : > { %v646_v22 = vunpack.c.h.bf16 %v513_v17  ;;  %v1017_v23 = vmul.f32 %v4107_v24, %v628_v7  ;;  %v1018_v61 = vmul.f32 %v4107_v24, %v629_v8  ;;  %v649_v2 = vunpack.c.l.bf16 %v515_v15 }
 0x117   : > { %v4117_v51 = vadd.f32 %v1161_v26, %v1016_v10  ;;  %v4119_v49 = vadd.f32 %v1245_v30, %v1020_v32  ;;  %v4121_v54 = vadd.f32 %v1266_v52, %v1021_v57  ;;  %v846_v26 = vpop.permute.xlu2 %845  ;;  %v647_v10 = vunpack.c.l.bf16 %v514_v47 }
 0x118   : > { %v1019_v30 = vmul.f32 %v4107_v24, %v630_v9  ;;  %v650_v52 = vunpack.c.h.bf16 %v515_v15  ;;  %v1203_v57 = vadd.f32 %v1202_v3, %v1012_v44  ;;  %v1224_v62 = vadd.f32 %v1223_v27, %v1013_v34  ;;  %v522_v27 = vld [vmem:[%s3928_s18 + $0x168] sm:$0xff] }
 0x119   : > { %v1034_v14 = vmul.f32 %v846_v26, %v645_v1  ;;  %v1035_v63 = vmul.f32 %v846_v26, %v646_v22  ;;  %v1036_v60 = vmul.f32 %v846_v26, %v647_v10  ;;  %v1037_v24 = vmul.f32 %v846_v26, %v648_v29  ;;  %v523_v1 = vld [vmem:[%s3928_s18 + $0x170] sm:$0xff]  ;;  %v524_v22 = vld [vmem:[%s3928_s18 + $0x178] sm:$0xff]  ;;  %v521_v29 = vld [vmem:[%s3928_s18 + $0x160] sm:$0xff] }
 0x11a   : > { %3427 = vset.pattern.permute.xlu1 %v3957_v13  ;;  %3428 = vset.pattern.permute.xlu2 %v3972_v19  ;;  %v4136_v13 = vmul.f32 %v834_v56, %v636_v35  ;;  %v1011_v19 = vmul.f32 %v822_v40, %v622_v39  ;;  %v642_v40 = vunpack.c.h.bf16 %v511_v33  ;;  %v652_v35 = vunpack.c.h.bf16 %v516_v5 }
 0x11b   : > { %v1204_v36 = vadd.f32 %v1203_v57, %v1018_v61  ;;  %v1225_v39 = vadd.f32 %v1224_v62, %v1019_v30  ;;  %v1038_v21 = vmul.f32 %v846_v26, %v649_v2  ;;  %v1039_v31 = vmul.f32 %v846_v26, %v650_v52 }
 0x11c   : > { %v1182_v32 = vadd.f32 %v1181_v0, %v1011_v19  ;;  %v655_v6 = vunpack.c.l.bf16 %v518_v55  ;;  %v656_v7 = vunpack.c.h.bf16 %v518_v55  ;;  %v1163_v17 = vadd.f32 %v4117_v51, %v4131_v37 }
 0x11d   : > { %v1040_v44 = vmul.f32 %v852_v43, %v651_v28  ;;  %v1041_v34 = vmul.f32 %v852_v43, %v652_v35  ;;  %v1205_v47 = vadd.f32 %v1204_v36, %v4134_v38  ;;  %v1226_v0 = vadd.f32 %v1225_v39, %v4136_v13 }
 0x11e   : > { %v1183_v56 = vadd.f32 %v1182_v32, %v1017_v23  ;;  %v1268_v51 = vadd.f32 %v4121_v54, %v4142_v46  ;;  %v1042_v37 = vmul.f32 %v852_v43, %v653_v50  ;;  %v1044_v23 = vmul.f32 %v852_v43, %v655_v6 }
 0x11f   : > { %v663_v54 = vunpack.c.l.bf16 %v522_v27  ;;  %v664_v46 = vunpack.c.h.bf16 %v522_v27  ;;  %v864_v5 = vpop.permute.xlu2 %863  ;;  %v665_v61 = vunpack.c.l.bf16 %v523_v1  ;;  %v666_v30 = vunpack.c.h.bf16 %v523_v1 }
 0x120   : > { %v1184_v19 = vadd.f32 %v1183_v56, %v1023_v25  ;;  %v1043_v25 = vmul.f32 %v852_v43, %v654_v53  ;;  %v667_v2 = vunpack.c.l.bf16 %v524_v22  ;;  %v668_v52 = vunpack.c.h.bf16 %v524_v22 }
 0x121   : > { %v661_v55 = vunpack.c.l.bf16 %v521_v29  ;;  %v662_v28 = vunpack.c.h.bf16 %v521_v29  ;;  %v1052_v35 = vmul.f32 %v864_v5, %v663_v54  ;;  %v1053_v36 = vmul.f32 %v864_v5, %v664_v46 }
 0x122   : > { %948 = vperm.xlu1 %3427, %v3969_v18   ;;  %954 = vperm.xlu2 %3428, %v3969_v18   ;;  %v1054_v39 = vmul.f32 %v864_v5, %v665_v61  ;;  %v1056_v50 = vmul.f32 %v864_v5, %v667_v2  ;;  %v1057_v53 = vmul.f32 %v864_v5, %v668_v52 }
 0x124   : > { %v840_v59 = vpop.permute.xlu1 %839 }
 0x125   : > { %v1028_v8 = vmul.f32 %v840_v59, %v639_v41  ;;  %v1029_v9 = vmul.f32 %v840_v59, %v640_v45  ;;  %v1030_v11 = vmul.f32 %v840_v59, %v641_v42  ;;  %v1031_v33 = vmul.f32 %v840_v59, %v642_v40  ;;  %v519_v41 = vld [vmem:[%s3928_s18 + $0x150] sm:$0xff] }
 0x126   : > { %v1032_v3 = vmul.f32 %v840_v59, %v643_v4  ;;  %v1033_v15 = vmul.f32 %v840_v59, %v644_v58  ;;  %v1247_v45 = vadd.f32 %v4119_v49, %v4138_v12  ;;  %v657_v40 = vunpack.c.l.bf16 %v519_v41  ;;  %v520_v12 = vld [vmem:[%s3928_s18 + $0x158] sm:$0xff] }
 0x127   : > { %v1164_v38 = vadd.f32 %v1163_v17, %v1028_v8  ;;  %v1185_v16 = vadd.f32 %v1184_v19, %v1029_v9  ;;  %v1206_v42 = vadd.f32 %v1205_v47, %v1030_v11  ;;  %v1227_v13 = vadd.f32 %v1226_v0, %v1031_v33 }
 0x128   : > { %v658_v26 = vunpack.c.h.bf16 %v519_v41  ;;  %v1248_v10 = vadd.f32 %v1247_v45, %v1032_v3  ;;  %v1269_v49 = vadd.f32 %v1268_v51, %v1033_v15  ;;  %v659_v62 = vunpack.c.l.bf16 %v520_v12 }
 0x129   : > { %v1165_v32 = vadd.f32 %v1164_v38, %v1034_v14  ;;  %v1186_v57 = vadd.f32 %v1185_v16, %v1035_v63  ;;  %v1207_v4 = vadd.f32 %v1206_v42, %v1036_v60  ;;  %v1228_v58 = vadd.f32 %v1227_v13, %v1037_v24 }
 0x12a   : > { %3429 = vset.pattern.permute.xlu1 %v3974_v20  ;;  %v1045_v20 = vmul.f32 %v852_v43, %v656_v7  ;;  %v660_v48 = vunpack.c.h.bf16 %v520_v12  ;;  %v1249_v56 = vadd.f32 %v1248_v10, %v1038_v21  ;;  %v1270_v59 = vadd.f32 %v1269_v49, %v1039_v31 }
 0x12b   : > { %v1055_v43 = vmul.f32 %v864_v5, %v666_v30  ;;  %v1166_v6 = vadd.f32 %v1165_v32, %v1040_v44  ;;  %v1187_v7 = vadd.f32 %v1186_v57, %v1041_v34  ;;  %v1208_v14 = vadd.f32 %v1207_v4, %v1042_v37 }
 0x12c   : > { %v1229_v63 = vadd.f32 %v1228_v58, %v1043_v25  ;;  %v1250_v33 = vadd.f32 %v1249_v56, %v1044_v23  ;;  %v1271_v21 = vadd.f32 %v1270_v59, %v1045_v20 }
 0x132   : > { %960 = vperm.xlu1 %3429, %v3969_v18  }
 0x134   : > { %v858_v60 = vpop.permute.xlu1 %857 }
 0x135   : > { %v1046_v24 = vmul.f32 %v858_v60, %v657_v40  ;;  %v1047_v8 = vmul.f32 %v858_v60, %v658_v26  ;;  %v1048_v9 = vmul.f32 %v858_v60, %v659_v62  ;;  %v1049_v11 = vmul.f32 %v858_v60, %v660_v48 }
 0x136   : > { %v1050_v31 = vmul.f32 %v858_v60, %v661_v55  ;;  %v1051_v17 = vmul.f32 %v858_v60, %v662_v28  ;;  %v528_v60 = vld [vmem:[%s3928_s18 + $0x198] sm:$0xff] }
 0x137   : > { %v1167_v18 = vadd.f32 %v1166_v6, %v1046_v24  ;;  %v1188_v19 = vadd.f32 %v1187_v7, %v1047_v8  ;;  %v1209_v47 = vadd.f32 %v1208_v14, %v1048_v9  ;;  %v1230_v0 = vadd.f32 %v1229_v63, %v1049_v11  ;;  %v529_v8 = vld [vmem:[%s3928_s18 + $0x1a0] sm:$0xff]  ;;  %v530_v9 = vld [vmem:[%s3928_s18 + $0x1a8] sm:$0xff] }
 0x138   : > { %v1251_v3 = vadd.f32 %v1250_v33, %v1050_v31  ;;  %v1272_v15 = vadd.f32 %v1271_v21, %v1051_v17  ;;  %v675_v11 = vunpack.c.l.bf16 %v528_v60  ;;  %v676_v33 = vunpack.c.h.bf16 %v528_v60  ;;  %v525_v21 = vld [vmem:[%s3928_s18 + $0x180] sm:$0xff]  ;;  %v877_v31 = vpop.permute.xlu2 %876  ;;  %v531_v17 = vld [vmem:[%s3928_s18 + $0x1b0] sm:$0xff] }
 0x139   : > { %v1168_v41 = vadd.f32 %v1167_v18, %v1052_v35  ;;  %v1189_v44 = vadd.f32 %v1188_v19, %v1053_v36  ;;  %v1210_v34 = vadd.f32 %v1209_v47, %v1054_v39  ;;  %v1231_v45 = vadd.f32 %v1230_v0, %v1055_v43  ;;  %v526_v47 = vld [vmem:[%s3928_s18 + $0x188] sm:$0xff]  ;;  %v532_v0 = vld [vmem:[%s3928_s18 + $0x1b8] sm:$0xff] }
 0x13a   : > { %v1252_v51 = vadd.f32 %v1251_v3, %v1056_v50  ;;  %v1273_v37 = vadd.f32 %v1272_v15, %v1057_v53  ;;  %v677_v18 = vunpack.c.l.bf16 %v529_v8  ;;  %v678_v19 = vunpack.c.h.bf16 %v529_v8  ;;  %v533_v3 = vld [vmem:[%s3928_s18 + $0x1c0] sm:$0xff] }
 0x13b   : > { %v1169_v25 = vrot.slane %v1168_v41, 4  ;;  %v1190_v27 = vrot.slane %v1189_v44, 4  ;;  %v1211_v38 = vrot.slane %v1210_v34, 4  ;;  %v1232_v16 = vrot.slane %v1231_v45, 4 }
 0x13c   : > { %v1253_v42 = vrot.slane %v1252_v51, 4  ;;  %v1274_v13 = vrot.slane %v1273_v37, 4  ;;  %v679_v15 = vunpack.c.l.bf16 %v530_v9 }
 0x13d   : > { %v1170_v1 = vadd.f32 %v1169_v25, %v1168_v41  ;;  %v1191_v22 = vadd.f32 %v1190_v27, %v1189_v44  ;;  %v1212_v23 = vadd.f32 %v1211_v38, %v1210_v34  ;;  %v1233_v20 = vadd.f32 %v1232_v16, %v1231_v45  ;;  %v527_v44 = vld [vmem:[%s3928_s18 + $0x190] sm:$0xff] }
 0x13e   : > { %v1254_v40 = vadd.f32 %v1253_v42, %v1252_v51  ;;  %v1275_v26 = vadd.f32 %v1274_v13, %v1273_v37  ;;  %v680_v41 = vunpack.c.h.bf16 %v530_v9  ;;  %v669_v34 = vunpack.c.l.bf16 %v525_v21  ;;  %v883_v42 = vpop.permute.xlu0 %882 }
 0x13f   : > { %v1171_v10 = vrot.slane %v1170_v1, 2  ;;  %v1192_v49 = vrot.slane %v1191_v22, 2  ;;  %v1213_v12 = vrot.slane %v1212_v23, 2  ;;  %v1234_v29 = vrot.slane %v1233_v20, 2 }
 0x140   : > { %v1255_v54 = vrot.slane %v1254_v40, 2  ;;  %v1276_v46 = vrot.slane %v1275_v26, 2  ;;  %v670_v45 = vunpack.c.h.bf16 %v525_v21  ;;  %v1064_v51 = vmul.f32 %v877_v31, %v675_v11 }
 0x141   : > { %v1172_v5 = vadd.f32 %v1171_v10, %v1170_v1  ;;  %v1193_v61 = vadd.f32 %v1192_v49, %v1191_v22  ;;  %v1214_v57 = vadd.f32 %v1213_v12, %v1212_v23  ;;  %v1235_v4 = vadd.f32 %v1234_v29, %v1233_v20 }
 0x142   : > { %v1256_v30 = vadd.f32 %v1255_v54, %v1254_v40  ;;  %v1277_v2 = vadd.f32 %v1276_v46, %v1275_v26  ;;  %v1065_v37 = vmul.f32 %v877_v31, %v676_v33  ;;  %v681_v25 = vunpack.c.l.bf16 %v531_v17 }
 0x143   : > { %v1173_v52 = vrot.slane %v1172_v5, 1  ;;  %v1194_v32 = vrot.slane %v1193_v61, 1  ;;  %v1215_v56 = vrot.slane %v1214_v57, 1  ;;  %v1236_v59 = vrot.slane %v1235_v4, 1 }
 0x144   : > { %v1257_v58 = vrot.slane %v1256_v30, 1  ;;  %v1278_v62 = vrot.slane %v1277_v2, 1  ;;  %v682_v27 = vunpack.c.h.bf16 %v531_v17  ;;  %v871_v38 = vpop.permute.xlu1 %870  ;;  %v671_v16 = vunpack.c.l.bf16 %v526_v47 }
 0x145   : > { %v1195_v48 = vadd.f32 %v1194_v32, %v1193_v61  ;;  %v1174_v28 = vadd.f32 %v1173_v52, %v1172_v5  ;;  %v1216_v53 = vadd.f32 %v1215_v56, %v1214_v57  ;;  %v1237_v6 = vadd.f32 %v1236_v59, %v1235_v4  ;;  %v4197_v56 = vld [vmem:[%s3928_s18 + $0x1d0] sm:$0xff]  ;;  %v895_v59 = vpop.permute.xlu2 %894 }
 0x146   : > { %v1279_v55 = vadd.f32 %v1278_v62, %v1277_v2  ;;  %v1258_v36 = vadd.f32 %v1257_v58, %v1256_v30  ;;  %v683_v13 = vunpack.c.l.bf16 %v532_v0  ;;  %v684_v1 = vunpack.c.h.bf16 %v532_v0  ;;  %v4192_v30 = vld [vmem:[%s3928_s18 + $0x1c8] sm:$0xff]  ;;  %v537_v2 = vld [vmem:[%s3928_s18 + $0x1e0] sm:$0xff] }
 0x147   : > { %v1418_v35 = vrot.slane %v1195_v48, 6  ;;  %v1419_v7 = vrot.slane %v1216_v53, 4  ;;  %v1420_v14 = vrot.slane %v1237_v6, 2  ;;  %v685_v22 = vunpack.c.l.bf16 %v533_v3  ;;  %v538_v58 = vld [vmem:[%s3928_s18 + $0x1e8] sm:$0xff] }
 0x148   : > { %v1421_v39 = vrot.slane %v1279_v55, 6  ;;  %v672_v23 = vunpack.c.h.bf16 %v526_v47  ;;  %v673_v20 = vunpack.c.l.bf16 %v527_v44  ;;  %v674_v40 = vunpack.c.h.bf16 %v527_v44 }
 0x149   : > { %v1427_v43 = vsel %vm1426_vm0, %v1174_v28, %v1418_v35  ;;  %v1429_v63 = vsel %vm1428_vm1, %v1419_v7, %v1420_v14  ;;  %v686_v26 = vunpack.c.h.bf16 %v533_v3  ;;  %v1066_v10 = vmul.f32 %v877_v31, %v677_v18  ;;  %v539_v35 = vld [vmem:[%s3928_s18 + $0x1f0] sm:$0xff]  ;;  %v536_v14 = vld [vmem:[%s3928_s18 + $0x1d8] sm:$0xff] }
 0x14a   : > { %v4176_v50 = vsel %vm1426_vm0, %v1258_v36, %v1421_v39  ;;  %v4181_v24 = vsel %vm1430_vm2, %v1427_v43, %v1429_v63  ;;  %v1067_v49 = vmul.f32 %v877_v31, %v678_v19  ;;  %v1068_v12 = vmul.f32 %v877_v31, %v679_v15  ;;  %v543_v19 = vld [vmem:[%s3928_s18 + $0x210] sm:$0xff] }
 0x14b   : > { %v1069_v29 = vmul.f32 %v877_v31, %v680_v41  ;;  %v1058_v54 = vmul.f32 %v871_v38, %v669_v34  ;;  %v1059_v46 = vmul.f32 %v871_v38, %v670_v45  ;;  %v1070_v5 = vmul.f32 %v883_v42, %v681_v25 }
 0x14c   : > { %v1071_v61 = vmul.f32 %v883_v42, %v682_v27  ;;  %v1060_v52 = vmul.f32 %v871_v38, %v671_v16  ;;  %v1072_v32 = vmul.f32 %v883_v42, %v683_v13  ;;  %v1073_v57 = vmul.f32 %v883_v42, %v684_v1  ;;  %v544_v16 = vld [vmem:[%s3928_s18 + $0x218] sm:$0xff] }
 0x14d   : > { %v1074_v4 = vmul.f32 %v883_v42, %v685_v22  ;;  %v1061_v62 = vmul.f32 %v871_v38, %v672_v23  ;;  %v1062_v48 = vmul.f32 %v871_v38, %v673_v20  ;;  %v1063_v55 = vmul.f32 %v871_v38, %v674_v40  ;;  %v4223_v38 = vld [vmem:[%s3928_s18 + $0x208] sm:$0xff] }
 0x14e   : > { %v1075_v28 = vmul.f32 %v883_v42, %v686_v26  ;;  %v687_v36 = vunpack.c.l.bf16 %v4192_v30  ;;  %v688_v39 = vunpack.c.h.bf16 %v4192_v30  ;;  %v693_v43 = vunpack.c.l.bf16 %v537_v2  ;;  %v907_v26 = vpop.permute.xlu2 %906 }
 0x14f   : > { %v694_v53 = vunpack.c.h.bf16 %v537_v2  ;;  %v1280_v6 = vadd.f32 %v1064_v51, %v1058_v54  ;;  %v1301_v7 = vadd.f32 %v1065_v37, %v1059_v46  ;;  %v695_v63 = vunpack.c.l.bf16 %v538_v58  ;;  %v4215_v51 = vld [vmem:[%s3928_s18 + $0x1f8] sm:$0xff]  ;;  %v4218_v37 = vld [vmem:[%s3928_s18 + $0x200] sm:$0xff]  ;;  %v546_v46 = vld [vmem:[%s3928_s18 + $0x228] sm:$0xff] }
 0x150   : > { %v696_v60 = vunpack.c.h.bf16 %v538_v58  ;;  %v1322_v8 = vadd.f32 %v1066_v10, %v1060_v52  ;;  %v689_v9 = vunpack.c.l.bf16 %v4197_v56  ;;  %v690_v11 = vunpack.c.h.bf16 %v4197_v56  ;;  %v545_v10 = vld [vmem:[%s3928_s18 + $0x220] sm:$0xff]  ;;  %v547_v52 = vld [vmem:[%s3928_s18 + $0x230] sm:$0xff] }
 0x151   : > { %v697_v33 = vunpack.c.l.bf16 %v539_v35  ;;  %v1343_v21 = vadd.f32 %v1067_v49, %v1061_v62  ;;  %v1364_v31 = vadd.f32 %v1068_v12, %v1062_v48  ;;  %v1385_v17 = vadd.f32 %v1069_v29, %v1063_v55  ;;  %v548_v62 = vld [vmem:[%s3928_s18 + $0x238] sm:$0xff] }
 0x152   : > { %v698_v18 = vunpack.c.h.bf16 %v539_v35  ;;  %v691_v47 = vunpack.c.l.bf16 %v536_v14  ;;  %v692_v0 = vunpack.c.h.bf16 %v536_v14  ;;  %v4206_v3 = vmul.f32 %v895_v59, %v693_v43  ;;  %v913_v43 = vpop.permute.xlu0 %912 }
 0x153   : > { %v4208_v15 = vmul.f32 %v895_v59, %v694_v53  ;;  %v1281_v41 = vadd.f32 %v1280_v6, %v1070_v5  ;;  %v1302_v44 = vadd.f32 %v1301_v7, %v1071_v61  ;;  %v4210_v34 = vmul.f32 %v895_v59, %v695_v63 }
 0x154   : > { %v4212_v45 = vmul.f32 %v895_v59, %v696_v60  ;;  %v1323_v25 = vadd.f32 %v1322_v8, %v1072_v32  ;;  %v4220_v27 = vmul.f32 %v895_v59, %v697_v33  ;;  %v705_v42 = vunpack.c.l.bf16 %v543_v19  ;;  %v889_v20 = vpop.permute.xlu1 %888 }
 0x155   : > { %v706_v13 = vunpack.c.h.bf16 %v543_v19  ;;  %v1344_v1 = vadd.f32 %v1343_v21, %v1073_v57  ;;  %v1365_v22 = vadd.f32 %v1364_v31, %v1074_v4  ;;  %v1386_v23 = vadd.f32 %v1385_v17, %v1075_v28 }
 0x156   : > { %v4226_v40 = vmul.f32 %v895_v59, %v698_v18  ;;  %v699_v49 = vunpack.c.l.bf16 %v4215_v51  ;;  %v700_v12 = vunpack.c.h.bf16 %v4215_v51  ;;  %v701_v29 = vunpack.c.l.bf16 %v4218_v37  ;;  %v4255_v18 = vld [vmem:[%s3928_s18 + $0x240] sm:$0xff] }
 0x157   : > { %v702_v54 = vunpack.c.h.bf16 %v4218_v37  ;;  %v703_v5 = vunpack.c.l.bf16 %v4223_v38  ;;  %v704_v61 = vunpack.c.h.bf16 %v4223_v38  ;;  %v707_v30 = vunpack.c.l.bf16 %v544_v16 }
 0x158   : > { %v708_v2 = vunpack.c.h.bf16 %v544_v16  ;;  %v709_v32 = vunpack.c.l.bf16 %v545_v10  ;;  %v710_v57 = vunpack.c.h.bf16 %v545_v10  ;;  %v4237_v4 = vmul.f32 %v907_v26, %v705_v42  ;;  %v553_v10 = vld [vmem:[%s3928_s18 + $0x260] sm:$0xff] }
 0x159   : > { %v4239_v58 = vmul.f32 %v907_v26, %v706_v13  ;;  %v1076_v48 = vmul.f32 %v889_v20, %v687_v36  ;;  %v1077_v55 = vmul.f32 %v889_v20, %v688_v39  ;;  %v711_v28 = vunpack.c.l.bf16 %v546_v46 }
 0x15a   : > { %v712_v56 = vunpack.c.h.bf16 %v546_v46  ;;  %v1078_v59 = vmul.f32 %v889_v20, %v689_v9  ;;  %v1079_v35 = vmul.f32 %v889_v20, %v690_v11  ;;  %v713_v53 = vunpack.c.l.bf16 %v547_v52 }
 0x15b   : > { %v714_v6 = vunpack.c.h.bf16 %v547_v52  ;;  %v1080_v7 = vmul.f32 %v889_v20, %v691_v47  ;;  %v1081_v14 = vmul.f32 %v889_v20, %v692_v0  ;;  %v715_v63 = vunpack.c.l.bf16 %v548_v62 }
 0x15c   : > { %v716_v60 = vunpack.c.h.bf16 %v548_v62  ;;  %v4242_v8 = vmul.f32 %v907_v26, %v707_v30  ;;  %v4244_v33 = vmul.f32 %v907_v26, %v708_v2  ;;  %v4246_v21 = vmul.f32 %v907_v26, %v709_v32  ;;  %v554_v2 = vld [vmem:[%s3928_s18 + $0x268] sm:$0xff] }
 0x15d   : > { %v4248_v36 = vmul.f32 %v907_v26, %v710_v57  ;;  %v1282_v39 = vadd.f32 %v1281_v41, %v1076_v48  ;;  %v1303_v31 = vadd.f32 %v1302_v44, %v1077_v55  ;;  %v4250_v11 = vmul.f32 %v913_v43, %v711_v28  ;;  %v4277_v57 = vld [vmem:[%s3928_s18 + $0x248] sm:$0xff] }
 0x15e   : > { %v4252_v17 = vmul.f32 %v913_v43, %v712_v56  ;;  %v1324_v19 = vadd.f32 %v1323_v25, %v1078_v59  ;;  %v1345_v47 = vadd.f32 %v1344_v1, %v1079_v35  ;;  %v4257_v0 = vmul.f32 %v913_v43, %v713_v53  ;;  %v552_v1 = vld [vmem:[%s3928_s18 + $0x258] sm:$0xff] }
 0x15f   : > { %v4259_v51 = vmul.f32 %v913_v43, %v714_v6  ;;  %v1366_v37 = vadd.f32 %v1365_v22, %v1080_v7  ;;  %v1387_v38 = vadd.f32 %v1386_v23, %v1081_v14  ;;  %v4261_v16 = vmul.f32 %v913_v43, %v715_v63  ;;  %v4291_v7 = vld [vmem:[%s3928_s18 + $0x270] sm:$0xff] }
 0x160   : > { %v4263_v41 = vmul.f32 %v913_v43, %v716_v60  ;;  %v717_v13 = vunpack.c.l.bf16 %v4255_v18  ;;  %v718_v25 = vunpack.c.h.bf16 %v4255_v18  ;;  %v1283_v20 = vadd.f32 %v1282_v39, %v4206_v3 }
 0x161   : > { %v1304_v26 = vadd.f32 %v1303_v31, %v4208_v15  ;;  %v1325_v46 = vadd.f32 %v1324_v19, %v4210_v34  ;;  %v1346_v30 = vadd.f32 %v1345_v47, %v4212_v45  ;;  %v1367_v52 = vadd.f32 %v1366_v37, %v4220_v27  ;;  %v4300_v31 = vld [vmem:[%s3928_s18 + $0x278] sm:$0xff] }
 0x162   : > { %v1388_v32 = vadd.f32 %v1387_v38, %v4226_v40  ;;  %v723_v3 = vunpack.c.l.bf16 %v552_v1  ;;  %v724_v62 = vunpack.c.h.bf16 %v552_v1  ;;  %v725_v34 = vunpack.c.l.bf16 %v553_v10 }
 0x163   : > { %v726_v55 = vunpack.c.h.bf16 %v553_v10  ;;  %v728_v27 = vunpack.c.h.bf16 %v554_v2  ;;  %v719_v56 = vunpack.c.l.bf16 %v4277_v57  ;;  %v720_v59 = vunpack.c.h.bf16 %v4277_v57  ;;  %v561_v57 = vld [vmem:[%s3928_s18 + $0x2a0] sm:$0xff] }
 0x164   : > { %v901_v9 = vpop.permute.xlu1 %900  ;;  %v729_v1 = vunpack.c.l.bf16 %v4291_v7 }
 0x165   : > { %v1088_v44 = vmul.f32 %v901_v9, %v699_v49  ;;  %v1089_v42 = vmul.f32 %v901_v9, %v700_v12  ;;  %v1090_v22 = vmul.f32 %v901_v9, %v701_v29  ;;  %v1091_v23 = vmul.f32 %v901_v9, %v702_v54  ;;  %v4280_v29 = vld [vmem:[%s3928_s18 + $0x250] sm:$0xff]  ;;  %v925_v54 = vpop.permute.xlu2 %924 }
 0x166   : > { %v1092_v49 = vmul.f32 %v901_v9, %v703_v5  ;;  %v1093_v12 = vmul.f32 %v901_v9, %v704_v61  ;;  %v727_v61 = vunpack.c.l.bf16 %v554_v2  ;;  %v721_v35 = vunpack.c.l.bf16 %v4280_v29  ;;  %v558_v9 = vld [vmem:[%s3928_s18 + $0x288] sm:$0xff] }
 0x167   : > { %v1284_v15 = vadd.f32 %v1283_v20, %v1088_v44  ;;  %v1305_v48 = vadd.f32 %v1304_v26, %v1089_v42  ;;  %v1326_v45 = vadd.f32 %v1325_v46, %v1090_v22  ;;  %v1347_v5 = vadd.f32 %v1346_v30, %v1091_v23  ;;  %v559_v26 = vld [vmem:[%s3928_s18 + $0x290] sm:$0xff]  ;;  %v560_v22 = vld [vmem:[%s3928_s18 + $0x298] sm:$0xff] }
 0x168   : > { %v1368_v28 = vadd.f32 %v1367_v52, %v1092_v49  ;;  %v1389_v40 = vadd.f32 %v1388_v32, %v1093_v12  ;;  %v722_v43 = vunpack.c.h.bf16 %v4280_v29  ;;  %v4286_v53 = vmul.f32 %v925_v54, %v723_v3 }
 0x169   : > { %v4288_v6 = vmul.f32 %v925_v54, %v724_v62  ;;  %v1285_v14 = vadd.f32 %v1284_v15, %v4237_v4  ;;  %v1306_v63 = vadd.f32 %v1305_v48, %v4239_v58  ;;  %v4295_v60 = vmul.f32 %v925_v54, %v725_v34  ;;  %v4310_v4 = vld [vmem:[%s3928_s18 + $0x280] sm:$0xff] }
 0x16a   : > { %v4297_v39 = vmul.f32 %v925_v54, %v726_v55  ;;  %v1327_v19 = vadd.f32 %v1326_v45, %v4242_v8  ;;  %v1348_v47 = vadd.f32 %v1347_v5, %v4244_v33  ;;  %v4305_v37 = vmul.f32 %v925_v54, %v727_v61  ;;  %v563_v55 = vld [vmem:[%s3928_s18 + $0x2b0] sm:$0xff] }
 0x16b   : > { %v4307_v38 = vmul.f32 %v925_v54, %v728_v27  ;;  %v1369_v58 = vadd.f32 %v1368_v28, %v4246_v21  ;;  %v1390_v44 = vadd.f32 %v1389_v40, %v4248_v36  ;;  %v730_v20 = vunpack.c.h.bf16 %v4291_v7  ;;  %v943_v28 = vpop.permute.xlu0 %942 }
 0x16c   : > { %v731_v8 = vunpack.c.l.bf16 %v4300_v31  ;;  %v732_v33 = vunpack.c.h.bf16 %v4300_v31  ;;  %v735_v23 = vunpack.c.l.bf16 %v558_v9  ;;  %v736_v10 = vunpack.c.h.bf16 %v558_v9 }
 0x16d   : > { %v1286_v46 = vadd.f32 %v1285_v14, %v4250_v11  ;;  %v1307_v21 = vadd.f32 %v1306_v63, %v4252_v17  ;;  %v733_v36 = vunpack.c.l.bf16 %v4310_v4  ;;  %v734_v30 = vunpack.c.h.bf16 %v4310_v4  ;;  %v937_v49 = vpop.permute.xlu2 %936 }
 0x16e   : > { %v1328_v12 = vadd.f32 %v1327_v19, %v4257_v0  ;;  %v1349_v2 = vadd.f32 %v1348_v47, %v4259_v51  ;;  %v737_v52 = vunpack.c.l.bf16 %v559_v26  ;;  %v738_v32 = vunpack.c.h.bf16 %v559_v26  ;;  %v562_v51 = vld [vmem:[%s3928_s18 + $0x2a8] sm:$0xff] }
 0x16f   : > { %v1370_v3 = vadd.f32 %v1369_v58, %v4261_v16  ;;  %v1391_v11 = vadd.f32 %v1390_v44, %v4263_v41  ;;  %v739_v62 = vunpack.c.l.bf16 %v560_v22  ;;  %v740_v17 = vunpack.c.h.bf16 %v560_v22 }
 0x170   : > { %v4333_v29 = vmul.f32 %v937_v49, %v735_v23  ;;  %v4335_v0 = vmul.f32 %v937_v49, %v736_v10  ;;  %v741_v45 = vunpack.c.l.bf16 %v561_v57  ;;  %v742_v16 = vunpack.c.h.bf16 %v561_v57  ;;  %v565_v57 = vld [vmem:[%s3928_s18 + $0x2c0] sm:$0xff] }
 0x171   : > { %v1126_v61 = vmul.f32 %v937_v49, %v737_v52  ;;  %v1127_v27 = vmul.f32 %v937_v49, %v738_v32  ;;  %v1129_v7 = vmul.f32 %v937_v49, %v740_v17  ;;  %v743_v18 = vunpack.c.l.bf16 %v562_v51 }
 0x172   : > { %v745_v31 = vunpack.c.l.bf16 %v563_v55  ;;  %v746_v9 = vunpack.c.h.bf16 %v563_v55  ;;  %v1131_v47 = vmul.f32 %v943_v28, %v742_v16 }
 0x173   : > { %v1132_v26 = vmul.f32 %v943_v28, %v743_v18 }
 0x174   : > { %v919_v42 = vpop.permute.xlu1 %918 }
 0x175   : > { %v1106_v15 = vmul.f32 %v919_v42, %v717_v13  ;;  %v1107_v48 = vmul.f32 %v919_v42, %v718_v25  ;;  %v1108_v54 = vmul.f32 %v919_v42, %v719_v56  ;;  %v1109_v34 = vmul.f32 %v919_v42, %v720_v59 }
 0x176   : > { %v1110_v5 = vmul.f32 %v919_v42, %v721_v35  ;;  %v1111_v41 = vmul.f32 %v919_v42, %v722_v43  ;;  %v1128_v13 = vmul.f32 %v937_v49, %v739_v62  ;;  %v744_v25 = vunpack.c.h.bf16 %v562_v51  ;;  %v564_v49 = vld [vmem:[%s3928_s18 + $0x2b8] sm:$0xff] }
 0x177   : > { %v1287_v14 = vadd.f32 %v1286_v46, %v1106_v15  ;;  %v1308_v63 = vadd.f32 %v1307_v21, %v1107_v48  ;;  %v1329_v19 = vadd.f32 %v1328_v12, %v1108_v54  ;;  %v1350_v56 = vadd.f32 %v1349_v2, %v1109_v34  ;;  %v568_v62 = vld [vmem:[%s3928_s18 + $0x2d8] sm:$0xff] }
 0x178   : > { %v1130_v59 = vmul.f32 %v943_v28, %v741_v45  ;;  %v1371_v4 = vadd.f32 %v1370_v3, %v1110_v5  ;;  %v1392_v35 = vadd.f32 %v1391_v11, %v1111_v41  ;;  %v1133_v22 = vmul.f32 %v943_v28, %v744_v25 }
 0x179   : > { %v1288_v23 = vadd.f32 %v1287_v14, %v4286_v53  ;;  %v1309_v10 = vadd.f32 %v1308_v63, %v4288_v6  ;;  %v1330_v12 = vadd.f32 %v1329_v19, %v4295_v60  ;;  %v1351_v2 = vadd.f32 %v1350_v56, %v4297_v39  ;;  %v566_v6 = vld [vmem:[%s3928_s18 + $0x2c8] sm:$0xff]  ;;  %v569_v39 = vld [vmem:[%s3928_s18 + $0x2e0] sm:$0xff] }
 0x17a   : > { %v1393_v52 = vadd.f32 %v1392_v35, %v4307_v38  ;;  %v747_v3 = vunpack.c.l.bf16 %v564_v49  ;;  %v748_v11 = vunpack.c.h.bf16 %v564_v49  ;;  %v749_v51 = vunpack.c.l.bf16 %v565_v57  ;;  %v572_v49 = vld [vmem:[%s3928_s18 + $0x2f8] sm:$0xff] }
 0x17b   : > { %v750_v54 = vunpack.c.h.bf16 %v565_v57  ;;  %v751_v34 = vunpack.c.l.bf16 %v566_v6  ;;  %v755_v5 = vunpack.c.l.bf16 %v568_v62  ;;  %v756_v41 = vunpack.c.h.bf16 %v568_v62 }
 0x17c   : > { %v955_v55 = vpop.permute.xlu2 %954  ;;  %v757_v18 = vunpack.c.l.bf16 %v569_v39  ;;  %v758_v25 = vunpack.c.h.bf16 %v569_v39  ;;  %v764_v57 = vunpack.c.h.bf16 %v572_v49 }
 0x184   : > { %v931_v40 = vpop.permute.xlu1 %930 }
 0x185   : > { %v1118_v43 = vmul.f32 %v931_v40, %v729_v1  ;;  %v1119_v58 = vmul.f32 %v931_v40, %v730_v20  ;;  %v1120_v44 = vmul.f32 %v931_v40, %v731_v8  ;;  %v1121_v42 = vmul.f32 %v931_v40, %v732_v33  ;;  %v567_v8 = vld [vmem:[%s3928_s18 + $0x2d0] sm:$0xff] }
 0x186   : > { %v1122_v46 = vmul.f32 %v931_v40, %v733_v36  ;;  %v1123_v21 = vmul.f32 %v931_v40, %v734_v30  ;;  %v1134_v1 = vmul.f32 %v943_v28, %v745_v31  ;;  %v1135_v20 = vmul.f32 %v943_v28, %v746_v9 }
 0x187   : > { %v1372_v33 = vadd.f32 %v1371_v4, %v4305_v37  ;;  %v1289_v32 = vadd.f32 %v1288_v23, %v1118_v43  ;;  %v1310_v53 = vadd.f32 %v1309_v10, %v1119_v58  ;;  %v1331_v36 = vadd.f32 %v1330_v12, %v1120_v44  ;;  %v570_v23 = vld [vmem:[%s3928_s18 + $0x2e8] sm:$0xff] }
 0x188   : > { %v1352_v30 = vadd.f32 %v1351_v2, %v1121_v42  ;;  %v1394_v17 = vadd.f32 %v1393_v52, %v1123_v21  ;;  %v753_v15 = vunpack.c.l.bf16 %v567_v8  ;;  %v754_v48 = vunpack.c.h.bf16 %v567_v8 }
 0x189   : > { %v1373_v60 = vadd.f32 %v1372_v33, %v1122_v46  ;;  %v752_v37 = vunpack.c.h.bf16 %v566_v6  ;;  %v1290_v38 = vadd.f32 %v1289_v32, %v4333_v29  ;;  %v1311_v45 = vadd.f32 %v1310_v53, %v4335_v0 }
 0x18a   : > { %v1332_v28 = vadd.f32 %v1331_v36, %v1126_v61  ;;  %v1353_v40 = vadd.f32 %v1352_v30, %v1127_v27  ;;  %v1395_v63 = vadd.f32 %v1394_v17, %v1129_v7  ;;  %v1142_v31 = vmul.f32 %v955_v55, %v753_v15 }
 0x18b   : > { %v1374_v14 = vadd.f32 %v1373_v60, %v1128_v13  ;;  %v1143_v9 = vmul.f32 %v955_v55, %v754_v48  ;;  %v1291_v35 = vadd.f32 %v1290_v38, %v1130_v59  ;;  %v1312_v0 = vadd.f32 %v1311_v45, %v1131_v47  ;;  %v571_v13 = vld [vmem:[%s3928_s18 + $0x2f0] sm:$0xff] }
 0x18c   : > { %v1144_v43 = vmul.f32 %v955_v55, %v755_v5  ;;  %v1145_v58 = vmul.f32 %v955_v55, %v756_v41  ;;  %v1333_v44 = vadd.f32 %v1332_v28, %v1132_v26  ;;  %v1354_v61 = vadd.f32 %v1353_v40, %v1133_v22 }
 0x18d   : > { %v1375_v10 = vadd.f32 %v1374_v14, %v1134_v1  ;;  %v1396_v7 = vadd.f32 %v1395_v63, %v1135_v20  ;;  %v1146_v46 = vmul.f32 %v955_v55, %v757_v18  ;;  %v1147_v21 = vmul.f32 %v955_v55, %v758_v25 }
 0x18e   : > { %v759_v52 = vunpack.c.l.bf16 %v570_v23  ;;  %v760_v59 = vunpack.c.h.bf16 %v570_v23  ;;  %v761_v47 = vunpack.c.l.bf16 %v571_v13  ;;  %v762_v32 = vunpack.c.h.bf16 %v571_v13 }
 0x18f   : > { %v763_v22 = vunpack.c.l.bf16 %v572_v49 }
 0x194   : > { %v949_v16 = vpop.permute.xlu1 %948 }
 0x195   : > { %v1136_v19 = vmul.f32 %v949_v16, %v747_v3  ;;  %v1137_v56 = vmul.f32 %v949_v16, %v748_v11  ;;  %v1138_v4 = vmul.f32 %v949_v16, %v749_v51  ;;  %v1139_v29 = vmul.f32 %v949_v16, %v750_v54 }
 0x196   : > { %v1140_v27 = vmul.f32 %v949_v16, %v751_v34  ;;  %v1141_v42 = vmul.f32 %v949_v16, %v752_v37 }
 0x197   : > { %v1292_v12 = vadd.f32 %v1291_v35, %v1136_v19  ;;  %v1313_v2 = vadd.f32 %v1312_v0, %v1137_v56  ;;  %v1334_v8 = vadd.f32 %v1333_v44, %v1138_v4  ;;  %v1355_v33 = vadd.f32 %v1354_v61, %v1139_v29 }
 0x198   : > { %v1376_v53 = vadd.f32 %v1375_v10, %v1140_v27  ;;  %v1397_v26 = vadd.f32 %v1396_v7, %v1141_v42 }
 0x199   : > { %v1293_v6 = vadd.f32 %v1292_v12, %v1142_v31  ;;  %v1314_v36 = vadd.f32 %v1313_v2, %v1143_v9  ;;  %v1335_v30 = vadd.f32 %v1334_v8, %v1144_v43  ;;  %v1356_v1 = vadd.f32 %v1355_v33, %v1145_v58 }
 0x19a   : > { %v1377_v17 = vadd.f32 %v1376_v53, %v1146_v46  ;;  %v1398_v39 = vadd.f32 %v1397_v26, %v1147_v21 }
 0x1a4   : > { %v961_v20 = vpop.permute.xlu1 %960 }
 0x1a5   : > { %v1148_v3 = vmul.f32 %v961_v20, %v759_v52  ;;  %v1149_v11 = vmul.f32 %v961_v20, %v760_v59  ;;  %v1150_v62 = vmul.f32 %v961_v20, %v761_v47  ;;  %v1151_v60 = vmul.f32 %v961_v20, %v762_v32 }
 0x1a6   : > { %v1152_v15 = vmul.f32 %v961_v20, %v763_v22  ;;  %v1153_v48 = vmul.f32 %v961_v20, %v764_v57 }
 0x1a7   : > { %v1294_v51 = vadd.f32 %v1293_v6, %v1148_v3  ;;  %v1315_v54 = vadd.f32 %v1314_v36, %v1149_v11  ;;  %v1336_v34 = vadd.f32 %v1335_v30, %v1150_v62  ;;  %v1357_v37 = vadd.f32 %v1356_v1, %v1151_v60  ;;  %v766_v3 = vld [vmem:[#allocation2] sm:$0xff]  ;;  %v767_v11 = vld [vmem:[#allocation2 + $0x8] sm:$0xf] }
 0x1a8   : > { %v1378_v55 = vadd.f32 %v1377_v17, %v1152_v15  ;;  %v1399_v38 = vadd.f32 %v1398_v39, %v1153_v48 }
 0x1a9   : > { %v1295_v45 = vrot.slane %v1294_v51, 4  ;;  %v1316_v16 = vrot.slane %v1315_v54, 4  ;;  %v1337_v5 = vrot.slane %v1336_v34, 4  ;;  %v1358_v41 = vrot.slane %v1357_v37, 4 }
 0x1aa   : > { %v1379_v28 = vrot.slane %v1378_v55, 4  ;;  %v1400_v40 = vrot.slane %v1399_v38, 4 }
 0x1ab   : > { %v1296_v18 = vadd.f32 %v1295_v45, %v1294_v51  ;;  %v1317_v25 = vadd.f32 %v1316_v16, %v1315_v54  ;;  %v1338_v14 = vadd.f32 %v1337_v5, %v1336_v34  ;;  %v1359_v63 = vadd.f32 %v1358_v41, %v1357_v37 }
 0x1ac   : > { %v1380_v31 = vadd.f32 %v1379_v28, %v1378_v55  ;;  %v1401_v9 = vadd.f32 %v1400_v40, %v1399_v38 }
 0x1ad   : > { %v1297_v19 = vrot.slane %v1296_v18, 2  ;;  %v1318_v56 = vrot.slane %v1317_v25, 2  ;;  %v1339_v4 = vrot.slane %v1338_v14, 2  ;;  %v1360_v29 = vrot.slane %v1359_v63, 2 }
 0x1ae   : > { %v1381_v35 = vrot.slane %v1380_v31, 2  ;;  %v1402_v0 = vrot.slane %v1401_v9, 2 }
 0x1af   : > { %v1298_v43 = vadd.f32 %v1297_v19, %v1296_v18  ;;  %v1319_v58 = vadd.f32 %v1318_v56, %v1317_v25  ;;  %v1340_v44 = vadd.f32 %v1339_v4, %v1338_v14  ;;  %v1361_v61 = vadd.f32 %v1360_v29, %v1359_v63 }
 0x1b0   : > { %v1382_v27 = vadd.f32 %v1381_v35, %v1380_v31  ;;  %v1403_v42 = vadd.f32 %v1402_v0, %v1401_v9 }
 0x1b1   : > { %v1299_v23 = vrot.slane %v1298_v43, 1  ;;  %v1320_v13 = vrot.slane %v1319_v58, 1  ;;  %v1341_v10 = vrot.slane %v1340_v44, 1  ;;  %v1362_v7 = vrot.slane %v1361_v61, 1 }
 0x1b2   : > { %v1383_v46 = vrot.slane %v1382_v27, 1  ;;  %v1404_v21 = vrot.slane %v1403_v42, 1 }
 0x1b3   : > { %v1321_v49 = vadd.f32 %v1320_v13, %v1319_v58  ;;  %v1342_v12 = vadd.f32 %v1341_v10, %v1340_v44  ;;  %v1363_v2 = vadd.f32 %v1362_v7, %v1361_v61  ;;  %v1300_v33 = vadd.f32 %v1299_v23, %v1298_v43 }
 0x1b4   : > { %v1405_v8 = vadd.f32 %v1404_v21, %v1403_v42  ;;  %v1384_v32 = vadd.f32 %v1383_v46, %v1382_v27 }
 0x1b5   : > { %v1422_v52 = vrot.slane %v1321_v49, 6  ;;  %v1423_v59 = vrot.slane %v1342_v12, 4  ;;  %v1424_v47 = vrot.slane %v1363_v2, 2 }
 0x1b6   : > { %v1425_v53 = vrot.slane %v1405_v8, 6 }
 0x1b7   : > { %v1433_v26 = vsel %vm1426_vm0, %v1300_v33, %v1422_v52  ;;  %v1434_v22 = vsel %vm1428_vm1, %v1423_v59, %v1424_v47 }
 0x1b8   : > { %v1435_v57 = vsel %vm1430_vm2, %v1433_v26, %v1434_v22  ;;  %v1436_v6 = vsel %vm1426_vm0, %v1384_v32, %v1425_v53 }
 0x1b9   : > { %v1441_v36 = vrot.slane %v1435_v57, 7  ;;  %v1452_v30 = vrot.slane %v1436_v6, 7 }
 0x1bb   : > { %v1443_v1 = vsel %vm1442_vm3, %v1441_v36, %v4181_v24  ;;  %v1453_v20 = vsel %vm1442_vm3, %v1452_v30, %v4176_v50 }
 0x1bc   : > { %v1445_v62 = vsel %vm1444_vm4, %v1441_v36, %v1443_v1  ;;  %v1454_v60 = vsel %vm1444_vm4, %v1452_v30, %v1453_v20 }
 0x1bd   : > { %v1447_v17 = vsel %vm1446_vm5, %v1441_v36, %v1445_v62  ;;  %v1455_v39 = vsel %vm1446_vm5, %v1452_v30, %v1454_v60 }
 0x1be   : > { %v1449_v15 = vsel %vm1448_vm6, %v1441_v36, %v1447_v17  ;;  %v1456_v48 = vsel %vm1448_vm6, %v1452_v30, %v1455_v39  ;;  %1466 = sbr.rel (%p3268_p4) target bundleno = 1105 (0x451), region = 92 }
 0x1bf   : > { %v1459_v51 = vadd.f32 %v1449_v15, %v766_v3  ;;  %v1460_v54 = vadd.f32 %v1456_v48, %v767_v11 }
 0x1c1   : > { %1461 = vst [vmem:[#allocation2] sm:$0xff] %v1459_v51 }
 0x1c2   : > { %1462 = vst [vmem:[#allocation2 + $0x8] sm:$0xf] %v1460_v54 }
 0x1c3   : > { %v1786_v34 = vld [vmem:[#allocation11 + $0x1e0] sm:$0xff]  ;;  %v1787_v54 = vld [vmem:[#allocation11 + $0x1e8] sm:$0xff] }
 0x1c4   : > { %v1914_v37 = vld [vmem:[#allocation11 + $0x5e0] sm:$0xff]  ;;  %2127 = vmatpush.msra.mxu0 %v1786_v34 }
 0x1c5   : > { %v1782_v24 = vld [vmem:[#allocation11 + $0x1c0] sm:$0xff]  ;;  %2167 = vmatpush.msra.mxu2 %v1914_v37 }
 0x1c6   : > { %v1850_v50 = vld [vmem:[#allocation11 + $0x3e0] sm:$0xff]  ;;  %2128 = vmatpush.msra.mxu0 %v1782_v24 }
 0x1c7   : > { %v1910_v55 = vld [vmem:[#allocation11 + $0x5c0] sm:$0xff]  ;;  %2147 = vmatpush.msra.mxu1 %v1850_v50 }
 0x1c8   : > { %v1978_v38 = vld [vmem:[#allocation11 + $0x7e0] sm:$0xff]  ;;  %2168 = vmatpush.msra.mxu2 %v1910_v55  ;;  %v1783_v55 = vld [vmem:[#allocation11 + $0x1c8] sm:$0xff] }
 0x1c9   : > { %2187 = vmatpush.msra.mxu3 %v1978_v38  ;;  %v1778_v45 = vld [vmem:[#allocation11 + $0x1a0] sm:$0xff]  ;;  %v1851_v38 = vld [vmem:[#allocation11 + $0x3e8] sm:$0xff] }
 0x1ca   : > { %v1846_v16 = vld [vmem:[#allocation11 + $0x3c0] sm:$0xff]  ;;  %2129 = vmatpush.msra.mxu0 %v1778_v45 }
 0x1cb   : > { %v1906_v5 = vld [vmem:[#allocation11 + $0x5a0] sm:$0xff]  ;;  %2148 = vmatpush.msra.mxu1 %v1846_v16 }
 0x1cc   : > { %v1974_v41 = vld [vmem:[#allocation11 + $0x7c0] sm:$0xff]  ;;  %2169 = vmatpush.msra.mxu2 %v1906_v5  ;;  %v1779_v5 = vld [vmem:[#allocation11 + $0x1a8] sm:$0xff] }
 0x1cd   : > { %v1842_v28 = vld [vmem:[#allocation11 + $0x3a0] sm:$0xff]  ;;  %2188 = vmatpush.msra.mxu3 %v1974_v41  ;;  %v1847_v41 = vld [vmem:[#allocation11 + $0x3c8] sm:$0xff] }
 0x1ce   : > { %v1774_v40 = vld [vmem:[#allocation11 + $0x180] sm:$0xff]  ;;  %2149 = vmatpush.msra.mxu1 %v1842_v28 }
 0x1cf   : > { %v1902_v18 = vld [vmem:[#allocation11 + $0x580] sm:$0xff]  ;;  %2130 = vmatpush.msra.mxu0 %v1774_v40 }
 0x1d0   : > { %v1970_v25 = vld [vmem:[#allocation11 + $0x7a0] sm:$0xff]  ;;  %2170 = vmatpush.msra.mxu2 %v1902_v18  ;;  %v1775_v18 = vld [vmem:[#allocation11 + $0x188] sm:$0xff] }
 0x1d1   : > { %v1838_v14 = vld [vmem:[#allocation11 + $0x380] sm:$0xff]  ;;  %2189 = vmatpush.msra.mxu3 %v1970_v25  ;;  %v1843_v25 = vld [vmem:[#allocation11 + $0x3a8] sm:$0xff] }
 0x1d2   : > { %v1966_v63 = vld [vmem:[#allocation11 + $0x780] sm:$0xff]  ;;  %2150 = vmatpush.msra.mxu1 %v1838_v14 }
 0x1d3   : > { %v1770_v31 = vld [vmem:[#allocation11 + $0x160] sm:$0xff]  ;;  %2190 = vmatpush.msra.mxu3 %v1966_v63 }
 0x1d4   : > { %v1898_v9 = vld [vmem:[#allocation11 + $0x560] sm:$0xff]  ;;  %2131 = vmatpush.msra.mxu0 %v1770_v31  ;;  %v1771_v31 = vld [vmem:[#allocation11 + $0x168] sm:$0xff] }
 0x1d5   : > { %v1834_v19 = vld [vmem:[#allocation11 + $0x360] sm:$0xff]  ;;  %2171 = vmatpush.msra.mxu2 %v1898_v9  ;;  %v1839_v9 = vld [vmem:[#allocation11 + $0x388] sm:$0xff] }
 0x1d6   : > { %v1962_v56 = vld [vmem:[#allocation11 + $0x760] sm:$0xff]  ;;  %2151 = vmatpush.msra.mxu1 %v1834_v19 }
 0x1d7   : > { %v1766_v4 = vld [vmem:[#allocation11 + $0x140] sm:$0xff]  ;;  %2191 = vmatpush.msra.mxu3 %v1962_v56 }
 0x1d8   : > { %v1894_v29 = vld [vmem:[#allocation11 + $0x540] sm:$0xff]  ;;  %2132 = vmatpush.msra.mxu0 %v1766_v4  ;;  %v1767_v4 = vld [vmem:[#allocation11 + $0x148] sm:$0xff] }
 0x1d9   : > { %v1830_v35 = vld [vmem:[#allocation11 + $0x340] sm:$0xff]  ;;  %2172 = vmatpush.msra.mxu2 %v1894_v29  ;;  %v1835_v29 = vld [vmem:[#allocation11 + $0x368] sm:$0xff] }
 0x1da   : > { %v1958_v0 = vld [vmem:[#allocation11 + $0x740] sm:$0xff]  ;;  %2152 = vmatpush.msra.mxu1 %v1830_v35  ;;  %v1724_v35 = vld [vmem:[#allocation2] sm:$0xff] }
 0x1db   : > { %v1762_v43 = vld [vmem:[#allocation11 + $0x120] sm:$0xff]  ;;  %2192 = vmatpush.msra.mxu3 %v1958_v0  ;;  %2112 = vst [vmem:[#allocation1] ss:$4 sm:$0xff] %v1724_v35  ;;  %v1967_v35 = vld [vmem:[#allocation11 + $0x788] sm:$0xff] }
 0x1dc   : > { %v1890_v58 = vld [vmem:[#allocation11 + $0x520] sm:$0xff]  ;;  %2133 = vmatpush.msra.mxu0 %v1762_v43 }
 0x1dd   : > { %v1826_v44 = vld [vmem:[#allocation11 + $0x320] sm:$0xff]  ;;  %2173 = vmatpush.msra.mxu2 %v1890_v58  ;;  %v1763_v58 = vld [vmem:[#allocation11 + $0x128] sm:$0xff] }
 0x1de   : > { %v1954_v61 = vld [vmem:[#allocation11 + $0x720] sm:$0xff]  ;;  %2153 = vmatpush.msra.mxu1 %v1826_v44  ;;  %v1831_v44 = vld [vmem:[#allocation11 + $0x348] sm:$0xff] }
 0x1df   : > { %v1758_v27 = vld [vmem:[#allocation11 + $0x100] sm:$0xff]  ;;  %2193 = vmatpush.msra.mxu3 %v1954_v61 }
 0x1e0   : > { %v1886_v42 = vld [vmem:[#allocation11 + $0x500] sm:$0xff]  ;;  %2134 = vmatpush.msra.mxu0 %v1758_v27 }
 0x1e1   : > { %v1822_v23 = vld [vmem:[#allocation11 + $0x300] sm:$0xff]  ;;  %2174 = vmatpush.msra.mxu2 %v1886_v42  ;;  %v1759_v42 = vld [vmem:[#allocation11 + $0x108] sm:$0xff] }
 0x1e2   : > { %v1950_v13 = vld [vmem:[#allocation11 + $0x700] sm:$0xff]  ;;  %2154 = vmatpush.msra.mxu1 %v1822_v23  ;;  %v1827_v23 = vld [vmem:[#allocation11 + $0x328] sm:$0xff] }
 0x1e3   : > { %v1754_v10 = vld [vmem:[#allocation11 + $0xe0] sm:$0xff]  ;;  %2194 = vmatpush.msra.mxu3 %v1950_v13 }
 0x1e4   : > { %v1882_v7 = vld [vmem:[#allocation11 + $0x4e0] sm:$0xff]  ;;  %2135 = vmatpush.msra.mxu0 %v1754_v10 }
 0x1e5   : > { %v1818_v46 = vld [vmem:[#allocation11 + $0x2e0] sm:$0xff]  ;;  %2175 = vmatpush.msra.mxu2 %v1882_v7  ;;  %v1755_v7 = vld [vmem:[#allocation11 + $0xe8] sm:$0xff] }
 0x1e6   : > { %v1946_v21 = vld [vmem:[#allocation11 + $0x6e0] sm:$0xff]  ;;  %2155 = vmatpush.msra.mxu1 %v1818_v46  ;;  %v1823_v46 = vld [vmem:[#allocation11 + $0x308] sm:$0xff] }
 0x1e7   : > { %v1750_v49 = vld [vmem:[#allocation11 + $0xc0] sm:$0xff]  ;;  %2195 = vmatpush.msra.mxu3 %v1946_v21 }
 0x1e8   : > { %v1878_v12 = vld [vmem:[#allocation11 + $0x4c0] sm:$0xff]  ;;  %2136 = vmatpush.msra.mxu0 %v1750_v49 }
 0x1e9   : > { %v1814_v2 = vld [vmem:[#allocation11 + $0x2c0] sm:$0xff]  ;;  %2176 = vmatpush.msra.mxu2 %v1878_v12  ;;  %v1751_v12 = vld [vmem:[#allocation11 + $0xc8] sm:$0xff] }
 0x1ea   : > { %v1942_v8 = vld [vmem:[#allocation11 + $0x6c0] sm:$0xff]  ;;  %2156 = vmatpush.msra.mxu1 %v1814_v2  ;;  %v1819_v2 = vld [vmem:[#allocation11 + $0x2e8] sm:$0xff] }
 0x1eb   : > { %v1746_v33 = vld [vmem:[#allocation11 + $0xa0] sm:$0xff]  ;;  %2196 = vmatpush.msra.mxu3 %v1942_v8 }
 0x1ec   : > { %v1874_v52 = vld [vmem:[#allocation11 + $0x4a0] sm:$0xff]  ;;  %2137 = vmatpush.msra.mxu0 %v1746_v33 }
 0x1ed   : > { %v1810_v59 = vld [vmem:[#allocation11 + $0x2a0] sm:$0xff]  ;;  %2177 = vmatpush.msra.mxu2 %v1874_v52  ;;  %v1467_v52 = vld [vmem:[#allocation3] sm:$0xff] }
 0x1ee   : > { %v1938_v47 = vld [vmem:[#allocation11 + $0x6a0] sm:$0xff]  ;;  %2157 = vmatpush.msra.mxu1 %v1810_v59  ;;  %v4363_v59 = vld.sshfl [vmem:[#allocation1 + $0x10] sm:$0xff pattern:$0x73625140] }
 0x1ef   : > { %v1742_v32 = vld [vmem:[#allocation11 + $0x80] sm:$0xff]  ;;  %2197 = vmatpush.msra.mxu3 %v1938_v47 }
 0x1f0   : > { %v1870_v53 = vld [vmem:[#allocation11 + $0x480] sm:$0xff]  ;;  %2138 = vmatpush.msra.mxu0 %v1742_v32  ;;  %v4367_v32 = vld.sshfl [vmem:[#allocation1 + $0x18] sm:$0xff pattern:$0x73625140] }
 0x1f1   : > { %v1806_v26 = vld [vmem:[#allocation11 + $0x280] sm:$0xff]  ;;  %2178 = vmatpush.msra.mxu2 %v1870_v53  ;;  %v4369_v53 = vld.sshfl [vmem:[#allocation1 + $0x8] sm:$0xff pattern:$0x73625140] }
 0x1f2   : > { %v1934_v22 = vld [vmem:[#allocation11 + $0x680] sm:$0xff]  ;;  %2158 = vmatpush.msra.mxu1 %v1806_v26  ;;  %v1747_v26 = vld [vmem:[#allocation11 + $0xa8] sm:$0xff] }
 0x1f3   : > { %v1738_v57 = vld [vmem:[#allocation11 + $0x60] sm:$0xff]  ;;  %2198 = vmatpush.msra.mxu3 %v1934_v22  ;;  %v1815_v22 = vld [vmem:[#allocation11 + $0x2c8] sm:$0xff] }
 0x1f4   : > { %v1866_v6 = vld [vmem:[#allocation11 + $0x460] sm:$0xff]  ;;  %2139 = vmatpush.msra.mxu0 %v1738_v57  ;;  %v1725_v57 = vld [vmem:[#allocation2 + $0x8] sm:$0xf] }
 0x1f5   : > { %v1802_v36 = vld [vmem:[#allocation11 + $0x260] sm:$0xff]  ;;  %2179 = vmatpush.msra.mxu2 %v1866_v6  ;;  %2114 = vst [vmem:[#allocation1 + $0x20] ss:$4 sm:$0xff] %v1725_v57  ;;  %v1947_v57 = vld [vmem:[#allocation11 + $0x6e8] sm:$0xff] }
 0x1f6   : > { %v1930_v30 = vld [vmem:[#allocation11 + $0x660] sm:$0xff]  ;;  %2159 = vmatpush.msra.mxu1 %v1802_v36 }
 0x1f7   : > { %v1734_v1 = vld [vmem:[#allocation11 + $0x40] sm:$0xff]  ;;  %2199 = vmatpush.msra.mxu3 %v1930_v30  ;;  %v1743_v30 = vld [vmem:[#allocation11 + $0x88] sm:$0xff] }
 0x1f8   : > { %v1862_v20 = vld [vmem:[#allocation11 + $0x440] sm:$0xff]  ;;  %2140 = vmatpush.msra.mxu0 %v1734_v1  ;;  %v1811_v1 = vld [vmem:[#allocation11 + $0x2a8] sm:$0xff] }
 0x1f9   : > { %v1798_v3 = vld [vmem:[#allocation11 + $0x240] sm:$0xff]  ;;  %2180 = vmatpush.msra.mxu2 %v1862_v20 }
 0x1fa   : > { %v1926_v11 = vld [vmem:[#allocation11 + $0x640] sm:$0xff]  ;;  %2160 = vmatpush.msra.mxu1 %v1798_v3 }
 0x1fb   : > { %v1730_v62 = vld [vmem:[#allocation11 + $0x20] sm:$0xff]  ;;  %2200 = vmatpush.msra.mxu3 %v1926_v11  ;;  %v1739_v11 = vld [vmem:[#allocation11 + $0x68] sm:$0xff] }
 0x1fc   : > { %v1858_v60 = vld [vmem:[#allocation11 + $0x420] sm:$0xff]  ;;  %2141 = vmatpush.msra.mxu0 %v1730_v62  ;;  %v1807_v62 = vld [vmem:[#allocation11 + $0x288] sm:$0xff] }
 0x1fd   : > { %v1794_v17 = vld [vmem:[#allocation11 + $0x220] sm:$0xff]  ;;  %2181 = vmatpush.msra.mxu2 %v1858_v60 }
 0x1fe   : > { %v1922_v39 = vld [vmem:[#allocation11 + $0x620] sm:$0xff]  ;;  %2161 = vmatpush.msra.mxu1 %v1794_v17 }
 0x1ff   : > { %v1726_v15 = vld [vmem:[#allocation11] sm:$0xff]  ;;  %2201 = vmatpush.msra.mxu3 %v1922_v39  ;;  %v1735_v39 = vld [vmem:[#allocation11 + $0x48] sm:$0xff] }
 0x200   : > { %v1854_v48 = vld [vmem:[#allocation11 + $0x400] sm:$0xff]  ;;  %2142 = vmatpush.msra.mxu0 %v1726_v15  ;;  %v1803_v15 = vld [vmem:[#allocation11 + $0x268] sm:$0xff] }
 0x201   : > { %v2042_v51 = vld [vmem:[#allocation11 + $0x9e0] sm:$0xff]  ;;  %2182 = vmatpush.msra.mxu2 %v1854_v48 }
 0x202   : > { %v1790_v34 = vld [vmem:[#allocation11 + $0x200] sm:$0xff]  ;;  %2207 = vmatpush.msrb.mxu0 %v2042_v51  ;;  %2183 = vmatmul.f32.vlgmr.msra.gmra.mxu2 %v4363_v59 }
 0x203   : > { %v1918_v37 = vld [vmem:[#allocation11 + $0x600] sm:$0xff]  ;;  %2247 = vmatpush.msrb.mxu2 %v1787_v54  ;;  %2162 = vmatpush.msra.mxu1 %v1790_v34  ;;  %v1731_v54 = vld [vmem:[#allocation11 + $0x28] sm:$0xff] }
 0x204   : > { %v2038_v24 = vld [vmem:[#allocation11 + $0x9c0] sm:$0xff]  ;;  %2202 = vmatpush.msra.mxu3 %v1918_v37  ;;  %v1799_v34 = vld [vmem:[#allocation11 + $0x248] sm:$0xff]  ;;  %2163 = vmatmul.f32.vlgmr.msra.gmra.mxu1 %v4369_v53 }
 0x205   : > { %v2106_v50 = vld [vmem:[#allocation11 + $0xbe0] sm:$0xff]  ;;  %2208 = vmatpush.msrb.mxu0 %v2038_v24  ;;  %2248 = vmatpush.msrb.mxu2 %v1783_v55  ;;  %v1795_v55 = vld [vmem:[#allocation11 + $0x228] sm:$0xff] }
 0x206   : > { %v2034_v45 = vld [vmem:[#allocation11 + $0x9a0] sm:$0xff]  ;;  %2227 = vmatpush.msrb.mxu1 %v2106_v50  ;;  %2267 = vmatpush.msrb.mxu3 %v1851_v38  ;;  %v1727_v50 = vld [vmem:[#allocation11 + $0x8] sm:$0xff] }
 0x207   : > { %v2102_v16 = vld [vmem:[#allocation11 + $0xbc0] sm:$0xff]  ;;  %2209 = vmatpush.msrb.mxu0 %v2034_v45  ;;  %2249 = vmatpush.msrb.mxu2 %v1779_v5  ;;  %v1915_v38 = vld [vmem:[#allocation11 + $0x5e8] sm:$0xff] }
 0x208   : > { %v2030_v28 = vld [vmem:[#allocation11 + $0x980] sm:$0xff]  ;;  %2228 = vmatpush.msrb.mxu1 %v2102_v16  ;;  %2268 = vmatpush.msrb.mxu3 %v1847_v41  ;;  %v2043_v45 = vld [vmem:[#allocation11 + $0x9e8] sm:$0xff] }
 0x209   : > { %v2098_v40 = vld [vmem:[#allocation11 + $0xba0] sm:$0xff]  ;;  %2210 = vmatpush.msrb.mxu0 %v2030_v28  ;;  %2250 = vmatpush.msrb.mxu2 %v1775_v18  ;;  %v1791_v5 = vld [vmem:[#allocation11 + $0x208] sm:$0xff] }
 0x20a   : > { %v2026_v14 = vld [vmem:[#allocation11 + $0x960] sm:$0xff]  ;;  %2229 = vmatpush.msrb.mxu1 %v2098_v40  ;;  %2269 = vmatpush.msrb.mxu3 %v1843_v25  ;;  %v1911_v41 = vld [vmem:[#allocation11 + $0x5c8] sm:$0xff] }
 0x20b   : > { %v2094_v63 = vld [vmem:[#allocation11 + $0xb80] sm:$0xff]  ;;  %2211 = vmatpush.msrb.mxu0 %v2026_v14  ;;  %2251 = vmatpush.msrb.mxu2 %v1771_v31  ;;  %v1979_v28 = vld [vmem:[#allocation11 + $0x7e8] sm:$0xff] }
 0x20c   : > { %v2022_v19 = vld [vmem:[#allocation11 + $0x940] sm:$0xff]  ;;  %2230 = vmatpush.msrb.mxu1 %v2094_v63  ;;  %2270 = vmatpush.msrb.mxu3 %v1839_v9  ;;  %v2039_v40 = vld [vmem:[#allocation11 + $0x9c8] sm:$0xff] }
 0x20d   : > { %v2090_v56 = vld [vmem:[#allocation11 + $0xb60] sm:$0xff]  ;;  %2212 = vmatpush.msrb.mxu0 %v2022_v19  ;;  %2252 = vmatpush.msrb.mxu2 %v1767_v4  ;;  %v2107_v18 = vld [vmem:[#allocation11 + $0xbe8] sm:$0xff] }
 0x20e   : > { %v2018_v0 = vld [vmem:[#allocation11 + $0x920] sm:$0xff]  ;;  %2231 = vmatpush.msrb.mxu1 %v2090_v56  ;;  %2271 = vmatpush.msrb.mxu3 %v1835_v29  ;;  %v1907_v25 = vld [vmem:[#allocation11 + $0x5a8] sm:$0xff] }
 0x20f   : > { %v2086_v43 = vld [vmem:[#allocation11 + $0xb40] sm:$0xff]  ;;  %2213 = vmatpush.msrb.mxu0 %v2018_v0  ;;  %2253 = vmatpush.msrb.mxu2 %v1763_v58  ;;  %v1975_v14 = vld [vmem:[#allocation11 + $0x7c8] sm:$0xff] }
 0x210   : > { %v2014_v61 = vld [vmem:[#allocation11 + $0x900] sm:$0xff]  ;;  %2232 = vmatpush.msrb.mxu1 %v2086_v43  ;;  %2272 = vmatpush.msrb.mxu3 %v1831_v44  ;;  %v2035_v63 = vld [vmem:[#allocation11 + $0x9a8] sm:$0xff] }
 0x211   : > { %v2082_v27 = vld [vmem:[#allocation11 + $0xb20] sm:$0xff]  ;;  %2214 = vmatpush.msrb.mxu0 %v2014_v61  ;;  %2254 = vmatpush.msrb.mxu2 %v1759_v42  ;;  %v2103_v31 = vld [vmem:[#allocation11 + $0xbc8] sm:$0xff] }
 0x212   : > { %v2010_v13 = vld [vmem:[#allocation11 + $0x8e0] sm:$0xff]  ;;  %2233 = vmatpush.msrb.mxu1 %v2082_v27  ;;  %2273 = vmatpush.msrb.mxu3 %v1827_v23  ;;  %v1903_v9 = vld [vmem:[#allocation11 + $0x588] sm:$0xff] }
 0x213   : > { %v2078_v10 = vld [vmem:[#allocation11 + $0xb00] sm:$0xff]  ;;  %2215 = vmatpush.msrb.mxu0 %v2010_v13  ;;  %2255 = vmatpush.msrb.mxu2 %v1755_v7  ;;  %v1971_v19 = vld [vmem:[#allocation11 + $0x7a8] sm:$0xff] }
 0x214   : > { %v2006_v21 = vld [vmem:[#allocation11 + $0x8c0] sm:$0xff]  ;;  %2234 = vmatpush.msrb.mxu1 %v2078_v10  ;;  %2274 = vmatpush.msrb.mxu3 %v1823_v46  ;;  %v2031_v56 = vld [vmem:[#allocation11 + $0x988] sm:$0xff] }
 0x215   : > { %v2074_v49 = vld [vmem:[#allocation11 + $0xae0] sm:$0xff]  ;;  %2216 = vmatpush.msrb.mxu0 %v2006_v21  ;;  %2256 = vmatpush.msrb.mxu2 %v1751_v12  ;;  %v2099_v4 = vld [vmem:[#allocation11 + $0xba8] sm:$0xff] }
 0x216   : > { %v2002_v8 = vld [vmem:[#allocation11 + $0x8a0] sm:$0xff]  ;;  %2235 = vmatpush.msrb.mxu1 %v2074_v49  ;;  %2275 = vmatpush.msrb.mxu3 %v1819_v2  ;;  %v1899_v0 = vld [vmem:[#allocation11 + $0x568] sm:$0xff] }
 0x217   : > { %v2070_v33 = vld [vmem:[#allocation11 + $0xac0] sm:$0xff]  ;;  %2217 = vmatpush.msrb.mxu0 %v2002_v8  ;;  %2257 = vmatpush.msrb.mxu2 %v1747_v26  ;;  %v2027_v43 = vld [vmem:[#allocation11 + $0x968] sm:$0xff] }
 0x218   : > { %v4365_v47 = vld.sshfl [vmem:[#allocation1] sm:$0xff pattern:$0x73625140]  ;;  %2236 = vmatpush.msrb.mxu1 %v2070_v33  ;;  %2276 = vmatpush.msrb.mxu3 %v1815_v22  ;;  %v2095_v58 = vld [vmem:[#allocation11 + $0xb88] sm:$0xff] }
 0x219   : > { %2608 = vst [vmem:[#allocation1] ss:$4 sm:$0xff] %v1467_v52  ;;  %v1998_v6 = vld [vmem:[#allocation11 + $0x880] sm:$0xff]  ;;  %2258 = vmatpush.msrb.mxu2 %v1743_v30  ;;  %2143 = vmatmul.f32.vlgmr.msra.gmra.mxu0 %v4365_v47  ;;  %v4377_v44 = vld.sshfl [vmem:[#allocation1 + $0x28] sm:$0xff pattern:$0x73625140] }
 0x21a   : > { %v2066_v36 = vld [vmem:[#allocation11 + $0xaa0] sm:$0xff]  ;;  %2218 = vmatpush.msrb.mxu0 %v1998_v6  ;;  %2277 = vmatpush.msrb.mxu3 %v1811_v1  ;;  %v1895_v61 = vld [vmem:[#allocation11 + $0x548] sm:$0xff] }
 0x21b   : > { %v1994_v20 = vld [vmem:[#allocation11 + $0x860] sm:$0xff]  ;;  %2237 = vmatpush.msrb.mxu1 %v2066_v36  ;;  %2259 = vmatpush.msrb.mxu2 %v1739_v11  ;;  %v1963_v27 = vld [vmem:[#allocation11 + $0x768] sm:$0xff] }
 0x21c   : > { %v2062_v3 = vld [vmem:[#allocation11 + $0xa80] sm:$0xff]  ;;  %2219 = vmatpush.msrb.mxu0 %v1994_v20  ;;  %2278 = vmatpush.msrb.mxu3 %v1807_v62  ;;  %v2023_v42 = vld [vmem:[#allocation11 + $0x948] sm:$0xff] }
 0x21d   : > { %v1990_v60 = vld [vmem:[#allocation11 + $0x840] sm:$0xff]  ;;  %2238 = vmatpush.msrb.mxu1 %v2062_v3  ;;  %2260 = vmatpush.msrb.mxu2 %v1735_v39  ;;  %v2091_v23 = vld [vmem:[#allocation11 + $0xb68] sm:$0xff] }
 0x21e   : > { %v2058_v17 = vld [vmem:[#allocation11 + $0xa60] sm:$0xff]  ;;  %2220 = vmatpush.msrb.mxu0 %v1990_v60  ;;  %2279 = vmatpush.msrb.mxu3 %v1803_v15  ;;  %v1891_v13 = vld [vmem:[#allocation11 + $0x528] sm:$0xff] }
 0x21f   : > { %v1986_v48 = vld [vmem:[#allocation11 + $0x820] sm:$0xff]  ;;  %2239 = vmatpush.msrb.mxu1 %v2058_v17  ;;  %2261 = vmatpush.msrb.mxu2 %v1731_v54  ;;  %v1959_v10 = vld [vmem:[#allocation11 + $0x748] sm:$0xff] }
 0x220   : > { %v2054_v51 = vld [vmem:[#allocation11 + $0xa40] sm:$0xff]  ;;  %2221 = vmatpush.msrb.mxu0 %v1986_v48  ;;  %2280 = vmatpush.msrb.mxu3 %v1799_v34  ;;  %v2019_v7 = vld [vmem:[#allocation11 + $0x928] sm:$0xff] }
 0x221   : > { %v1982_v37 = vld [vmem:[#allocation11 + $0x800] sm:$0xff]  ;;  %2240 = vmatpush.msrb.mxu1 %v2054_v51  ;;  %2262 = vmatpush.msrb.mxu2 %v1727_v50  ;;  %v2087_v46 = vld [vmem:[#allocation11 + $0xb48] sm:$0xff] }
 0x222   : > { %v2050_v24 = vld [vmem:[#allocation11 + $0xa20] sm:$0xff]  ;;  %2222 = vmatpush.msrb.mxu0 %v1982_v37  ;;  %2281 = vmatpush.msrb.mxu3 %v1795_v55  ;;  %v1887_v21 = vld [vmem:[#allocation11 + $0x508] sm:$0xff] }
 0x223   : > { %2241 = vmatpush.msrb.mxu1 %v2050_v24  ;;  %v2046_v16 = vld [vmem:[#allocation11 + $0xa00] sm:$0xff]  ;;  %2203 = vmatmul.f32.vlgmr.msra.gmra.mxu3 %v4367_v32  ;;  %v1955_v49 = vld [vmem:[#allocation11 + $0x728] sm:$0xff] }
 0x224   : > { %2287 = vmatpush.msra.mxu0 %v1915_v38  ;;  %2327 = vmatpush.msra.mxu2 %v2043_v45  ;;  %v4375_v29 = vld.sshfl [vmem:[#allocation1 + $0x20] sm:$0xff pattern:$0x73625140]  ;;  %v2015_v12 = vld [vmem:[#allocation11 + $0x908] sm:$0xff] }
 0x225   : > { %2242 = vmatpush.msrb.mxu1 %v2046_v16  ;;  %2282 = vmatpush.msrb.mxu3 %v1791_v5  ;;  %v2083_v2 = vld [vmem:[#allocation11 + $0xb28] sm:$0xff] }
 0x226   : > { %2288 = vmatpush.msra.mxu0 %v1911_v41  ;;  %2328 = vmatpush.msra.mxu2 %v2039_v40  ;;  %v1883_v8 = vld [vmem:[#allocation11 + $0x4e8] sm:$0xff]  ;;  %v1788_v40 = vld [vmem:[#allocation11 + $0x1f0] sm:$0xff] }
 0x227   : > { %2307 = vmatpush.msra.mxu1 %v1979_v28  ;;  %2347 = vmatpush.msra.mxu3 %v2107_v18  ;;  %v1951_v33 = vld [vmem:[#allocation11 + $0x708] sm:$0xff]  ;;  %v1916_v18 = vld [vmem:[#allocation11 + $0x5f0] sm:$0xff] }
 0x228   : > { %2289 = vmatpush.msra.mxu0 %v1907_v25  ;;  %2329 = vmatpush.msra.mxu2 %v2035_v63  ;;  %v2011_v52 = vld [vmem:[#allocation11 + $0x8e8] sm:$0xff]  ;;  %v1784_v63 = vld [vmem:[#allocation11 + $0x1d0] sm:$0xff] }
 0x229   : > { %2308 = vmatpush.msra.mxu1 %v1975_v14  ;;  %2348 = vmatpush.msra.mxu3 %v2103_v31  ;;  %v2079_v26 = vld [vmem:[#allocation11 + $0xb08] sm:$0xff]  ;;  %v1852_v31 = vld [vmem:[#allocation11 + $0x3f0] sm:$0xff] }
 0x22a   : > { %2290 = vmatpush.msra.mxu0 %v1903_v9  ;;  %2330 = vmatpush.msra.mxu2 %v2031_v56  ;;  %v1879_v22 = vld [vmem:[#allocation11 + $0x4c8] sm:$0xff]  ;;  %v1912_v9 = vld [vmem:[#allocation11 + $0x5d0] sm:$0xff] }
 0x22b   : > { %2309 = vmatpush.msra.mxu1 %v1971_v19  ;;  %2349 = vmatpush.msra.mxu3 %v2099_v4  ;;  %v2007_v6 = vld [vmem:[#allocation11 + $0x8c8] sm:$0xff]  ;;  %v1980_v19 = vld [vmem:[#allocation11 + $0x7f0] sm:$0xff] }
 0x22c   : > { %2223 = vmatmul.f32.vlgmr.msrb.gmra.mxu0 %v4375_v29  ;;  %2331 = vmatpush.msra.mxu2 %v2027_v43  ;;  %v2075_v36 = vld [vmem:[#allocation11 + $0xae8] sm:$0xff]  ;;  %v1780_v56 = vld [vmem:[#allocation11 + $0x1b0] sm:$0xff] }
 0x22d   : > { %2310 = vmatpush.msra.mxu1 %v1967_v35  ;;  %2291 = vmatpush.msra.mxu0 %v1899_v0  ;;  %v1875_v30 = vld [vmem:[#allocation11 + $0x4a8] sm:$0xff]  ;;  %v1848_v4 = vld [vmem:[#allocation11 + $0x3d0] sm:$0xff] }
 0x22e   : > { %2350 = vmatpush.msra.mxu3 %v2095_v58  ;;  %2243 = vmatmul.f32.vlgmr.msrb.gmra.mxu1 %v4377_v44  ;;  %v1943_v1 = vld [vmem:[#allocation11 + $0x6c8] sm:$0xff]  ;;  %v1908_v35 = vld [vmem:[#allocation11 + $0x5b0] sm:$0xff] }
 0x22f   : > { %2292 = vmatpush.msra.mxu0 %v1895_v61  ;;  %2311 = vmatpush.msra.mxu1 %v1963_v27  ;;  %v2003_v20 = vld [vmem:[#allocation11 + $0x8a8] sm:$0xff]  ;;  %v1976_v0 = vld [vmem:[#allocation11 + $0x7d0] sm:$0xff] }
 0x230   : > { %2332 = vmatpush.msra.mxu2 %v2023_v42  ;;  %2351 = vmatpush.msra.mxu3 %v2091_v23  ;;  %v2071_v3 = vld [vmem:[#allocation11 + $0xac8] sm:$0xff]  ;;  %v1776_v43 = vld [vmem:[#allocation11 + $0x190] sm:$0xff] }
 0x231   : > { %2293 = vmatpush.msra.mxu0 %v1891_v13  ;;  %2312 = vmatpush.msra.mxu1 %v1959_v10  ;;  %v1871_v11 = vld [vmem:[#allocation11 + $0x488] sm:$0xff]  ;;  %v1844_v58 = vld [vmem:[#allocation11 + $0x3b0] sm:$0xff] }
 0x232   : > { %2333 = vmatpush.msra.mxu2 %v2019_v7  ;;  %2352 = vmatpush.msra.mxu3 %v2087_v46  ;;  %v1939_v62 = vld [vmem:[#allocation11 + $0x6a8] sm:$0xff]  ;;  %v1904_v61 = vld [vmem:[#allocation11 + $0x590] sm:$0xff] }
 0x233   : > { %2294 = vmatpush.msra.mxu0 %v1887_v21  ;;  %2313 = vmatpush.msra.mxu1 %v1955_v49  ;;  %v1999_v60 = vld [vmem:[#allocation11 + $0x888] sm:$0xff]  ;;  %v1972_v27 = vld [vmem:[#allocation11 + $0x7b0] sm:$0xff] }
 0x234   : > { %2334 = vmatpush.msra.mxu2 %v2015_v12  ;;  %2353 = vmatpush.msra.mxu3 %v2083_v2  ;;  %v2067_v17 = vld [vmem:[#allocation11 + $0xaa8] sm:$0xff]  ;;  %v1772_v42 = vld [vmem:[#allocation11 + $0x170] sm:$0xff] }
 0x235   : > { %2295 = vmatpush.msra.mxu0 %v1883_v8  ;;  %2314 = vmatpush.msra.mxu1 %v1951_v33  ;;  %v1867_v39 = vld [vmem:[#allocation11 + $0x468] sm:$0xff]  ;;  %v1840_v23 = vld [vmem:[#allocation11 + $0x390] sm:$0xff] }
 0x236   : > { %2335 = vmatpush.msra.mxu2 %v2011_v52  ;;  %2354 = vmatpush.msra.mxu3 %v2079_v26  ;;  %v1935_v15 = vld [vmem:[#allocation11 + $0x688] sm:$0xff]  ;;  %v1900_v13 = vld [vmem:[#allocation11 + $0x570] sm:$0xff] }
 0x237   : > { %2296 = vmatpush.msra.mxu0 %v1879_v22  ;;  %2315 = vmatpush.msra.mxu1 %v1947_v57  ;;  %v1995_v48 = vld [vmem:[#allocation11 + $0x868] sm:$0xff]  ;;  %v1968_v10 = vld [vmem:[#allocation11 + $0x790] sm:$0xff] }
 0x238   : > { %2336 = vmatpush.msra.mxu2 %v2007_v6  ;;  %2355 = vmatpush.msra.mxu3 %v2075_v36  ;;  %v2063_v51 = vld [vmem:[#allocation11 + $0xa88] sm:$0xff]  ;;  %v1768_v7 = vld [vmem:[#allocation11 + $0x150] sm:$0xff] }
 0x239   : > { %2297 = vmatpush.msra.mxu0 %v1875_v30  ;;  %2316 = vmatpush.msra.mxu1 %v1943_v1  ;;  %v1863_v54 = vld [vmem:[#allocation11 + $0x448] sm:$0xff]  ;;  %v1836_v46 = vld [vmem:[#allocation11 + $0x370] sm:$0xff] }
 0x23a   : > { %2337 = vmatpush.msra.mxu2 %v2003_v20  ;;  %2356 = vmatpush.msra.mxu3 %v2071_v3  ;;  %v1931_v34 = vld [vmem:[#allocation11 + $0x668] sm:$0xff]  ;;  %v1896_v21 = vld [vmem:[#allocation11 + $0x550] sm:$0xff] }
 0x23b   : > { %2298 = vmatpush.msra.mxu0 %v1871_v11  ;;  %2317 = vmatpush.msra.mxu1 %v1939_v62  ;;  %v1991_v37 = vld [vmem:[#allocation11 + $0x848] sm:$0xff]  ;;  %v1964_v49 = vld [vmem:[#allocation11 + $0x770] sm:$0xff] }
 0x23c   : > { %2338 = vmatpush.msra.mxu2 %v1999_v60  ;;  %2357 = vmatpush.msra.mxu3 %v2067_v17  ;;  %v2059_v24 = vld [vmem:[#allocation11 + $0xa68] sm:$0xff]  ;;  %v1764_v12 = vld [vmem:[#allocation11 + $0x130] sm:$0xff] }
 0x23d   : > { %2299 = vmatpush.msra.mxu0 %v1867_v39  ;;  %2318 = vmatpush.msra.mxu1 %v1935_v15  ;;  %v1859_v50 = vld [vmem:[#allocation11 + $0x428] sm:$0xff]  ;;  %v1832_v2 = vld [vmem:[#allocation11 + $0x350] sm:$0xff] }
 0x23e   : > { %2339 = vmatpush.msra.mxu2 %v1995_v48  ;;  %2358 = vmatpush.msra.mxu3 %v2063_v51  ;;  %v1927_v55 = vld [vmem:[#allocation11 + $0x648] sm:$0xff]  ;;  %v1892_v8 = vld [vmem:[#allocation11 + $0x530] sm:$0xff] }
 0x23f   : > { %2300 = vmatpush.msra.mxu0 %v1863_v54  ;;  %2319 = vmatpush.msra.mxu1 %v1931_v34  ;;  %v1987_v38 = vld [vmem:[#allocation11 + $0x828] sm:$0xff]  ;;  %v1960_v33 = vld [vmem:[#allocation11 + $0x750] sm:$0xff] }
 0x240   : > { %v2055_v45 = vld [vmem:[#allocation11 + $0xa48] sm:$0xff]  ;;  %2340 = vmatpush.msra.mxu2 %v1991_v37  ;;  %2359 = vmatpush.msra.mxu3 %v2059_v24  ;;  %v1760_v52 = vld [vmem:[#allocation11 + $0x110] sm:$0xff] }
 0x241   : > { %v1855_v16 = vld [vmem:[#allocation11 + $0x408] sm:$0xff]  ;;  %2301 = vmatpush.msra.mxu0 %v1859_v50  ;;  %2320 = vmatpush.msra.mxu1 %v1927_v55  ;;  %v1828_v26 = vld [vmem:[#allocation11 + $0x330] sm:$0xff] }
 0x242   : > { %v1923_v5 = vld [vmem:[#allocation11 + $0x628] sm:$0xff]  ;;  %2341 = vmatpush.msra.mxu2 %v1987_v38  ;;  %2360 = vmatpush.msra.mxu3 %v2055_v45  ;;  %v1888_v22 = vld [vmem:[#allocation11 + $0x510] sm:$0xff] }
 0x243   : > { %v1983_v41 = vld [vmem:[#allocation11 + $0x808] sm:$0xff]  ;;  %2263 = vmatmul.f32.vlgmr.msrb.gmra.mxu2 %v4365_v47  ;;  %2302 = vmatpush.msra.mxu0 %v1855_v16  ;;  %v1956_v57 = vld [vmem:[#allocation11 + $0x730] sm:$0xff] }
 0x244   : > { %v2051_v28 = vld [vmem:[#allocation11 + $0xa28] sm:$0xff]  ;;  %2321 = vmatpush.msra.mxu1 %v1923_v5  ;;  %2342 = vmatpush.msra.mxu2 %v1983_v41  ;;  %v1756_v6 = vld [vmem:[#allocation11 + $0xf0] sm:$0xff] }
 0x245   : > { %v1919_v25 = vld [vmem:[#allocation11 + $0x608] sm:$0xff]  ;;  %2361 = vmatpush.msra.mxu3 %v2051_v28  ;;  %2367 = vmatpush.msrb.mxu0 %v1788_v40  ;;  %v1824_v36 = vld [vmem:[#allocation11 + $0x310] sm:$0xff] }
 0x246   : > { %v2047_v14 = vld [vmem:[#allocation11 + $0xa08] sm:$0xff]  ;;  %2283 = vmatmul.f32.vlgmr.msrb.gmra.mxu3 %v4369_v53  ;;  %2407 = vmatpush.msrb.mxu2 %v1916_v18  ;;  %v1884_v30 = vld [vmem:[#allocation11 + $0x4f0] sm:$0xff] }
 0x247   : > { %2322 = vmatpush.msra.mxu1 %v1919_v25  ;;  %2362 = vmatpush.msra.mxu3 %v2047_v14  ;;  %v1952_v1 = vld [vmem:[#allocation11 + $0x710] sm:$0xff] }
 0x248   : > { %2368 = vmatpush.msrb.mxu0 %v1784_v63  ;;  %2408 = vmatpush.msrb.mxu2 %v1912_v9  ;;  %v1752_v20 = vld [vmem:[#allocation11 + $0xd0] sm:$0xff] }
 0x249   : > { %2387 = vmatpush.msrb.mxu1 %v1852_v31  ;;  %2427 = vmatpush.msrb.mxu3 %v1980_v19  ;;  %v1820_v3 = vld [vmem:[#allocation11 + $0x2f0] sm:$0xff]  ;;  %v1789_v19 = vld [vmem:[#allocation11 + $0x1f8] sm:$0xff] }
 0x24a   : > { %2369 = vmatpush.msrb.mxu0 %v1780_v56  ;;  %2409 = vmatpush.msrb.mxu2 %v1908_v35  ;;  %v1880_v11 = vld [vmem:[#allocation11 + $0x4d0] sm:$0xff] }
 0x24b   : > { %2388 = vmatpush.msrb.mxu1 %v1848_v4  ;;  %2428 = vmatpush.msrb.mxu3 %v1976_v0  ;;  %v1948_v62 = vld [vmem:[#allocation11 + $0x6f0] sm:$0xff] }
 0x24c   : > { %2343 = vmatmul.f32.vlgmr.msra.gmra.mxu2 %v4375_v29  ;;  %2370 = vmatpush.msrb.mxu0 %v1776_v43  ;;  %v1748_v60 = vld [vmem:[#allocation11 + $0xb0] sm:$0xff]  ;;  %v1785_v43 = vld [vmem:[#allocation11 + $0x1d8] sm:$0xff] }
 0x24d   : > { %2389 = vmatpush.msrb.mxu1 %v1844_v58  ;;  %2410 = vmatpush.msrb.mxu2 %v1904_v61  ;;  %v1816_v17 = vld [vmem:[#allocation11 + $0x2d0] sm:$0xff]  ;;  %v1853_v58 = vld [vmem:[#allocation11 + $0x3f8] sm:$0xff] }
 0x24e   : > { %2429 = vmatpush.msrb.mxu3 %v1972_v27  ;;  %2303 = vmatmul.f32.vlgmr.msra.gmra.mxu0 %v4363_v59  ;;  %v1876_v39 = vld [vmem:[#allocation11 + $0x4b0] sm:$0xff] }
 0x24f   : > { %2363 = vmatmul.f32.vlgmr.msra.gmra.mxu3 %v4377_v44  ;;  %2371 = vmatpush.msrb.mxu0 %v1772_v42  ;;  %v1944_v15 = vld [vmem:[#allocation11 + $0x6d0] sm:$0xff]  ;;  %v1781_v42 = vld [vmem:[#allocation11 + $0x1b8] sm:$0xff] }
 0x250   : > { %2390 = vmatpush.msrb.mxu1 %v1840_v23  ;;  %2411 = vmatpush.msrb.mxu2 %v1900_v13  ;;  %v1744_v48 = vld [vmem:[#allocation11 + $0x90] sm:$0xff]  ;;  %v1849_v23 = vld [vmem:[#allocation11 + $0x3d8] sm:$0xff] }
 0x251   : > { %2430 = vmatpush.msrb.mxu3 %v1968_v10  ;;  %2323 = vmatmul.f32.vlgmr.msra.gmra.mxu1 %v4367_v32  ;;  %v1812_v51 = vld [vmem:[#allocation11 + $0x2b0] sm:$0xff] }
 0x252   : > { %2372 = vmatpush.msrb.mxu0 %v1768_v7  ;;  %2391 = vmatpush.msrb.mxu1 %v1836_v46  ;;  %v1872_v54 = vld [vmem:[#allocation11 + $0x490] sm:$0xff]  ;;  %v1777_v7 = vld [vmem:[#allocation11 + $0x198] sm:$0xff] }
 0x253   : > { %2412 = vmatpush.msrb.mxu2 %v1896_v21  ;;  %2431 = vmatpush.msrb.mxu3 %v1964_v49  ;;  %v1940_v34 = vld [vmem:[#allocation11 + $0x6b0] sm:$0xff]  ;;  %v1845_v46 = vld [vmem:[#allocation11 + $0x3b8] sm:$0xff] }
 0x254   : > { %2373 = vmatpush.msrb.mxu0 %v1764_v12  ;;  %2392 = vmatpush.msrb.mxu1 %v1832_v2  ;;  %v1740_v37 = vld [vmem:[#allocation11 + $0x70] sm:$0xff]  ;;  %v1773_v12 = vld [vmem:[#allocation11 + $0x178] sm:$0xff] }
 0x255   : > { %2413 = vmatpush.msrb.mxu2 %v1892_v8  ;;  %2432 = vmatpush.msrb.mxu3 %v1960_v33  ;;  %v1808_v24 = vld [vmem:[#allocation11 + $0x290] sm:$0xff]  ;;  %v1841_v2 = vld [vmem:[#allocation11 + $0x398] sm:$0xff] }
 0x256   : > { %2374 = vmatpush.msrb.mxu0 %v1760_v52  ;;  %2393 = vmatpush.msrb.mxu1 %v1828_v26  ;;  %v1868_v50 = vld [vmem:[#allocation11 + $0x470] sm:$0xff]  ;;  %v1769_v52 = vld [vmem:[#allocation11 + $0x158] sm:$0xff] }
 0x257   : > { %2414 = vmatpush.msrb.mxu2 %v1888_v22  ;;  %2433 = vmatpush.msrb.mxu3 %v1956_v57  ;;  %v1936_v55 = vld [vmem:[#allocation11 + $0x690] sm:$0xff]  ;;  %v1837_v26 = vld [vmem:[#allocation11 + $0x378] sm:$0xff] }
 0x258   : > { %2375 = vmatpush.msrb.mxu0 %v1756_v6  ;;  %2394 = vmatpush.msrb.mxu1 %v1824_v36  ;;  %v1736_v38 = vld [vmem:[#allocation11 + $0x50] sm:$0xff]  ;;  %v1765_v6 = vld [vmem:[#allocation11 + $0x138] sm:$0xff] }
 0x259   : > { %2415 = vmatpush.msrb.mxu2 %v1884_v30  ;;  %2434 = vmatpush.msrb.mxu3 %v1952_v1  ;;  %v1804_v45 = vld [vmem:[#allocation11 + $0x270] sm:$0xff]  ;;  %v1833_v36 = vld [vmem:[#allocation11 + $0x358] sm:$0xff] }
 0x25a   : > { %2376 = vmatpush.msrb.mxu0 %v1752_v20  ;;  %2395 = vmatpush.msrb.mxu1 %v1820_v3  ;;  %v1864_v16 = vld [vmem:[#allocation11 + $0x450] sm:$0xff]  ;;  %v1761_v20 = vld [vmem:[#allocation11 + $0x118] sm:$0xff] }
 0x25b   : > { %2416 = vmatpush.msrb.mxu2 %v1880_v11  ;;  %2435 = vmatpush.msrb.mxu3 %v1948_v62  ;;  %v1932_v5 = vld [vmem:[#allocation11 + $0x670] sm:$0xff]  ;;  %v1829_v3 = vld [vmem:[#allocation11 + $0x338] sm:$0xff] }
 0x25c   : > { %2377 = vmatpush.msrb.mxu0 %v1748_v60  ;;  %2396 = vmatpush.msrb.mxu1 %v1816_v17  ;;  %v1732_v41 = vld [vmem:[#allocation11 + $0x30] sm:$0xff]  ;;  %v1757_v60 = vld [vmem:[#allocation11 + $0xf8] sm:$0xff] }
 0x25d   : > { %2417 = vmatpush.msrb.mxu2 %v1876_v39  ;;  %2436 = vmatpush.msrb.mxu3 %v1944_v15  ;;  %v1800_v28 = vld [vmem:[#allocation11 + $0x250] sm:$0xff]  ;;  %v1825_v17 = vld [vmem:[#allocation11 + $0x318] sm:$0xff] }
 0x25e   : > { %2378 = vmatpush.msrb.mxu0 %v1744_v48  ;;  %2397 = vmatpush.msrb.mxu1 %v1812_v51  ;;  %v1860_v40 = vld [vmem:[#allocation11 + $0x430] sm:$0xff]  ;;  %v1753_v48 = vld [vmem:[#allocation11 + $0xd8] sm:$0xff] }
 0x25f   : > { %2418 = vmatpush.msrb.mxu2 %v1872_v54  ;;  %2437 = vmatpush.msrb.mxu3 %v1940_v34  ;;  %v1928_v18 = vld [vmem:[#allocation11 + $0x650] sm:$0xff]  ;;  %v1821_v51 = vld [vmem:[#allocation11 + $0x2f8] sm:$0xff] }
 0x260   : > { %2379 = vmatpush.msrb.mxu0 %v1740_v37  ;;  %2398 = vmatpush.msrb.mxu1 %v1808_v24  ;;  %v1728_v25 = vld [vmem:[#allocation11 + $0x10] sm:$0xff]  ;;  %v1749_v37 = vld [vmem:[#allocation11 + $0xb8] sm:$0xff] }
 0x261   : > { %2419 = vmatpush.msrb.mxu2 %v1868_v50  ;;  %2438 = vmatpush.msrb.mxu3 %v1936_v55  ;;  %v1796_v14 = vld [vmem:[#allocation11 + $0x230] sm:$0xff]  ;;  %v1817_v24 = vld [vmem:[#allocation11 + $0x2d8] sm:$0xff] }
 0x262   : > { %2380 = vmatpush.msrb.mxu0 %v1736_v38  ;;  %2399 = vmatpush.msrb.mxu1 %v1804_v45  ;;  %v1856_v63 = vld [vmem:[#allocation11 + $0x410] sm:$0xff]  ;;  %v1745_v38 = vld [vmem:[#allocation11 + $0x98] sm:$0xff] }
 0x263   : > { %2420 = vmatpush.msrb.mxu2 %v1864_v16  ;;  %2439 = vmatpush.msrb.mxu3 %v1932_v5  ;;  %v1924_v31 = vld [vmem:[#allocation11 + $0x630] sm:$0xff]  ;;  %v1813_v45 = vld [vmem:[#allocation11 + $0x2b8] sm:$0xff] }
 0x264   : > { %2381 = vmatpush.msrb.mxu0 %v1732_v41  ;;  %2400 = vmatpush.msrb.mxu1 %v1800_v28  ;;  %v2044_v9 = vld [vmem:[#allocation11 + $0x9f0] sm:$0xff]  ;;  %v1741_v41 = vld [vmem:[#allocation11 + $0x78] sm:$0xff] }
 0x265   : > { %2421 = vmatpush.msrb.mxu2 %v1860_v40  ;;  %2440 = vmatpush.msrb.mxu3 %v1928_v18  ;;  %v1792_v56 = vld [vmem:[#allocation11 + $0x210] sm:$0xff]  ;;  %v1809_v28 = vld [vmem:[#allocation11 + $0x298] sm:$0xff] }
 0x266   : > { %2382 = vmatpush.msrb.mxu0 %v1728_v25  ;;  %2401 = vmatpush.msrb.mxu1 %v1796_v14  ;;  %v1920_v4 = vld [vmem:[#allocation11 + $0x610] sm:$0xff]  ;;  %v1737_v25 = vld [vmem:[#allocation11 + $0x58] sm:$0xff] }
 0x267   : > { %2422 = vmatpush.msrb.mxu2 %v1856_v63  ;;  %2441 = vmatpush.msrb.mxu3 %v1924_v31  ;;  %v2040_v35 = vld [vmem:[#allocation11 + $0x9d0] sm:$0xff]  ;;  %v1805_v14 = vld [vmem:[#allocation11 + $0x278] sm:$0xff] }
 0x268   : > { %v2108_v0 = vld [vmem:[#allocation11 + $0xbf0] sm:$0xff]  ;;  %2447 = vmatpush.msra.mxu0 %v2044_v9  ;;  %2402 = vmatpush.msrb.mxu1 %v1792_v56  ;;  %v1733_v9 = vld [vmem:[#allocation11 + $0x38] sm:$0xff] }
 0x269   : > { %2487 = vmatpush.msra.mxu2 %v1789_v19  ;;  %2442 = vmatpush.msrb.mxu3 %v1920_v4  ;;  %v2036_v61 = vld [vmem:[#allocation11 + $0x9b0] sm:$0xff]  ;;  %v1801_v19 = vld [vmem:[#allocation11 + $0x258] sm:$0xff] }
 0x26a   : > { %v2104_v27 = vld [vmem:[#allocation11 + $0xbd0] sm:$0xff]  ;;  %2448 = vmatpush.msra.mxu0 %v2040_v35  ;;  %2467 = vmatpush.msra.mxu1 %v2108_v0  ;;  %v1729_v35 = vld [vmem:[#allocation11 + $0x18] sm:$0xff] }
 0x26b   : > { %2488 = vmatpush.msra.mxu2 %v1785_v43  ;;  %2507 = vmatpush.msra.mxu3 %v1853_v58  ;;  %v2032_v13 = vld [vmem:[#allocation11 + $0x990] sm:$0xff]  ;;  %v1797_v0 = vld [vmem:[#allocation11 + $0x238] sm:$0xff] }
 0x26c   : > { %v2100_v10 = vld [vmem:[#allocation11 + $0xbb0] sm:$0xff]  ;;  %2449 = vmatpush.msra.mxu0 %v2036_v61  ;;  %2468 = vmatpush.msra.mxu1 %v2104_v27  ;;  %v1917_v43 = vld [vmem:[#allocation11 + $0x5f8] sm:$0xff] }
 0x26d   : > { %2489 = vmatpush.msra.mxu2 %v1781_v42  ;;  %2508 = vmatpush.msra.mxu3 %v1849_v23  ;;  %v2028_v21 = vld [vmem:[#allocation11 + $0x970] sm:$0xff]  ;;  %v2045_v58 = vld [vmem:[#allocation11 + $0x9f8] sm:$0xff] }
 0x26e   : > { %v2096_v49 = vld [vmem:[#allocation11 + $0xb90] sm:$0xff]  ;;  %2450 = vmatpush.msra.mxu0 %v2032_v13  ;;  %2469 = vmatpush.msra.mxu1 %v2100_v10  ;;  %v1793_v27 = vld [vmem:[#allocation11 + $0x218] sm:$0xff] }
 0x26f   : > { %2490 = vmatpush.msra.mxu2 %v1777_v7  ;;  %2509 = vmatpush.msra.mxu3 %v1845_v46  ;;  %v2024_v8 = vld [vmem:[#allocation11 + $0x950] sm:$0xff]  ;;  %v1913_v42 = vld [vmem:[#allocation11 + $0x5d8] sm:$0xff] }
 0x270   : > { %v2092_v33 = vld [vmem:[#allocation11 + $0xb70] sm:$0xff]  ;;  %2451 = vmatpush.msra.mxu0 %v2028_v21  ;;  %2470 = vmatpush.msra.mxu1 %v2096_v49  ;;  %v1981_v23 = vld [vmem:[#allocation11 + $0x7f8] sm:$0xff] }
 0x271   : > { %2491 = vmatpush.msra.mxu2 %v1773_v12  ;;  %2510 = vmatpush.msra.mxu3 %v1841_v2  ;;  %v2020_v22 = vld [vmem:[#allocation11 + $0x930] sm:$0xff]  ;;  %v2041_v13 = vld [vmem:[#allocation11 + $0x9d8] sm:$0xff] }
 0x272   : > { %v2088_v57 = vld [vmem:[#allocation11 + $0xb50] sm:$0xff]  ;;  %2452 = vmatpush.msra.mxu0 %v2024_v8  ;;  %2471 = vmatpush.msra.mxu1 %v2092_v33  ;;  %v2109_v10 = vld [vmem:[#allocation11 + $0xbf8] sm:$0xff] }
 0x273   : > { %2492 = vmatpush.msra.mxu2 %v1769_v52  ;;  %2511 = vmatpush.msra.mxu3 %v1837_v26  ;;  %v2016_v30 = vld [vmem:[#allocation11 + $0x910] sm:$0xff]  ;;  %v1909_v7 = vld [vmem:[#allocation11 + $0x5b8] sm:$0xff] }
 0x274   : > { %v2084_v1 = vld [vmem:[#allocation11 + $0xb30] sm:$0xff]  ;;  %2453 = vmatpush.msra.mxu0 %v2020_v22  ;;  %2472 = vmatpush.msra.mxu1 %v2088_v57  ;;  %v1977_v46 = vld [vmem:[#allocation11 + $0x7d8] sm:$0xff] }
 0x275   : > { %2493 = vmatpush.msra.mxu2 %v1765_v6  ;;  %2512 = vmatpush.msra.mxu3 %v1833_v36  ;;  %v2012_v11 = vld [vmem:[#allocation11 + $0x8f0] sm:$0xff]  ;;  %v2037_v21 = vld [vmem:[#allocation11 + $0x9b8] sm:$0xff] }
 0x276   : > { %v2080_v62 = vld [vmem:[#allocation11 + $0xb10] sm:$0xff]  ;;  %2454 = vmatpush.msra.mxu0 %v2016_v30  ;;  %2473 = vmatpush.msra.mxu1 %v2084_v1  ;;  %v2105_v49 = vld [vmem:[#allocation11 + $0xbd8] sm:$0xff] }
 0x277   : > { %2494 = vmatpush.msra.mxu2 %v1761_v20  ;;  %2513 = vmatpush.msra.mxu3 %v1829_v3  ;;  %v2008_v39 = vld [vmem:[#allocation11 + $0x8d0] sm:$0xff]  ;;  %v1905_v12 = vld [vmem:[#allocation11 + $0x598] sm:$0xff] }
 0x278   : > { %v2076_v15 = vld [vmem:[#allocation11 + $0xaf0] sm:$0xff]  ;;  %2455 = vmatpush.msra.mxu0 %v2012_v11  ;;  %2474 = vmatpush.msra.mxu1 %v2080_v62  ;;  %v1973_v2 = vld [vmem:[#allocation11 + $0x7b8] sm:$0xff] }
 0x279   : > { %2495 = vmatpush.msra.mxu2 %v1757_v60  ;;  %2514 = vmatpush.msra.mxu3 %v1825_v17  ;;  %v2004_v54 = vld [vmem:[#allocation11 + $0x8b0] sm:$0xff]  ;;  %v2033_v8 = vld [vmem:[#allocation11 + $0x998] sm:$0xff] }
 0x27a   : > { %v2072_v34 = vld [vmem:[#allocation11 + $0xad0] sm:$0xff]  ;;  %2456 = vmatpush.msra.mxu0 %v2008_v39  ;;  %2475 = vmatpush.msra.mxu1 %v2076_v15  ;;  %v2101_v33 = vld [vmem:[#allocation11 + $0xbb8] sm:$0xff] }
 0x27b   : > { %2496 = vmatpush.msra.mxu2 %v1753_v48  ;;  %2515 = vmatpush.msra.mxu3 %v1821_v51  ;;  %v2000_v50 = vld [vmem:[#allocation11 + $0x890] sm:$0xff]  ;;  %v1969_v52 = vld [vmem:[#allocation11 + $0x798] sm:$0xff] }
 0x27c   : > { %v2068_v55 = vld [vmem:[#allocation11 + $0xab0] sm:$0xff]  ;;  %2457 = vmatpush.msra.mxu0 %v2004_v54  ;;  %2476 = vmatpush.msra.mxu1 %v2072_v34  ;;  %v1901_v26 = vld [vmem:[#allocation11 + $0x578] sm:$0xff] }
 0x27d   : > { %2497 = vmatpush.msra.mxu2 %v1749_v37  ;;  %2516 = vmatpush.msra.mxu3 %v1817_v24  ;;  %v1996_v16 = vld [vmem:[#allocation11 + $0x870] sm:$0xff]  ;;  %v2029_v22 = vld [vmem:[#allocation11 + $0x978] sm:$0xff] }
 0x27e   : > { %v2064_v5 = vld [vmem:[#allocation11 + $0xa90] sm:$0xff]  ;;  %2458 = vmatpush.msra.mxu0 %v2000_v50  ;;  %2477 = vmatpush.msra.mxu1 %v2068_v55  ;;  %v2097_v57 = vld [vmem:[#allocation11 + $0xb98] sm:$0xff] }
 0x27f   : > { %2498 = vmatpush.msra.mxu2 %v1745_v38  ;;  %2517 = vmatpush.msra.mxu3 %v1813_v45  ;;  %v1992_v40 = vld [vmem:[#allocation11 + $0x850] sm:$0xff]  ;;  %v1897_v6 = vld [vmem:[#allocation11 + $0x558] sm:$0xff] }
 0x280   : > { %v2060_v18 = vld [vmem:[#allocation11 + $0xa70] sm:$0xff]  ;;  %2459 = vmatpush.msra.mxu0 %v1996_v16  ;;  %2478 = vmatpush.msra.mxu1 %v2064_v5  ;;  %v1965_v36 = vld [vmem:[#allocation11 + $0x778] sm:$0xff] }
 0x281   : > { %2499 = vmatpush.msra.mxu2 %v1741_v41  ;;  %2518 = vmatpush.msra.mxu3 %v1809_v28  ;;  %v1988_v63 = vld [vmem:[#allocation11 + $0x830] sm:$0xff]  ;;  %v2025_v30 = vld [vmem:[#allocation11 + $0x958] sm:$0xff] }
 0x282   : > { %v2056_v31 = vld [vmem:[#allocation11 + $0xa50] sm:$0xff]  ;;  %2460 = vmatpush.msra.mxu0 %v1992_v40  ;;  %2479 = vmatpush.msra.mxu1 %v2060_v18  ;;  %v2093_v1 = vld [vmem:[#allocation11 + $0xb78] sm:$0xff] }
 0x283   : > { %2500 = vmatpush.msra.mxu2 %v1737_v25  ;;  %2519 = vmatpush.msra.mxu3 %v1805_v14  ;;  %v1984_v56 = vld [vmem:[#allocation11 + $0x810] sm:$0xff]  ;;  %v1893_v20 = vld [vmem:[#allocation11 + $0x538] sm:$0xff] }
 0x284   : > { %2461 = vmatpush.msra.mxu0 %v1988_v63  ;;  %2480 = vmatpush.msra.mxu1 %v2056_v31  ;;  %v2052_v4 = vld [vmem:[#allocation11 + $0xa30] sm:$0xff]  ;;  %v1961_v3 = vld [vmem:[#allocation11 + $0x758] sm:$0xff] }
 0x285   : > { %2501 = vmatpush.msra.mxu2 %v1733_v9  ;;  %2520 = vmatpush.msra.mxu3 %v1801_v19  ;;  %v2048_v61 = vld [vmem:[#allocation11 + $0xa10] sm:$0xff]  ;;  %v2021_v11 = vld [vmem:[#allocation11 + $0x938] sm:$0xff] }
 0x286   : > { %2423 = vmatmul.f32.vlgmr.msrb.gmra.mxu2 %v4363_v59  ;;  %2462 = vmatpush.msra.mxu0 %v1984_v56  ;;  %v2089_v62 = vld [vmem:[#allocation11 + $0xb58] sm:$0xff] }
 0x287   : > { %2481 = vmatpush.msra.mxu1 %v2052_v4  ;;  %2502 = vmatpush.msra.mxu2 %v1729_v35  ;;  %v1889_v60 = vld [vmem:[#allocation11 + $0x518] sm:$0xff] }
 0x288   : > { %2521 = vmatpush.msra.mxu3 %v1797_v0  ;;  %2383 = vmatmul.f32.vlgmr.msrb.gmra.mxu0 %v4365_v47  ;;  %v2017_v17 = vld [vmem:[#allocation11 + $0x918] sm:$0xff] }
 0x289   : > { %2443 = vmatmul.f32.vlgmr.msrb.gmra.mxu3 %v4367_v32  ;;  %2527 = vmatpush.msrb.mxu0 %v1917_v43  ;;  %v2085_v39 = vld [vmem:[#allocation11 + $0xb38] sm:$0xff] }
 0x28a   : > { %2567 = vmatpush.msrb.mxu2 %v2045_v58  ;;  %2482 = vmatpush.msra.mxu1 %v2048_v61  ;;  %v1885_v15 = vld [vmem:[#allocation11 + $0x4f8] sm:$0xff] }
 0x28b   : > { %2522 = vmatpush.msra.mxu3 %v1793_v27  ;;  %2403 = vmatmul.f32.vlgmr.msrb.gmra.mxu1 %v4369_v53  ;;  %v1953_v48 = vld [vmem:[#allocation11 + $0x718] sm:$0xff] }
 0x28c   : > { %2528 = vmatpush.msrb.mxu0 %v1913_v42  ;;  %2547 = vmatpush.msrb.mxu1 %v1981_v23  ;;  %v2081_v51 = vld [vmem:[#allocation11 + $0xb18] sm:$0xff]  ;;  %v1528_v42 = vld [vmem:[#allocation9 + $0x1e0] sm:$0xff] }
 0x28d   : > { %2568 = vmatpush.msrb.mxu2 %v2041_v13  ;;  %2587 = vmatpush.msrb.mxu3 %v2109_v10  ;;  %v1881_v54 = vld [vmem:[#allocation11 + $0x4d8] sm:$0xff]  ;;  %v1656_v23 = vld [vmem:[#allocation9 + $0x5e0] sm:$0xff] }
 0x28e   : > { %2529 = vmatpush.msrb.mxu0 %v1909_v7  ;;  %2548 = vmatpush.msrb.mxu1 %v1977_v46  ;;  %v1949_v34 = vld [vmem:[#allocation11 + $0x6f8] sm:$0xff]  ;;  %v1524_v7 = vld [vmem:[#allocation9 + $0x1c0] sm:$0xff] }
 0x28f   : > { %2569 = vmatpush.msrb.mxu2 %v2037_v21  ;;  %2588 = vmatpush.msrb.mxu3 %v2105_v49  ;;  %v2009_v37 = vld [vmem:[#allocation11 + $0x8d8] sm:$0xff]  ;;  %v1592_v46 = vld [vmem:[#allocation9 + $0x3e0] sm:$0xff] }
 0x290   : > { %2530 = vmatpush.msrb.mxu0 %v1905_v12  ;;  %2549 = vmatpush.msrb.mxu1 %v1973_v2  ;;  %v2077_v24 = vld [vmem:[#allocation11 + $0xaf8] sm:$0xff]  ;;  %v1652_v21 = vld [vmem:[#allocation9 + $0x5c0] sm:$0xff] }
 0x291   : > { %2570 = vmatpush.msrb.mxu2 %v2033_v8  ;;  %2589 = vmatpush.msrb.mxu3 %v2101_v33  ;;  %v1877_v50 = vld [vmem:[#allocation11 + $0x4b8] sm:$0xff]  ;;  %v1720_v49 = vld [vmem:[#allocation9 + $0x7e0] sm:$0xff] }
 0x292   : > { %2463 = vmatmul.f32.vlgmr.msra.gmra.mxu0 %v4375_v29  ;;  %2550 = vmatpush.msrb.mxu1 %v1969_v52  ;;  %v1957_v29 = vld [vmem:[#allocation11 + $0x738] sm:$0xff]  ;;  %v1520_v12 = vld [vmem:[#allocation9 + $0x1a0] sm:$0xff] }
 0x293   : > { %2531 = vmatpush.msrb.mxu0 %v1901_v26  ;;  %2571 = vmatpush.msrb.mxu2 %v2029_v22  ;;  %v1945_v55 = vld [vmem:[#allocation11 + $0x6d8] sm:$0xff]  ;;  %v1588_v2 = vld [vmem:[#allocation9 + $0x3c0] sm:$0xff] }
 0x294   : > { %2590 = vmatpush.msrb.mxu3 %v2097_v57  ;;  %2483 = vmatmul.f32.vlgmr.msra.gmra.mxu1 %v4377_v44  ;;  %v2013_v44 = vld [vmem:[#allocation11 + $0x8f8] sm:$0xff]  ;;  %v1716_v8 = vld [vmem:[#allocation9 + $0x7c0] sm:$0xff] }
 0x295   : > { %2532 = vmatpush.msrb.mxu0 %v1897_v6  ;;  %2551 = vmatpush.msrb.mxu1 %v1965_v36  ;;  %v2005_v38 = vld [vmem:[#allocation11 + $0x8b8] sm:$0xff]  ;;  %v1516_v33 = vld [vmem:[#allocation9 + $0x180] sm:$0xff] }
 0x296   : > { %2572 = vmatpush.msrb.mxu2 %v2025_v30  ;;  %2591 = vmatpush.msrb.mxu3 %v2093_v1  ;;  %v2073_v45 = vld [vmem:[#allocation11 + $0xad8] sm:$0xff]  ;;  %v1584_v52 = vld [vmem:[#allocation9 + $0x3a0] sm:$0xff]  ;;  %v3433_v1 = vld.sshfl [vmem:[#allocation1 + $0x28] sm:$0xff pattern:$0x73625140] }
 0x297   : > { %2533 = vmatpush.msrb.mxu0 %v1893_v20  ;;  %2552 = vmatpush.msrb.mxu1 %v1961_v3  ;;  %v1873_v16 = vld [vmem:[#allocation11 + $0x498] sm:$0xff]  ;;  %v1644_v26 = vld [vmem:[#allocation9 + $0x580] sm:$0xff] }
 0x298   : > { %2573 = vmatpush.msrb.mxu2 %v2021_v11  ;;  %2592 = vmatpush.msrb.mxu3 %v2089_v62  ;;  %v1941_v5 = vld [vmem:[#allocation11 + $0x6b8] sm:$0xff]  ;;  %v3432_v22 = vld.sshfl [vmem:[#allocation1 + $0x20] sm:$0xff pattern:$0x73625140] }
 0x299   : > { %2534 = vmatpush.msrb.mxu0 %v1889_v60  ;;  %2553 = vmatpush.msrb.mxu1 %v1957_v29  ;;  %v2001_v41 = vld [vmem:[#allocation11 + $0x898] sm:$0xff]  ;;  %v1512_v57 = vld [vmem:[#allocation9 + $0x160] sm:$0xff] }
 0x29a   : > { %2574 = vmatpush.msrb.mxu2 %v2017_v17  ;;  %2593 = vmatpush.msrb.mxu3 %v2085_v39  ;;  %v2069_v28 = vld [vmem:[#allocation11 + $0xab8] sm:$0xff]  ;;  %v1580_v6 = vld [vmem:[#allocation9 + $0x380] sm:$0xff] }
 0x29b   : > { %2535 = vmatpush.msrb.mxu0 %v1885_v15  ;;  %2554 = vmatpush.msrb.mxu1 %v1953_v48  ;;  %v1869_v40 = vld [vmem:[#allocation11 + $0x478] sm:$0xff]  ;;  %v1640_v36 = vld [vmem:[#allocation9 + $0x560] sm:$0xff] }
 0x29c   : > { %2575 = vmatpush.msrb.mxu2 %v2013_v44  ;;  %2594 = vmatpush.msrb.mxu3 %v2081_v51  ;;  %v1937_v18 = vld [vmem:[#allocation11 + $0x698] sm:$0xff]  ;;  %v1708_v30 = vld [vmem:[#allocation9 + $0x780] sm:$0xff] }
 0x29d   : > { %2536 = vmatpush.msrb.mxu0 %v1881_v54  ;;  %2555 = vmatpush.msrb.mxu1 %v1949_v34  ;;  %v1997_v25 = vld [vmem:[#allocation11 + $0x878] sm:$0xff]  ;;  %v1508_v20 = vld [vmem:[#allocation9 + $0x140] sm:$0xff] }
 0x29e   : > { %2576 = vmatpush.msrb.mxu2 %v2009_v37  ;;  %2595 = vmatpush.msrb.mxu3 %v2077_v24  ;;  %v2065_v14 = vld [vmem:[#allocation11 + $0xa98] sm:$0xff]  ;;  %v1576_v3 = vld [vmem:[#allocation9 + $0x360] sm:$0xff] }
 0x29f   : > { %2537 = vmatpush.msrb.mxu0 %v1877_v50  ;;  %2556 = vmatpush.msrb.mxu1 %v1945_v55  ;;  %v1865_v63 = vld [vmem:[#allocation11 + $0x458] sm:$0xff]  ;;  %v1636_v11 = vld [vmem:[#allocation9 + $0x540] sm:$0xff] }
 0x2a0   : > { %2577 = vmatpush.msrb.mxu2 %v2005_v38  ;;  %2596 = vmatpush.msrb.mxu3 %v2073_v45  ;;  %v1933_v31 = vld [vmem:[#allocation11 + $0x678] sm:$0xff]  ;;  %v1704_v62 = vld [vmem:[#allocation9 + $0x760] sm:$0xff] }
 0x2a1   : > { %2538 = vmatpush.msrb.mxu0 %v1873_v16  ;;  %2557 = vmatpush.msrb.mxu1 %v1941_v5  ;;  %v1993_v9 = vld [vmem:[#allocation11 + $0x858] sm:$0xff]  ;;  %v1504_v60 = vld [vmem:[#allocation9 + $0x120] sm:$0xff] }
 0x2a2   : > { %2578 = vmatpush.msrb.mxu2 %v2001_v41  ;;  %2597 = vmatpush.msrb.mxu3 %v2069_v28  ;;  %v2061_v19 = vld [vmem:[#allocation11 + $0xa78] sm:$0xff]  ;;  %v1572_v29 = vld [vmem:[#allocation9 + $0x340] sm:$0xff] }
 0x2a3   : > { %2539 = vmatpush.msrb.mxu0 %v1869_v40  ;;  %2558 = vmatpush.msrb.mxu1 %v1937_v18  ;;  %v1861_v56 = vld [vmem:[#allocation11 + $0x438] sm:$0xff]  ;;  %v1632_v17 = vld [vmem:[#allocation9 + $0x520] sm:$0xff] }
 0x2a4   : > { %2579 = vmatpush.msrb.mxu2 %v1997_v25  ;;  %2598 = vmatpush.msrb.mxu3 %v2065_v14  ;;  %v1929_v4 = vld [vmem:[#allocation11 + $0x658] sm:$0xff]  ;;  %v1700_v39 = vld [vmem:[#allocation9 + $0x740] sm:$0xff] }
 0x2a5   : > { %2540 = vmatpush.msrb.mxu0 %v1865_v63  ;;  %2559 = vmatpush.msrb.mxu1 %v1933_v31  ;;  %v1989_v35 = vld [vmem:[#allocation11 + $0x838] sm:$0xff]  ;;  %v1568_v15 = vld [vmem:[#allocation9 + $0x320] sm:$0xff] }
 0x2a6   : > { %v2057_v0 = vld [vmem:[#allocation11 + $0xa58] sm:$0xff]  ;;  %2580 = vmatpush.msrb.mxu2 %v1993_v9  ;;  %2599 = vmatpush.msrb.mxu3 %v2061_v19  ;;  %v1628_v48 = vld [vmem:[#allocation9 + $0x500] sm:$0xff] }
 0x2a7   : > { %v1857_v43 = vld [vmem:[#allocation11 + $0x418] sm:$0xff]  ;;  %2541 = vmatpush.msrb.mxu0 %v1861_v56  ;;  %2560 = vmatpush.msrb.mxu1 %v1929_v4  ;;  %v1696_v44 = vld [vmem:[#allocation9 + $0x720] sm:$0xff] }
 0x2a8   : > { %v1925_v58 = vld [vmem:[#allocation11 + $0x638] sm:$0xff]  ;;  %2581 = vmatpush.msrb.mxu2 %v1989_v35  ;;  %2600 = vmatpush.msrb.mxu3 %v2057_v0  ;;  %v1496_v51 = vld [vmem:[#allocation9 + $0xe0] sm:$0xff] }
 0x2a9   : > { %v1985_v61 = vld [vmem:[#allocation11 + $0x818] sm:$0xff]  ;;  %2503 = vmatmul.f32.vlgmr.msra.gmra.mxu2 %v4365_v47  ;;  %2542 = vmatpush.msrb.mxu0 %v1857_v43  ;;  %v1648_v47 = vld [vmem:[#allocation9 + $0x5a0] sm:$0xff] }
 0x2aa   : > { %v2053_v27 = vld [vmem:[#allocation11 + $0xa38] sm:$0xff]  ;;  %2561 = vmatpush.msrb.mxu1 %v1925_v58  ;;  %2582 = vmatpush.msrb.mxu2 %v1985_v61  ;;  %v1564_v54 = vld [vmem:[#allocation9 + $0x300] sm:$0xff] }
 0x2ab   : > { %v1921_v13 = vld [vmem:[#allocation11 + $0x618] sm:$0xff]  ;;  %2601 = vmatpush.msrb.mxu3 %v2053_v27  ;;  %2617 = vmatpush.msra.mxu0 %v1528_v42  ;;  %v1692_v34 = vld [vmem:[#allocation9 + $0x700] sm:$0xff] }
 0x2ac   : > { %v2049_v10 = vld [vmem:[#allocation11 + $0xa18] sm:$0xff]  ;;  %2523 = vmatmul.f32.vlgmr.msra.gmra.mxu3 %v4369_v53  ;;  %2657 = vmatpush.msra.mxu2 %v1656_v23  ;;  %v1712_v53 = vld [vmem:[#allocation9 + $0x7a0] sm:$0xff] }
 0x2ad   : > { %2562 = vmatpush.msrb.mxu1 %v1921_v13  ;;  %2602 = vmatpush.msrb.mxu3 %v2049_v10  ;;  %v1492_v37 = vld [vmem:[#allocation9 + $0xc0] sm:$0xff]  ;;  %v4399_v10 = vld.sshfl [vmem:[#allocation1 + $0x10] sm:$0xff pattern:$0x73625140] }
 0x2ae   : > { %2618 = vmatpush.msra.mxu0 %v1524_v7  ;;  %2658 = vmatpush.msra.mxu2 %v1652_v21  ;;  %v1560_v24 = vld [vmem:[#allocation9 + $0x2e0] sm:$0xff]  ;;  %v1529_v7 = vld [vmem:[#allocation9 + $0x1e8] sm:$0xff] }
 0x2af   : > { %2637 = vmatpush.msra.mxu1 %v1592_v46  ;;  %2677 = vmatpush.msra.mxu3 %v1720_v49  ;;  %v1620_v50 = vld [vmem:[#allocation9 + $0x4c0] sm:$0xff]  ;;  %v1657_v46 = vld [vmem:[#allocation9 + $0x5e8] sm:$0xff] }
 0x2b0   : > { %2619 = vmatpush.msra.mxu0 %v1520_v12  ;;  %2659 = vmatpush.msra.mxu2 %v1648_v47  ;;  %v1688_v55 = vld [vmem:[#allocation9 + $0x6e0] sm:$0xff]  ;;  %v4403_v12 = vld.sshfl [vmem:[#allocation1 + $0x8] sm:$0xff pattern:$0x73625140] }
 0x2b1   : > { %2638 = vmatpush.msra.mxu1 %v1588_v2  ;;  %2678 = vmatpush.msra.mxu3 %v1716_v8  ;;  %v1488_v38 = vld [vmem:[#allocation9 + $0xa0] sm:$0xff]  ;;  %v4405_v2 = vld.sshfl [vmem:[#allocation1 + $0x18] sm:$0xff pattern:$0x73625140]  ;;  %v1525_v47 = vld [vmem:[#allocation9 + $0x1c8] sm:$0xff] }
 0x2b2   : > { %2583 = vmatmul.f32.vlgmr.msrb.gmra.mxu2 %v3432_v22  ;;  %2620 = vmatpush.msra.mxu0 %v1516_v33  ;;  %v1556_v45 = vld [vmem:[#allocation9 + $0x2c0] sm:$0xff]  ;;  %v1593_v8 = vld [vmem:[#allocation9 + $0x3e8] sm:$0xff] }
 0x2b3   : > { %2639 = vmatpush.msra.mxu1 %v1584_v52  ;;  %2660 = vmatpush.msra.mxu2 %v1644_v26  ;;  %v1616_v16 = vld [vmem:[#allocation9 + $0x4a0] sm:$0xff]  ;;  %v1653_v33 = vld [vmem:[#allocation9 + $0x5c8] sm:$0xff] }
 0x2b4   : > { %2679 = vmatpush.msra.mxu3 %v1712_v53  ;;  %2543 = vmatmul.f32.vlgmr.msrb.gmra.mxu0 %v4363_v59  ;;  %v1500_v59 = vld [vmem:[#allocation9 + $0x100] sm:$0xff]  ;;  %v1721_v52 = vld [vmem:[#allocation9 + $0x7e8] sm:$0xff] }
 0x2b5   : > { %2603 = vmatmul.f32.vlgmr.msrb.gmra.mxu3 %v3433_v1  ;;  %2621 = vmatpush.msra.mxu0 %v1512_v57  ;;  %v1684_v5 = vld [vmem:[#allocation9 + $0x6c0] sm:$0xff]  ;;  %v1521_v26 = vld [vmem:[#allocation9 + $0x1a8] sm:$0xff] }
 0x2b6   : > { %2640 = vmatpush.msra.mxu1 %v1580_v6  ;;  %2661 = vmatpush.msra.mxu2 %v1640_v36  ;;  %v1484_v41 = vld [vmem:[#allocation9 + $0x80] sm:$0xff]  ;;  %v1589_v53 = vld [vmem:[#allocation9 + $0x3c8] sm:$0xff] }
 0x2b7   : > { %2680 = vmatpush.msra.mxu3 %v1708_v30  ;;  %2563 = vmatmul.f32.vlgmr.msrb.gmra.mxu1 %v4367_v32  ;;  %v1624_v32 = vld [vmem:[#allocation9 + $0x4e0] sm:$0xff]  ;;  %v1649_v22 = vld [vmem:[#allocation9 + $0x5a8] sm:$0xff] }
 0x2b8   : > { %2622 = vmatpush.msra.mxu0 %v1508_v20  ;;  %2641 = vmatpush.msra.mxu1 %v1576_v3  ;;  %v1552_v28 = vld [vmem:[#allocation9 + $0x2a0] sm:$0xff]  ;;  %v1717_v57 = vld [vmem:[#allocation9 + $0x7c8] sm:$0xff] }
 0x2b9   : > { %2662 = vmatpush.msra.mxu2 %v1636_v11  ;;  %2681 = vmatpush.msra.mxu3 %v1704_v62  ;;  %v1612_v40 = vld [vmem:[#allocation9 + $0x480] sm:$0xff]  ;;  %v1517_v6 = vld [vmem:[#allocation9 + $0x188] sm:$0xff] }
 0x2ba   : > { %2623 = vmatpush.msra.mxu0 %v1504_v60  ;;  %2642 = vmatpush.msra.mxu1 %v1572_v29  ;;  %v1680_v18 = vld [vmem:[#allocation9 + $0x6a0] sm:$0xff]  ;;  %v1585_v36 = vld [vmem:[#allocation9 + $0x3a8] sm:$0xff] }
 0x2bb   : > { %2663 = vmatpush.msra.mxu2 %v1632_v17  ;;  %2682 = vmatpush.msra.mxu3 %v1700_v39  ;;  %v1480_v25 = vld [vmem:[#allocation9 + $0x60] sm:$0xff]  ;;  %v1645_v30 = vld [vmem:[#allocation9 + $0x588] sm:$0xff] }
 0x2bc   : > { %2624 = vmatpush.msra.mxu0 %v1500_v59  ;;  %2643 = vmatpush.msra.mxu1 %v1568_v15  ;;  %v1548_v14 = vld [vmem:[#allocation9 + $0x280] sm:$0xff]  ;;  %v1713_v1 = vld [vmem:[#allocation9 + $0x7a8] sm:$0xff] }
 0x2bd   : > { %2664 = vmatpush.msra.mxu2 %v1628_v48  ;;  %2683 = vmatpush.msra.mxu3 %v1696_v44  ;;  %v1608_v63 = vld [vmem:[#allocation9 + $0x460] sm:$0xff]  ;;  %v1513_v20 = vld [vmem:[#allocation9 + $0x168] sm:$0xff] }
 0x2be   : > { %2625 = vmatpush.msra.mxu0 %v1496_v51  ;;  %2644 = vmatpush.msra.mxu1 %v1564_v54  ;;  %v1676_v31 = vld [vmem:[#allocation9 + $0x680] sm:$0xff]  ;;  %v1581_v3 = vld [vmem:[#allocation9 + $0x388] sm:$0xff] }
 0x2bf   : > { %2665 = vmatpush.msra.mxu2 %v1624_v32  ;;  %2684 = vmatpush.msra.mxu3 %v1692_v34  ;;  %v1476_v9 = vld [vmem:[#allocation9 + $0x40] sm:$0xff]  ;;  %v1641_v11 = vld [vmem:[#allocation9 + $0x568] sm:$0xff] }
 0x2c0   : > { %2626 = vmatpush.msra.mxu0 %v1492_v37  ;;  %2645 = vmatpush.msra.mxu1 %v1560_v24  ;;  %v1544_v19 = vld [vmem:[#allocation9 + $0x260] sm:$0xff]  ;;  %v1709_v62 = vld [vmem:[#allocation9 + $0x788] sm:$0xff] }
 0x2c1   : > { %2666 = vmatpush.msra.mxu2 %v1620_v50  ;;  %2685 = vmatpush.msra.mxu3 %v1688_v55  ;;  %v1604_v56 = vld [vmem:[#allocation9 + $0x440] sm:$0xff]  ;;  %v1509_v60 = vld [vmem:[#allocation9 + $0x148] sm:$0xff] }
 0x2c2   : > { %2627 = vmatpush.msra.mxu0 %v1488_v38  ;;  %2646 = vmatpush.msra.mxu1 %v1556_v45  ;;  %v1672_v4 = vld [vmem:[#allocation9 + $0x660] sm:$0xff]  ;;  %v1577_v29 = vld [vmem:[#allocation9 + $0x368] sm:$0xff] }
 0x2c3   : > { %2667 = vmatpush.msra.mxu2 %v1616_v16  ;;  %2686 = vmatpush.msra.mxu3 %v1684_v5  ;;  %v1472_v35 = vld [vmem:[#allocation9 + $0x20] sm:$0xff]  ;;  %v1637_v17 = vld [vmem:[#allocation9 + $0x548] sm:$0xff] }
 0x2c4   : > { %2628 = vmatpush.msra.mxu0 %v1484_v41  ;;  %2647 = vmatpush.msra.mxu1 %v1552_v28  ;;  %v1540_v0 = vld [vmem:[#allocation9 + $0x240] sm:$0xff]  ;;  %v1705_v39 = vld [vmem:[#allocation9 + $0x768] sm:$0xff] }
 0x2c5   : > { %2668 = vmatpush.msra.mxu2 %v1612_v40  ;;  %2687 = vmatpush.msra.mxu3 %v1680_v18  ;;  %v1600_v43 = vld [vmem:[#allocation9 + $0x420] sm:$0xff]  ;;  %v1505_v59 = vld [vmem:[#allocation9 + $0x128] sm:$0xff] }
 0x2c6   : > { %2629 = vmatpush.msra.mxu0 %v1480_v25  ;;  %2648 = vmatpush.msra.mxu1 %v1548_v14  ;;  %v1668_v58 = vld [vmem:[#allocation9 + $0x640] sm:$0xff]  ;;  %v1573_v15 = vld [vmem:[#allocation9 + $0x348] sm:$0xff] }
 0x2c7   : > { %2669 = vmatpush.msra.mxu2 %v1608_v63  ;;  %2688 = vmatpush.msra.mxu3 %v1676_v31  ;;  %v1468_v61 = vld [vmem:[#allocation9] sm:$0xff]  ;;  %v1633_v48 = vld [vmem:[#allocation9 + $0x528] sm:$0xff] }
 0x2c8   : > { %2630 = vmatpush.msra.mxu0 %v1476_v9  ;;  %2649 = vmatpush.msra.mxu1 %v1544_v19  ;;  %v1536_v27 = vld [vmem:[#allocation9 + $0x220] sm:$0xff]  ;;  %v1701_v44 = vld [vmem:[#allocation9 + $0x748] sm:$0xff] }
 0x2c9   : > { %2670 = vmatpush.msra.mxu2 %v1604_v56  ;;  %2689 = vmatpush.msra.mxu3 %v1672_v4  ;;  %v1596_v42 = vld [vmem:[#allocation9 + $0x400] sm:$0xff]  ;;  %v1501_v51 = vld [vmem:[#allocation9 + $0x108] sm:$0xff] }
 0x2ca   : > { %2631 = vmatpush.msra.mxu0 %v1472_v35  ;;  %2650 = vmatpush.msra.mxu1 %v1540_v0  ;;  %v1664_v23 = vld [vmem:[#allocation9 + $0x620] sm:$0xff]  ;;  %v1569_v54 = vld [vmem:[#allocation9 + $0x328] sm:$0xff] }
 0x2cb   : > { %2671 = vmatpush.msra.mxu2 %v1600_v43  ;;  %2690 = vmatpush.msra.mxu3 %v1668_v58  ;;  %v4397_v13 = vld.sshfl [vmem:[#allocation1] sm:$0xff pattern:$0x73625140]  ;;  %v1629_v32 = vld [vmem:[#allocation9 + $0x508] sm:$0xff] }
 0x2cc   : > { %2632 = vmatpush.msra.mxu0 %v1468_v61  ;;  %2651 = vmatpush.msra.mxu1 %v1536_v27  ;;  %v1532_v21 = vld [vmem:[#allocation9 + $0x200] sm:$0xff]  ;;  %v1697_v34 = vld [vmem:[#allocation9 + $0x728] sm:$0xff] }
 0x2cd   : > { %2672 = vmatpush.msra.mxu2 %v1596_v42  ;;  %2691 = vmatpush.msra.mxu3 %v1664_v23  ;;  %v1660_v49 = vld [vmem:[#allocation9 + $0x600] sm:$0xff]  ;;  %v1497_v37 = vld [vmem:[#allocation9 + $0xe8] sm:$0xff] }
 0x2ce   : > { %2633 = vmatmul.f32.vlgmr.msra.gmra.mxu0 %v4397_v13  ;;  %2673 = vmatmul.f32.vlgmr.msra.gmra.mxu2 %v4399_v10  ;;  %v1565_v24 = vld [vmem:[#allocation9 + $0x308] sm:$0xff] }
 0x2cf   : > { %2697 = vmatpush.msrb.mxu0 %v1529_v7  ;;  %2737 = vmatpush.msrb.mxu2 %v1657_v46  ;;  %v1625_v50 = vld [vmem:[#allocation9 + $0x4e8] sm:$0xff]  ;;  %v4409_v7 = vpop.f32.mrf.mxu0 }
 0x2d0   : > { %2652 = vmatpush.msra.mxu1 %v1532_v21  ;;  %2692 = vmatpush.msra.mxu3 %v1660_v49  ;;  %v1693_v55 = vld [vmem:[#allocation9 + $0x708] sm:$0xff] }
 0x2d1   : > { %2653 = vmatmul.f32.vlgmr.msra.gmra.mxu1 %v4403_v12  ;;  %2693 = vmatmul.f32.vlgmr.msra.gmra.mxu3 %v4405_v2  ;;  %v1493_v38 = vld [vmem:[#allocation9 + $0xc8] sm:$0xff] }
 0x2d2   : > { %2698 = vmatpush.msrb.mxu0 %v1525_v47  ;;  %2717 = vmatpush.msrb.mxu1 %v1593_v8  ;;  %v1561_v45 = vld [vmem:[#allocation9 + $0x2e8] sm:$0xff]  ;;  %v4411_v8 = vpop.f32.mrf.mxu1 }
 0x2d3   : > { %2738 = vmatpush.msrb.mxu2 %v1653_v33  ;;  %2757 = vmatpush.msrb.mxu3 %v1721_v52  ;;  %v1621_v16 = vld [vmem:[#allocation9 + $0x4c8] sm:$0xff]  ;;  %v1530_v33 = vld [vmem:[#allocation9 + $0x1f0] sm:$0xff] }
 0x2d4   : > { %2699 = vmatpush.msrb.mxu0 %v1521_v26  ;;  %2718 = vmatpush.msrb.mxu1 %v1589_v53  ;;  %v1689_v5 = vld [vmem:[#allocation9 + $0x6e8] sm:$0xff]  ;;  %v1658_v52 = vld [vmem:[#allocation9 + $0x5f0] sm:$0xff]  ;;  %v4413_v26 = vpop.f32.mrf.mxu2 }
 0x2d5   : > { %2739 = vmatpush.msrb.mxu2 %v1649_v22  ;;  %2758 = vmatpush.msrb.mxu3 %v1717_v57  ;;  %v1489_v41 = vld [vmem:[#allocation9 + $0xa8] sm:$0xff]  ;;  %v1526_v57 = vld [vmem:[#allocation9 + $0x1d0] sm:$0xff] }
 0x2d6   : > { %2700 = vmatpush.msrb.mxu0 %v1517_v6  ;;  %2719 = vmatpush.msrb.mxu1 %v1585_v36  ;;  %v1557_v28 = vld [vmem:[#allocation9 + $0x2c8] sm:$0xff]  ;;  %v1594_v6 = vld [vmem:[#allocation9 + $0x3f0] sm:$0xff]  ;;  %v4417_v36 = vpop.f32.mrf.mxu3 }
 0x2d7   : > { %2740 = vmatpush.msrb.mxu2 %v1645_v30  ;;  %2759 = vmatpush.msrb.mxu3 %v1713_v1  ;;  %v1617_v40 = vld [vmem:[#allocation9 + $0x4a8] sm:$0xff]  ;;  %v1654_v30 = vld [vmem:[#allocation9 + $0x5d0] sm:$0xff] }
 0x2d8   : > { %2701 = vmatpush.msrb.mxu0 %v1513_v20  ;;  %2720 = vmatpush.msrb.mxu1 %v1581_v3  ;;  %v1685_v18 = vld [vmem:[#allocation9 + $0x6c8] sm:$0xff]  ;;  %v1722_v1 = vld [vmem:[#allocation9 + $0x7f0] sm:$0xff] }
 0x2d9   : > { %2741 = vmatpush.msrb.mxu2 %v1641_v11  ;;  %2760 = vmatpush.msrb.mxu3 %v1709_v62  ;;  %v1485_v25 = vld [vmem:[#allocation9 + $0x88] sm:$0xff]  ;;  %v1522_v20 = vld [vmem:[#allocation9 + $0x1b0] sm:$0xff] }
 0x2da   : > { %2702 = vmatpush.msrb.mxu0 %v1509_v60  ;;  %2721 = vmatpush.msrb.mxu1 %v1577_v29  ;;  %v1553_v14 = vld [vmem:[#allocation9 + $0x2a8] sm:$0xff]  ;;  %v1590_v3 = vld [vmem:[#allocation9 + $0x3d0] sm:$0xff]  ;;  %v4421_v60 = vpop.f32.mrf.mxu0 }
 0x2db   : > { %2742 = vmatpush.msrb.mxu2 %v1637_v17  ;;  %2761 = vmatpush.msrb.mxu3 %v1705_v39  ;;  %v1613_v63 = vld [vmem:[#allocation9 + $0x488] sm:$0xff]  ;;  %v1650_v11 = vld [vmem:[#allocation9 + $0x5b0] sm:$0xff] }
 0x2dc   : > { %2703 = vmatpush.msrb.mxu0 %v1505_v59  ;;  %2722 = vmatpush.msrb.mxu1 %v1573_v15  ;;  %v1681_v31 = vld [vmem:[#allocation9 + $0x6a8] sm:$0xff]  ;;  %v1718_v62 = vld [vmem:[#allocation9 + $0x7d0] sm:$0xff]  ;;  %v4423_v15 = vpop.f32.mrf.mxu2 }
 0x2dd   : > { %2743 = vmatpush.msrb.mxu2 %v1633_v48  ;;  %2762 = vmatpush.msrb.mxu3 %v1701_v44  ;;  %v1481_v9 = vld [vmem:[#allocation9 + $0x68] sm:$0xff]  ;;  %v1518_v29 = vld [vmem:[#allocation9 + $0x190] sm:$0xff] }
 0x2de   : > { %2704 = vmatpush.msrb.mxu0 %v1501_v51  ;;  %2723 = vmatpush.msrb.mxu1 %v1569_v54  ;;  %v1549_v19 = vld [vmem:[#allocation9 + $0x288] sm:$0xff]  ;;  %v1586_v17 = vld [vmem:[#allocation9 + $0x3b0] sm:$0xff]  ;;  %v4425_v51 = vpop.f32.mrf.mxu1 }
 0x2df   : > { %2744 = vmatpush.msrb.mxu2 %v1629_v32  ;;  %2763 = vmatpush.msrb.mxu3 %v1697_v34  ;;  %v1609_v56 = vld [vmem:[#allocation9 + $0x468] sm:$0xff]  ;;  %v1646_v39 = vld [vmem:[#allocation9 + $0x590] sm:$0xff] }
 0x2e0   : > { %2705 = vmatpush.msrb.mxu0 %v1497_v37  ;;  %2724 = vmatpush.msrb.mxu1 %v1565_v24  ;;  %v1677_v4 = vld [vmem:[#allocation9 + $0x688] sm:$0xff]  ;;  %v1714_v59 = vld [vmem:[#allocation9 + $0x7b0] sm:$0xff]  ;;  %v4427_v24 = vpop.f32.mrf.mxu3 }
 0x2e1   : > { %2745 = vmatpush.msrb.mxu2 %v1625_v50  ;;  %2764 = vmatpush.msrb.mxu3 %v1693_v55  ;;  %v1477_v35 = vld [vmem:[#allocation9 + $0x48] sm:$0xff]  ;;  %v1514_v48 = vld [vmem:[#allocation9 + $0x170] sm:$0xff] }
 0x2e2   : > { %2706 = vmatpush.msrb.mxu0 %v1493_v38  ;;  %2725 = vmatpush.msrb.mxu1 %v1561_v45  ;;  %v1545_v0 = vld [vmem:[#allocation9 + $0x268] sm:$0xff]  ;;  %v1582_v44 = vld [vmem:[#allocation9 + $0x390] sm:$0xff] }
 0x2e3   : > { %2746 = vmatpush.msrb.mxu2 %v1621_v16  ;;  %2765 = vmatpush.msrb.mxu3 %v1689_v5  ;;  %v1605_v43 = vld [vmem:[#allocation9 + $0x448] sm:$0xff]  ;;  %v1642_v54 = vld [vmem:[#allocation9 + $0x570] sm:$0xff] }
 0x2e4   : > { %2707 = vmatpush.msrb.mxu0 %v1489_v41  ;;  %2726 = vmatpush.msrb.mxu1 %v1557_v28  ;;  %v1673_v58 = vld [vmem:[#allocation9 + $0x668] sm:$0xff]  ;;  %v1710_v32 = vld [vmem:[#allocation9 + $0x790] sm:$0xff]  ;;  %v4429_v41 = vpop.f32.mrf.mxu0 }
 0x2e5   : > { %2747 = vmatpush.msrb.mxu2 %v1617_v40  ;;  %2766 = vmatpush.msrb.mxu3 %v1685_v18  ;;  %v1473_v61 = vld [vmem:[#allocation9 + $0x28] sm:$0xff]  ;;  %v1510_v34 = vld [vmem:[#allocation9 + $0x150] sm:$0xff] }
 0x2e6   : > { %2708 = vmatpush.msrb.mxu0 %v1485_v25  ;;  %2727 = vmatpush.msrb.mxu1 %v1553_v14  ;;  %v1541_v27 = vld [vmem:[#allocation9 + $0x248] sm:$0xff]  ;;  %v1578_v37 = vld [vmem:[#allocation9 + $0x370] sm:$0xff] }
 0x2e7   : > { %2748 = vmatpush.msrb.mxu2 %v1613_v63  ;;  %2767 = vmatpush.msrb.mxu3 %v1681_v31  ;;  %v1601_v42 = vld [vmem:[#allocation9 + $0x428] sm:$0xff]  ;;  %v1638_v50 = vld [vmem:[#allocation9 + $0x550] sm:$0xff]  ;;  %v4431_v31 = vpop.f32.mrf.mxu1 }
 0x2e8   : > { %2709 = vmatpush.msrb.mxu0 %v1481_v9  ;;  %2728 = vmatpush.msrb.mxu1 %v1549_v19  ;;  %v1669_v23 = vld [vmem:[#allocation9 + $0x648] sm:$0xff]  ;;  %v1706_v55 = vld [vmem:[#allocation9 + $0x770] sm:$0xff] }
 0x2e9   : > { %2749 = vmatpush.msrb.mxu2 %v1609_v56  ;;  %2768 = vmatpush.msrb.mxu3 %v1677_v4  ;;  %v1469_v46 = vld [vmem:[#allocation9 + $0x8] sm:$0xff]  ;;  %v1506_v38 = vld [vmem:[#allocation9 + $0x130] sm:$0xff]  ;;  %v4433_v56 = vpop.f32.mrf.mxu2 }
 0x2ea   : > { %2710 = vmatpush.msrb.mxu0 %v1477_v35  ;;  %2729 = vmatpush.msrb.mxu1 %v1545_v0  ;;  %v1537_v21 = vld [vmem:[#allocation9 + $0x228] sm:$0xff]  ;;  %v1574_v45 = vld [vmem:[#allocation9 + $0x350] sm:$0xff] }
 0x2eb   : > { %2750 = vmatpush.msrb.mxu2 %v1605_v43  ;;  %2769 = vmatpush.msrb.mxu3 %v1673_v58  ;;  %v1597_v49 = vld [vmem:[#allocation9 + $0x408] sm:$0xff]  ;;  %v1634_v16 = vld [vmem:[#allocation9 + $0x530] sm:$0xff] }
 0x2ec   : > { %2711 = vmatpush.msrb.mxu0 %v1473_v61  ;;  %2730 = vmatpush.msrb.mxu1 %v1541_v27  ;;  %v1665_v47 = vld [vmem:[#allocation9 + $0x628] sm:$0xff]  ;;  %v1702_v5 = vld [vmem:[#allocation9 + $0x750] sm:$0xff]  ;;  %v4435_v27 = vpop.f32.mrf.mxu3 }
 0x2ed   : > { %2751 = vmatpush.msrb.mxu2 %v1601_v42  ;;  %2770 = vmatpush.msrb.mxu3 %v1669_v23  ;;  %v1533_v53 = vld [vmem:[#allocation9 + $0x208] sm:$0xff]  ;;  %v1502_v28 = vld [vmem:[#allocation9 + $0x110] sm:$0xff] }
 0x2ee   : > { %2712 = vmatpush.msrb.mxu0 %v1469_v46  ;;  %2731 = vmatpush.msrb.mxu1 %v1537_v21  ;;  %v1661_v22 = vld [vmem:[#allocation9 + $0x608] sm:$0xff]  ;;  %v1570_v40 = vld [vmem:[#allocation9 + $0x330] sm:$0xff] }
 0x2ef   : > { %2752 = vmatpush.msrb.mxu2 %v1597_v49  ;;  %2771 = vmatpush.msrb.mxu3 %v1665_v47  ;;  %v1630_v18 = vld [vmem:[#allocation9 + $0x510] sm:$0xff] }
 0x2f0   : > { %2713 = vmatmul.f32.vlgmr.msrb.gmra.mxu0 %v4397_v13  ;;  %2753 = vmatmul.f32.vlgmr.msrb.gmra.mxu2 %v4399_v10  ;;  %v1698_v25 = vld [vmem:[#allocation9 + $0x730] sm:$0xff] }
 0x2f1   : > { %2777 = vmatpush.msra.mxu0 %v1530_v33  ;;  %2817 = vmatpush.msra.mxu2 %v1658_v52  ;;  %v1498_v14 = vld [vmem:[#allocation9 + $0xf0] sm:$0xff] }
 0x2f2   : > { %2732 = vmatpush.msrb.mxu1 %v1533_v53  ;;  %2772 = vmatpush.msrb.mxu3 %v1661_v22  ;;  %v1566_v63 = vld [vmem:[#allocation9 + $0x310] sm:$0xff] }
 0x2f3   : > { %2733 = vmatmul.f32.vlgmr.msrb.gmra.mxu1 %v4403_v12  ;;  %2773 = vmatmul.f32.vlgmr.msrb.gmra.mxu3 %v4405_v2  ;;  %v1626_v9 = vld [vmem:[#allocation9 + $0x4f0] sm:$0xff] }
 0x2f4   : > { %2778 = vmatpush.msra.mxu0 %v1526_v57  ;;  %2797 = vmatpush.msra.mxu1 %v1594_v6  ;;  %v1694_v19 = vld [vmem:[#allocation9 + $0x710] sm:$0xff] }
 0x2f5   : > { %2818 = vmatpush.msra.mxu2 %v1654_v30  ;;  %2837 = vmatpush.msra.mxu3 %v1722_v1  ;;  %v1494_v4 = vld [vmem:[#allocation9 + $0xd0] sm:$0xff] }
 0x2f6   : > { %2779 = vmatpush.msra.mxu0 %v1522_v20  ;;  %2798 = vmatpush.msra.mxu1 %v1590_v3  ;;  %v1562_v35 = vld [vmem:[#allocation9 + $0x2f0] sm:$0xff] }
 0x2f7   : > { %2819 = vmatpush.msra.mxu2 %v1650_v11  ;;  %2838 = vmatpush.msra.mxu3 %v1718_v62  ;;  %v1622_v0 = vld [vmem:[#allocation9 + $0x4d0] sm:$0xff] }
 0x2f8   : > { %2780 = vmatpush.msra.mxu0 %v1518_v29  ;;  %2799 = vmatpush.msra.mxu1 %v1586_v17  ;;  %v1690_v43 = vld [vmem:[#allocation9 + $0x6f0] sm:$0xff] }
 0x2f9   : > { %2820 = vmatpush.msra.mxu2 %v1646_v39  ;;  %2839 = vmatpush.msra.mxu3 %v1714_v59  ;;  %v1490_v58 = vld [vmem:[#allocation9 + $0xb0] sm:$0xff] }
 0x2fa   : > { %2781 = vmatpush.msra.mxu0 %v1514_v48  ;;  %2800 = vmatpush.msra.mxu1 %v1582_v44  ;;  %v1558_v61 = vld [vmem:[#allocation9 + $0x2d0] sm:$0xff] }
 0x2fb   : > { %2821 = vmatpush.msra.mxu2 %v1642_v54  ;;  %2840 = vmatpush.msra.mxu3 %v1710_v32  ;;  %v1618_v42 = vld [vmem:[#allocation9 + $0x4b0] sm:$0xff] }
 0x2fc   : > { %2782 = vmatpush.msra.mxu0 %v1510_v34  ;;  %2801 = vmatpush.msra.mxu1 %v1578_v37  ;;  %v1686_v23 = vld [vmem:[#allocation9 + $0x6d0] sm:$0xff] }
 0x2fd   : > { %2822 = vmatpush.msra.mxu2 %v1638_v50  ;;  %2841 = vmatpush.msra.mxu3 %v1706_v55  ;;  %v1486_v46 = vld [vmem:[#allocation9 + $0x90] sm:$0xff] }
 0x2fe   : > { %2783 = vmatpush.msra.mxu0 %v1506_v38  ;;  %2802 = vmatpush.msra.mxu1 %v1574_v45  ;;  %v1554_v21 = vld [vmem:[#allocation9 + $0x2b0] sm:$0xff]  ;;  %v1531_v38 = vld [vmem:[#allocation9 + $0x1f8] sm:$0xff] }
 0x2ff   : > { %2823 = vmatpush.msra.mxu2 %v1634_v16  ;;  %2842 = vmatpush.msra.mxu3 %v1702_v5  ;;  %v1614_v47 = vld [vmem:[#allocation9 + $0x490] sm:$0xff]  ;;  %v1659_v45 = vld [vmem:[#allocation9 + $0x5f8] sm:$0xff] }
 0x300   : > { %2784 = vmatpush.msra.mxu0 %v1502_v28  ;;  %2803 = vmatpush.msra.mxu1 %v1570_v40  ;;  %v1682_v33 = vld [vmem:[#allocation9 + $0x6b0] sm:$0xff] }
 0x301   : > { %2824 = vmatpush.msra.mxu2 %v1630_v18  ;;  %2843 = vmatpush.msra.mxu3 %v1698_v25  ;;  %v1482_v52 = vld [vmem:[#allocation9 + $0x70] sm:$0xff]  ;;  %v1527_v25 = vld [vmem:[#allocation9 + $0x1d8] sm:$0xff] }
 0x302   : > { %2785 = vmatpush.msra.mxu0 %v1498_v14  ;;  %2804 = vmatpush.msra.mxu1 %v1566_v63  ;;  %v1550_v53 = vld [vmem:[#allocation9 + $0x290] sm:$0xff]  ;;  %v1595_v14 = vld [vmem:[#allocation9 + $0x3f8] sm:$0xff] }
 0x303   : > { %2825 = vmatpush.msra.mxu2 %v1626_v9  ;;  %2844 = vmatpush.msra.mxu3 %v1694_v19  ;;  %v1610_v22 = vld [vmem:[#allocation9 + $0x470] sm:$0xff]  ;;  %v1655_v63 = vld [vmem:[#allocation9 + $0x5d8] sm:$0xff] }
 0x304   : > { %2786 = vmatpush.msra.mxu0 %v1494_v4  ;;  %2805 = vmatpush.msra.mxu1 %v1562_v35  ;;  %v1678_v57 = vld [vmem:[#allocation9 + $0x690] sm:$0xff]  ;;  %v1723_v9 = vld [vmem:[#allocation9 + $0x7f8] sm:$0xff] }
 0x305   : > { %2826 = vmatpush.msra.mxu2 %v1622_v0  ;;  %2845 = vmatpush.msra.mxu3 %v1690_v43  ;;  %v2384_v49 = vpop.f32.mrf.mxu0  ;;  %v1478_v30 = vld [vmem:[#allocation9 + $0x50] sm:$0xff]  ;;  %v1523_v19 = vld [vmem:[#allocation9 + $0x1b8] sm:$0xff] }
 0x306   : > { %2787 = vmatpush.msra.mxu0 %v1490_v58  ;;  %2806 = vmatpush.msra.mxu1 %v1558_v61  ;;  %v1546_v1 = vld [vmem:[#allocation9 + $0x270] sm:$0xff]  ;;  %v1591_v4 = vld [vmem:[#allocation9 + $0x3d8] sm:$0xff] }
 0x307   : > { %2827 = vmatpush.msra.mxu2 %v1618_v42  ;;  %2846 = vmatpush.msra.mxu3 %v1686_v23  ;;  %v1606_v11 = vld [vmem:[#allocation9 + $0x450] sm:$0xff]  ;;  %v1651_v35 = vld [vmem:[#allocation9 + $0x5b8] sm:$0xff] }
 0x308   : > { %2788 = vmatpush.msra.mxu0 %v1486_v46  ;;  %2807 = vmatpush.msra.mxu1 %v1554_v21  ;;  %v2404_v6 = vpop.f32.mrf.mxu1  ;;  %v1674_v62 = vld [vmem:[#allocation9 + $0x670] sm:$0xff]  ;;  %v1719_v0 = vld [vmem:[#allocation9 + $0x7d8] sm:$0xff] }
 0x309   : > { %2828 = vmatpush.msra.mxu2 %v1614_v47  ;;  %2847 = vmatpush.msra.mxu3 %v1682_v33  ;;  %v2405_v20 = vadd.f32 %v2404_v6, %v2384_v49  ;;  %v2424_v3 = vpop.f32.mrf.mxu2  ;;  %v1474_v29 = vld [vmem:[#allocation9 + $0x30] sm:$0xff]  ;;  %v1519_v43 = vld [vmem:[#allocation9 + $0x198] sm:$0xff] }
 0x30a   : > { %2789 = vmatpush.msra.mxu0 %v1482_v52  ;;  %2808 = vmatpush.msra.mxu1 %v1550_v53  ;;  %v1542_v17 = vld [vmem:[#allocation9 + $0x250] sm:$0xff]  ;;  %v1587_v58 = vld [vmem:[#allocation9 + $0x3b8] sm:$0xff] }
 0x30b   : > { %2829 = vmatpush.msra.mxu2 %v1610_v22  ;;  %2848 = vmatpush.msra.mxu3 %v1678_v57  ;;  %v2425_v39 = vadd.f32 %v2424_v3, %v2405_v20  ;;  %v1602_v59 = vld [vmem:[#allocation9 + $0x430] sm:$0xff]  ;;  %v1647_v61 = vld [vmem:[#allocation9 + $0x598] sm:$0xff] }
 0x30c   : > { %2790 = vmatpush.msra.mxu0 %v1478_v30  ;;  %2809 = vmatpush.msra.mxu1 %v1546_v1  ;;  %v1670_v48 = vld [vmem:[#allocation9 + $0x650] sm:$0xff]  ;;  %v2444_v44 = vpop.f32.mrf.mxu3  ;;  %v1715_v42 = vld [vmem:[#allocation9 + $0x7b8] sm:$0xff] }
 0x30d   : > { %2830 = vmatpush.msra.mxu2 %v1606_v11  ;;  %2849 = vmatpush.msra.mxu3 %v1674_v62  ;;  %v1470_v54 = vld [vmem:[#allocation9 + $0x10] sm:$0xff]  ;;  %v2445_v34 = vadd.f32 %v2444_v44, %v2425_v39  ;;  %v1515_v23 = vld [vmem:[#allocation9 + $0x178] sm:$0xff] }
 0x30e   : > { %v1538_v32 = vld [vmem:[#allocation9 + $0x230] sm:$0xff]  ;;  %2791 = vmatpush.msra.mxu0 %v1474_v29  ;;  %2810 = vmatpush.msra.mxu1 %v1542_v17  ;;  %v1583_v46 = vld [vmem:[#allocation9 + $0x398] sm:$0xff] }
 0x30f   : > { %v1598_v37 = vld [vmem:[#allocation9 + $0x410] sm:$0xff]  ;;  %2831 = vmatpush.msra.mxu2 %v1602_v59  ;;  %2850 = vmatpush.msra.mxu3 %v1670_v48  ;;  %v2464_v55 = vpop.f32.mrf.mxu0  ;;  %v1643_v21 = vld [vmem:[#allocation9 + $0x578] sm:$0xff] }
 0x310   : > { %v1666_v50 = vld [vmem:[#allocation9 + $0x630] sm:$0xff]  ;;  %2792 = vmatpush.msra.mxu0 %v1470_v54  ;;  %2811 = vmatpush.msra.mxu1 %v1538_v32  ;;  %v2465_v16 = vadd.f32 %v2464_v55, %v2445_v34  ;;  %v1711_v49 = vld [vmem:[#allocation9 + $0x798] sm:$0xff] }
 0x311   : > { %2832 = vmatpush.msra.mxu2 %v1598_v37  ;;  %2851 = vmatpush.msra.mxu3 %v1666_v50  ;;  %v1534_v5 = vld [vmem:[#allocation9 + $0x210] sm:$0xff]  ;;  %v2484_v40 = vpop.f32.mrf.mxu1  ;;  %v1511_v47 = vld [vmem:[#allocation9 + $0x158] sm:$0xff] }
 0x312   : > { %v1662_v28 = vld [vmem:[#allocation9 + $0x610] sm:$0xff]  ;;  %2793 = vmatmul.f32.vlgmr.msra.gmra.mxu0 %v4397_v13  ;;  %2833 = vmatmul.f32.vlgmr.msra.gmra.mxu2 %v4399_v10  ;;  %v4439_v18 = vadd.f32 %v2484_v40, %v2465_v16  ;;  %v1579_v33 = vld [vmem:[#allocation9 + $0x378] sm:$0xff] }
 0x313   : > { %2857 = vmatpush.msrb.mxu0 %v1531_v38  ;;  %2897 = vmatpush.msrb.mxu2 %v1659_v45  ;;  %v1639_v52 = vld [vmem:[#allocation9 + $0x558] sm:$0xff] }
 0x314   : > { %2812 = vmatpush.msra.mxu1 %v1534_v5  ;;  %2852 = vmatpush.msra.mxu3 %v1662_v28  ;;  %v1707_v53 = vld [vmem:[#allocation9 + $0x778] sm:$0xff] }
 0x315   : > { %2813 = vmatmul.f32.vlgmr.msra.gmra.mxu1 %v4403_v12  ;;  %2853 = vmatmul.f32.vlgmr.msra.gmra.mxu3 %v4405_v2  ;;  %v1507_v22 = vld [vmem:[#allocation9 + $0x138] sm:$0xff] }
 0x316   : > { %2858 = vmatpush.msrb.mxu0 %v1527_v25  ;;  %2877 = vmatpush.msrb.mxu1 %v1595_v14  ;;  %v1575_v57 = vld [vmem:[#allocation9 + $0x358] sm:$0xff] }
 0x317   : > { %2898 = vmatpush.msrb.mxu2 %v1655_v63  ;;  %2917 = vmatpush.msrb.mxu3 %v1723_v9  ;;  %v1635_v6 = vld [vmem:[#allocation9 + $0x538] sm:$0xff] }
 0x318   : > { %2859 = vmatpush.msrb.mxu0 %v1523_v19  ;;  %2878 = vmatpush.msrb.mxu1 %v1591_v4  ;;  %v1703_v30 = vld [vmem:[#allocation9 + $0x758] sm:$0xff] }
 0x319   : > { %2899 = vmatpush.msrb.mxu2 %v1651_v35  ;;  %2918 = vmatpush.msrb.mxu3 %v1719_v0  ;;  %v1503_v1 = vld [vmem:[#allocation9 + $0x118] sm:$0xff] }
 0x31a   : > { %2860 = vmatpush.msrb.mxu0 %v1519_v43  ;;  %2879 = vmatpush.msrb.mxu1 %v1587_v58  ;;  %v1571_v20 = vld [vmem:[#allocation9 + $0x338] sm:$0xff] }
 0x31b   : > { %2900 = vmatpush.msrb.mxu2 %v1647_v61  ;;  %2919 = vmatpush.msrb.mxu3 %v1715_v42  ;;  %v1631_v3 = vld [vmem:[#allocation9 + $0x518] sm:$0xff] }
 0x31c   : > { %2861 = vmatpush.msrb.mxu0 %v1515_v23  ;;  %2880 = vmatpush.msrb.mxu1 %v1583_v46  ;;  %v1699_v11 = vld [vmem:[#allocation9 + $0x738] sm:$0xff] }
 0x31d   : > { %2901 = vmatpush.msrb.mxu2 %v1643_v21  ;;  %2920 = vmatpush.msrb.mxu3 %v1711_v49  ;;  %v1499_v62 = vld [vmem:[#allocation9 + $0xf8] sm:$0xff] }
 0x31e   : > { %2862 = vmatpush.msrb.mxu0 %v1511_v47  ;;  %2881 = vmatpush.msrb.mxu1 %v1579_v33  ;;  %v1567_v29 = vld [vmem:[#allocation9 + $0x318] sm:$0xff] }
 0x31f   : > { %2902 = vmatpush.msrb.mxu2 %v1639_v52  ;;  %2921 = vmatpush.msrb.mxu3 %v1707_v53  ;;  %v1627_v17 = vld [vmem:[#allocation9 + $0x4f8] sm:$0xff] }
 0x320   : > { %2863 = vmatpush.msrb.mxu0 %v1507_v22  ;;  %2882 = vmatpush.msrb.mxu1 %v1575_v57  ;;  %v1695_v39 = vld [vmem:[#allocation9 + $0x718] sm:$0xff] }
 0x321   : > { %2903 = vmatpush.msrb.mxu2 %v1635_v6  ;;  %2922 = vmatpush.msrb.mxu3 %v1703_v30  ;;  %v1495_v59 = vld [vmem:[#allocation9 + $0xd8] sm:$0xff] }
 0x322   : > { %2864 = vmatpush.msrb.mxu0 %v1503_v1  ;;  %2883 = vmatpush.msrb.mxu1 %v1571_v20  ;;  %v1563_v48 = vld [vmem:[#allocation9 + $0x2f8] sm:$0xff] }
 0x323   : > { %2904 = vmatpush.msrb.mxu2 %v1631_v3  ;;  %2923 = vmatpush.msrb.mxu3 %v1699_v11  ;;  %v1623_v44 = vld [vmem:[#allocation9 + $0x4d8] sm:$0xff]  ;;  %v2968_v11 = vld [vmem:[#allocation14 + $0x68] sm:$0xff] }
 0x324   : > { %2865 = vmatpush.msrb.mxu0 %v1499_v62  ;;  %2884 = vmatpush.msrb.mxu1 %v1567_v29  ;;  %v1691_v54 = vld [vmem:[#allocation9 + $0x6f8] sm:$0xff] }
 0x325   : > { %2905 = vmatpush.msrb.mxu2 %v1627_v17  ;;  %2924 = vmatpush.msrb.mxu3 %v1695_v39  ;;  %v1491_v32 = vld [vmem:[#allocation9 + $0xb8] sm:$0xff] }
 0x326   : > { %v1559_v34 = vld [vmem:[#allocation9 + $0x2d8] sm:$0xff]  ;;  %2866 = vmatpush.msrb.mxu0 %v1495_v59  ;;  %2885 = vmatpush.msrb.mxu1 %v1563_v48  ;;  %v2983_v48 = vld [vmem:[#allocation14 + $0xe0] sm:$0xff] }
 0x327   : > { %v1619_v37 = vld [vmem:[#allocation9 + $0x4b8] sm:$0xff]  ;;  %2906 = vmatpush.msrb.mxu2 %v1623_v44  ;;  %2925 = vmatpush.msrb.mxu3 %v1691_v54  ;;  %v2964_v44 = vld [vmem:[#allocation14 + $0x48] sm:$0xff] }
 0x328   : > { %v1687_v50 = vld [vmem:[#allocation9 + $0x6d8] sm:$0xff]  ;;  %2867 = vmatpush.msrb.mxu0 %v1491_v32  ;;  %2886 = vmatpush.msrb.mxu1 %v1559_v34 }
 0x329   : > { %v1487_v55 = vld [vmem:[#allocation9 + $0x98] sm:$0xff]  ;;  %2907 = vmatpush.msrb.mxu2 %v1619_v37  ;;  %2926 = vmatpush.msrb.mxu3 %v1687_v50  ;;  %v2980_v37 = vld [vmem:[#allocation14 + $0xc8] sm:$0xff] }
 0x32a   : > { %v1555_v38 = vld [vmem:[#allocation9 + $0x2b8] sm:$0xff]  ;;  %2868 = vmatpush.msrb.mxu0 %v1487_v55  ;;  %v2979_v55 = vld [vmem:[#allocation14 + $0xc0] sm:$0xff] }
 0x32b   : > { %v1615_v45 = vld [vmem:[#allocation9 + $0x498] sm:$0xff]  ;;  %2887 = vmatpush.msrb.mxu1 %v1555_v38  ;;  %v2960_v38 = vld [vmem:[#allocation14 + $0x28] sm:$0xff] }
 0x32c   : > { %v1683_v16 = vld [vmem:[#allocation9 + $0x6b8] sm:$0xff]  ;;  %2908 = vmatpush.msrb.mxu2 %v1615_v45  ;;  %v2504_v4 = vpop.f32.mrf.mxu2 }
 0x32d   : > { %v1483_v5 = vld [vmem:[#allocation9 + $0x78] sm:$0xff]  ;;  %2927 = vmatpush.msrb.mxu3 %v1683_v16 }
 0x32e   : > { %v1551_v28 = vld [vmem:[#allocation9 + $0x298] sm:$0xff]  ;;  %2869 = vmatpush.msrb.mxu0 %v1483_v5 }
 0x32f   : > { %v1611_v40 = vld [vmem:[#allocation9 + $0x478] sm:$0xff]  ;;  %2888 = vmatpush.msrb.mxu1 %v1551_v28  ;;  %v2524_v23 = vpop.f32.mrf.mxu3 }
 0x330   : > { %v1679_v25 = vld [vmem:[#allocation9 + $0x698] sm:$0xff]  ;;  %2909 = vmatpush.msrb.mxu2 %v1611_v40  ;;  %v2525_v49 = vadd.f32 %v2524_v23, %v2504_v4 }
 0x331   : > { %v1479_v14 = vld [vmem:[#allocation9 + $0x58] sm:$0xff]  ;;  %2928 = vmatpush.msrb.mxu3 %v1679_v25  ;;  %v2544_v47 = vpop.f32.mrf.mxu0 }
 0x332   : > { %v1547_v63 = vld [vmem:[#allocation9 + $0x278] sm:$0xff]  ;;  %2870 = vmatpush.msrb.mxu0 %v1479_v14  ;;  %v2545_v53 = vadd.f32 %v2544_v47, %v2525_v49  ;;  %v2285_v47 = vadd.f32 %v4427_v24, %v4423_v15  ;;  %v2996_v15 = vld [vmem:[#allocation14 + $0x148] sm:$0xff] }
 0x333   : > { %v1607_v9 = vld [vmem:[#allocation9 + $0x458] sm:$0xff]  ;;  %2889 = vmatpush.msrb.mxu1 %v1547_v63  ;;  %v4455_v63 = vld [vmem:[#allocation12] sm:$0xf] }
 0x334   : > { %v1675_v19 = vld [vmem:[#allocation9 + $0x678] sm:$0xff]  ;;  %2910 = vmatpush.msrb.mxu2 %v1607_v9  ;;  %v2564_v22 = vpop.f32.mrf.mxu1  ;;  %v2956_v9 = vld [vmem:[#allocation14 + $0x8] sm:$0xff] }
 0x335   : > { %v1475_v35 = vld [vmem:[#allocation9 + $0x38] sm:$0xff]  ;;  %2929 = vmatpush.msrb.mxu3 %v1675_v19  ;;  %v2565_v6 = vadd.f32 %v2564_v22, %v2545_v53  ;;  %v2584_v30 = vpop.f32.mrf.mxu2  ;;  %v2971_v22 = vld [vmem:[#allocation14 + $0x80] sm:$0xff] }
 0x336   : > { %v1543_v0 = vld [vmem:[#allocation9 + $0x258] sm:$0xff]  ;;  %2871 = vmatpush.msrb.mxu0 %v1475_v35 }
 0x337   : > { %v1603_v43 = vld [vmem:[#allocation9 + $0x438] sm:$0xff]  ;;  %2890 = vmatpush.msrb.mxu1 %v1543_v0  ;;  %v2585_v20 = vadd.f32 %v2584_v30, %v2565_v6  ;;  %v2955_v0 = vld [vmem:[#allocation14] sm:$0xff]  ;;  %v2305_v6 = vadd.f32 %v4429_v41, %v2285_v47 }
 0x338   : > { %v1671_v58 = vld [vmem:[#allocation9 + $0x658] sm:$0xff]  ;;  %2911 = vmatpush.msrb.mxu2 %v1603_v43  ;;  %v2604_v3 = vpop.f32.mrf.mxu3  ;;  %v2939_v43 = vperm.slane %v4455_v63, 0  ;;  %v2999_v30 = vld [vmem:[#allocation14 + $0x160] sm:$0xff] }
 0x339   : > { %v1471_v61 = vld [vmem:[#allocation9 + $0x18] sm:$0xff]  ;;  %2930 = vmatpush.msrb.mxu3 %v1671_v58  ;;  %v4447_v62 = vadd.f32 %v2604_v3, %v2585_v20  ;;  %v2325_v20 = vadd.f32 %v4431_v31, %v2305_v6 }
 0x33a   : > { %v1539_v42 = vld [vmem:[#allocation9 + $0x238] sm:$0xff]  ;;  %2872 = vmatpush.msrb.mxu0 %v1471_v61  ;;  %v2975_v61 = vld [vmem:[#allocation14 + $0xa0] sm:$0xff] }
 0x33b   : > { %v1599_v46 = vld [vmem:[#allocation9 + $0x418] sm:$0xff]  ;;  %2891 = vmatpush.msrb.mxu1 %v1539_v42  ;;  %2873 = vmatmul.f32.vlgmr.msrb.gmra.mxu0 %v4397_v13  ;;  %v2165_v13 = vadd.f32 %v4411_v8, %v4409_v7  ;;  %v2963_v8 = vld [vmem:[#allocation14 + $0x40] sm:$0xff]  ;;  %v2345_v24 = vadd.f32 %v4433_v56, %v2325_v20 }
 0x33c   : > { %v1667_v21 = vld [vmem:[#allocation9 + $0x638] sm:$0xff]  ;;  %2912 = vmatpush.msrb.mxu2 %v1599_v46 }
 0x33d   : > { %v1535_v33 = vld [vmem:[#allocation9 + $0x218] sm:$0xff]  ;;  %2931 = vmatpush.msrb.mxu3 %v1667_v21  ;;  %2913 = vmatmul.f32.vlgmr.msrb.gmra.mxu2 %v4399_v10  ;;  %v2967_v10 = vld [vmem:[#allocation14 + $0x60] sm:$0xff] }
 0x33e   : > { %v1663_v52 = vld [vmem:[#allocation9 + $0x618] sm:$0xff]  ;;  %2892 = vmatpush.msrb.mxu1 %v1535_v33  ;;  %v2972_v33 = vld [vmem:[#allocation14 + $0x88] sm:$0xff] }
 0x33f   : > { %v2970_v57 = vld [vmem:[#allocation14 + $0x78] sm:$0xff]  ;;  %2932 = vmatpush.msrb.mxu3 %v1663_v52  ;;  %2893 = vmatmul.f32.vlgmr.msrb.gmra.mxu1 %v4403_v12  ;;  %v2969_v1 = vld [vmem:[#allocation14 + $0x70] sm:$0xff]  ;;  %v2984_v12 = vld [vmem:[#allocation14 + $0xe8] sm:$0xff] }
 0x340   : > { %2933 = vmatmul.f32.vlgmr.msrb.gmra.mxu3 %v4405_v2  ;;  %3023 = vmatpush.msra.mxu0 %v2970_v57  ;;  %v2986_v29 = vld [vmem:[#allocation14 + $0xf8] sm:$0xff]  ;;  %v2985_v17 = vld [vmem:[#allocation14 + $0xf0] sm:$0xff]  ;;  %v2185_v2 = vadd.f32 %v4413_v26, %v2165_v13  ;;  %v3000_v57 = vld [vmem:[#allocation14 + $0x168] sm:$0xff]  ;;  %v2365_v13 = vadd.f32 %v4435_v27, %v2345_v24 }
 0x341   : > { %v2966_v39 = vld [vmem:[#allocation14 + $0x58] sm:$0xff]  ;;  %3043 = vmatpush.msra.mxu1 %v2986_v29  ;;  %v2965_v59 = vld [vmem:[#allocation14 + $0x50] sm:$0xff] }
 0x342   : > { %3024 = vmatpush.msra.mxu0 %v2969_v1  ;;  %v2982_v54 = vld [vmem:[#allocation14 + $0xd8] sm:$0xff]  ;;  %v2205_v7 = vadd.f32 %v4417_v36, %v2185_v2  ;;  %v2981_v32 = vld [vmem:[#allocation14 + $0xd0] sm:$0xff]  ;;  %v2959_v36 = vld [vmem:[#allocation14 + $0x20] sm:$0xff] }
 0x343   : > { %3044 = vmatpush.msra.mxu1 %v2985_v17  ;;  %v2962_v34 = vld [vmem:[#allocation14 + $0x38] sm:$0xff]  ;;  %v2961_v50 = vld [vmem:[#allocation14 + $0x30] sm:$0xff]  ;;  %v2992_v2 = vld [vmem:[#allocation14 + $0x128] sm:$0xff] }
 0x344   : > { %3025 = vmatpush.msra.mxu0 %v2968_v11  ;;  %v2225_v26 = vadd.f32 %v4421_v60, %v2205_v7  ;;  %v2958_v28 = vld [vmem:[#allocation14 + $0x18] sm:$0xff]  ;;  %v2957_v25 = vld [vmem:[#allocation14 + $0x10] sm:$0xff]  ;;  %v2995_v11 = vld [vmem:[#allocation14 + $0x140] sm:$0xff] }
 0x345   : > { %3045 = vmatpush.msra.mxu1 %v2984_v12  ;;  %v2978_v14 = vld [vmem:[#allocation14 + $0xb8] sm:$0xff]  ;;  %v2977_v4 = vld [vmem:[#allocation14 + $0xb0] sm:$0xff] }
 0x346   : > { %3026 = vmatpush.msra.mxu0 %v2967_v10  ;;  %v2245_v45 = vadd.f32 %v4425_v51, %v2225_v26  ;;  %v2976_v51 = vld [vmem:[#allocation14 + $0xa8] sm:$0xff]  ;;  %v2974_v21 = vld [vmem:[#allocation14 + $0x98] sm:$0xff]  ;;  %v2973_v49 = vld [vmem:[#allocation14 + $0x90] sm:$0xff] }
 0x347   : > { %3046 = vmatpush.msra.mxu1 %v2983_v48  ;;  %v3002_v52 = vld [vmem:[#allocation14 + $0x178] sm:$0xff]  ;;  %v3001_v53 = vld [vmem:[#allocation14 + $0x170] sm:$0xff]  ;;  %v2940_v48 = vperm.slane %v4455_v63, 1 }
 0x348   : > { %3027 = vmatpush.msra.mxu0 %v2966_v39  ;;  %3063 = vmatpush.msra.mxu2 %v3002_v52  ;;  %v2998_v1 = vld [vmem:[#allocation14 + $0x158] sm:$0xff]  ;;  %v2997_v3 = vld [vmem:[#allocation14 + $0x150] sm:$0xff] }
 0x349   : > { %3047 = vmatpush.msra.mxu1 %v2982_v54  ;;  %v2994_v17 = vld [vmem:[#allocation14 + $0x138] sm:$0xff]  ;;  %v2993_v31 = vld [vmem:[#allocation14 + $0x130] sm:$0xff] }
 0x34a   : > { %3028 = vmatpush.msra.mxu0 %v2965_v59  ;;  %3064 = vmatpush.msra.mxu2 %v3001_v53  ;;  %v2990_v7 = vld [vmem:[#allocation14 + $0x118] sm:$0xff] }
 0x34b   : > { %3048 = vmatpush.msra.mxu1 %v2981_v32  ;;  %v2634_v16 = vpop.f32.mrf.mxu0  ;;  %v2989_v32 = vld [vmem:[#allocation14 + $0x110] sm:$0xff]  ;;  %v3018_v26 = vld [vmem:[#allocation14 + $0x1f8] sm:$0xff] }
 0x34c   : > { %3029 = vmatpush.msra.mxu0 %v2964_v44  ;;  %v2635_v5 = vadd.f32 %v2634_v16, %v2245_v45  ;;  %3065 = vmatpush.msra.mxu2 %v3000_v57  ;;  %v2991_v44 = vld [vmem:[#allocation14 + $0x120] sm:$0xff]  ;;  %v3014_v45 = vld [vmem:[#allocation14 + $0x1d8] sm:$0xff]  ;;  %v3012_v16 = vld [vmem:[#allocation14 + $0x1c8] sm:$0xff]  ;;  %v2942_v57 = vperm.slane %v4455_v63, 3 }
 0x34d   : > { %3049 = vmatpush.msra.mxu1 %v2980_v37  ;;  %v2987_v37 = vld [vmem:[#allocation14 + $0x100] sm:$0xff]  ;;  %3083 = vmatpush.msra.mxu3 %v3018_v26 }
 0x34e   : > { %3030 = vmatpush.msra.mxu0 %v2963_v8  ;;  %v2654_v40 = vpop.f32.mrf.mxu1  ;;  %3066 = vmatpush.msra.mxu2 %v2999_v30 }
 0x34f   : > { %3050 = vmatpush.msra.mxu1 %v2979_v55  ;;  %v2655_v60 = vadd.f32 %v2654_v40, %v2635_v5  ;;  %v3016_v55 = vld [vmem:[#allocation14 + $0x1e8] sm:$0xff]  ;;  %v3011_v5 = vld [vmem:[#allocation14 + $0x1c0] sm:$0xff] }
 0x350   : > { %3031 = vmatpush.msra.mxu0 %v2962_v34  ;;  %3067 = vmatpush.msra.mxu2 %v2998_v1  ;;  %v2988_v34 = vld [vmem:[#allocation14 + $0x108] sm:$0xff] }
 0x351   : > { %3051 = vmatpush.msra.mxu1 %v2978_v14  ;;  %v2674_v19 = vpop.f32.mrf.mxu2 }
 0x352   : > { %3032 = vmatpush.msra.mxu0 %v2961_v50  ;;  %v2675_v35 = vadd.f32 %v2674_v19, %v2655_v60  ;;  %3068 = vmatpush.msra.mxu2 %v2997_v3  ;;  %v3017_v50 = vld [vmem:[#allocation14 + $0x1f0] sm:$0xff]  ;;  %v3008_v19 = vld [vmem:[#allocation14 + $0x1a8] sm:$0xff]  ;;  %v3431_v3 = vld [vmem:[#allocation15] ss:$0 sm:$0xff] }
 0x353   : > { %3052 = vmatpush.msra.mxu1 %v2977_v4  ;;  %3084 = vmatpush.msra.mxu3 %v3017_v50  ;;  %v3009_v60 = vld [vmem:[#allocation14 + $0x1b0] sm:$0xff] }
 0x354   : > { %3033 = vmatpush.msra.mxu0 %v2960_v38  ;;  %v2694_v58 = vpop.f32.mrf.mxu3  ;;  %3069 = vmatpush.msra.mxu2 %v2996_v15  ;;  %v3015_v38 = vld [vmem:[#allocation14 + $0x1e0] sm:$0xff] }
 0x355   : > { %3053 = vmatpush.msra.mxu1 %v2976_v51  ;;  %v2695_v42 = vadd.f32 %v2694_v58, %v2675_v35  ;;  %3085 = vmatpush.msra.mxu3 %v3016_v55  ;;  %v3007_v35 = vld [vmem:[#allocation14 + $0x1a0] sm:$0xff]  ;;  %v3006_v58 = vld [vmem:[#allocation14 + $0x198] sm:$0xff] }
 0x356   : > { %3034 = vmatpush.msra.mxu0 %v2959_v36  ;;  %3070 = vmatpush.msra.mxu2 %v2995_v11  ;;  %v3013_v36 = vld [vmem:[#allocation14 + $0x1d0] sm:$0xff] }
 0x357   : > { %3054 = vmatpush.msra.mxu1 %v2975_v61  ;;  %v2947_v23 = vadd.f32 %v2939_v43, %v2695_v42  ;;  %3086 = vmatpush.msra.mxu3 %v3015_v38  ;;  %v3005_v42 = vld [vmem:[#allocation14 + $0x190] sm:$0xff] }
 0x358   : > { %3035 = vmatpush.msra.mxu0 %v2958_v28  ;;  %3071 = vmatpush.msra.mxu2 %v2994_v17 }
 0x359   : > { %v2951_v46 = vmax.f32 %v2947_v23, 0.0  ;;  %3055 = vmatpush.msra.mxu1 %v2974_v21  ;;  %3087 = vmatpush.msra.mxu3 %v3014_v45  ;;  %v3004_v23 = vld [vmem:[#allocation14 + $0x188] sm:$0xff]  ;;  %v3003_v21 = vld [vmem:[#allocation14 + $0x180] sm:$0xff] }
 0x35a   : > { %3036 = vmatpush.msra.mxu0 %v2957_v25  ;;  %3072 = vmatpush.msra.mxu2 %v2993_v31  ;;  %v3010_v25 = vld [vmem:[#allocation14 + $0x1b8] sm:$0xff] }
 0x35b   : > { %3056 = vmatpush.msra.mxu1 %v2973_v49  ;;  %3088 = vmatpush.msra.mxu3 %v3013_v36 }
 0x35c   : > { %3037 = vmatpush.msra.mxu0 %v2956_v9  ;;  %3073 = vmatpush.msra.mxu2 %v2992_v2 }
 0x35d   : > { %3057 = vmatpush.msra.mxu1 %v2972_v33  ;;  %3089 = vmatpush.msra.mxu3 %v3012_v16 }
 0x35e   : > { %3038 = vmatpush.msra.mxu0 %v2955_v0  ;;  %3074 = vmatpush.msra.mxu2 %v2991_v44  ;;  %v2941_v0 = vperm.slane %v4455_v63, 2 }
 0x35f   : > { %3039 = vmatmul.f32.vlgmr.msra.gmra.mxu0 %v2951_v46  ;;  %3058 = vmatpush.msra.mxu1 %v2971_v22 }
 0x360   : > { %3075 = vmatpush.msra.mxu2 %v2990_v7  ;;  %3090 = vmatpush.msra.mxu3 %v3011_v5 }
 0x362   : > { %3076 = vmatpush.msra.mxu2 %v2989_v32  ;;  %3091 = vmatpush.msra.mxu3 %v3010_v25 }
 0x364   : > { %3077 = vmatpush.msra.mxu2 %v2988_v34  ;;  %3092 = vmatpush.msra.mxu3 %v3009_v60 }
 0x366   : > { %3078 = vmatpush.msra.mxu2 %v2987_v37  ;;  %3093 = vmatpush.msra.mxu3 %v3008_v19 }
 0x368   : > { %3094 = vmatpush.msra.mxu3 %v3007_v35 }
 0x36a   : > { %3095 = vmatpush.msra.mxu3 %v3006_v58 }
 0x36c   : > { %3096 = vmatpush.msra.mxu3 %v3005_v42 }
 0x36d   : > { %v2714_v41 = vpop.f32.mrf.mxu0 }
 0x36e   : > { %v2715_v10 = vadd.f32 %v2714_v41, %v2365_v13  ;;  %3097 = vmatpush.msra.mxu3 %v3004_v23 }
 0x370   : > { %v2734_v29 = vpop.f32.mrf.mxu1  ;;  %3098 = vmatpush.msra.mxu3 %v3003_v21 }
 0x371   : > { %v2735_v39 = vadd.f32 %v2734_v29, %v2715_v10 }
 0x373   : > { %v2754_v12 = vpop.f32.mrf.mxu2 }
 0x374   : > { %v2755_v59 = vadd.f32 %v2754_v12, %v2735_v39 }
 0x376   : > { %v2774_v56 = vpop.f32.mrf.mxu3 }
 0x377   : > { %v2775_v54 = vadd.f32 %v2774_v56, %v2755_v59 }
 0x379   : > { %v2948_v27 = vadd.f32 %v2940_v48, %v2775_v54 }
 0x37b   : > { %v2952_v8 = vmax.f32 %v2948_v27, 0.0 }
 0x37d   : > { %3059 = vmatmul.f32.vlgmr.msra.gmra.mxu1 %v2952_v8 }
 0x38f   : > { %v2794_v28 = vpop.f32.mrf.mxu0 }
 0x390   : > { %v2795_v40 = vadd.f32 %v2794_v28, %v4439_v18 }
 0x392   : > { %v2814_v14 = vpop.f32.mrf.mxu1 }
 0x393   : > { %v2815_v9 = vadd.f32 %v2814_v14, %v2795_v40 }
 0x395   : > { %v2834_v4 = vpop.f32.mrf.mxu2 }
 0x396   : > { %v2835_v51 = vadd.f32 %v2834_v4, %v2815_v9 }
 0x398   : > { %v2854_v43 = vpop.f32.mrf.mxu3 }
 0x399   : > { %v2855_v61 = vadd.f32 %v2854_v43, %v2835_v51 }
 0x39b   : > { %v2949_v18 = vadd.f32 %v2941_v0, %v2855_v61 }
 0x39d   : > { %v2953_v46 = vmax.f32 %v2949_v18, 0.0 }
 0x39f   : > { %3079 = vmatmul.f32.vlgmr.msra.gmra.mxu2 %v2953_v46 }
 0x3b8   : > { %v2874_v49 = vpop.f32.mrf.mxu0 }
 0x3b9   : > { %v2875_v47 = vadd.f32 %v2874_v49, %v4447_v62 }
 0x3bc   : > { %v2894_v33 = vpop.f32.mrf.mxu1 }
 0x3bd   : > { %v2895_v52 = vadd.f32 %v2894_v33, %v2875_v47 }
 0x3c0   : > { %v2914_v53 = vpop.f32.mrf.mxu2 }
 0x3c1   : > { %v2915_v22 = vadd.f32 %v2914_v53, %v2895_v52 }
 0x3c3   : > { %v2934_v6 = vpop.f32.mrf.mxu3 }
 0x3c4   : > { %v2935_v30 = vadd.f32 %v2934_v6, %v2915_v22 }
 0x3c6   : > { %v2950_v1 = vadd.f32 %v2942_v57, %v2935_v30 }
 0x3c8   : > { %v2954_v20 = vmax.f32 %v2950_v1, 0.0 }
 0x3ca   : > { %3099 = vmatmul.f32.vlgmr.msra.gmra.mxu3 %v2954_v20 }
 0x3dc   : > { %v3040_v15 = vpop.f32.mrf.mxu0 }
 0x3dd   : > { %v3041_v11 = vadd.f32 %v3431_v3, %v3040_v15 }
 0x3fa   : > { %v3060_v24 = vpop.f32.mrf.mxu1 }
 0x3fb   : > { %v3061_v41 = vadd.f32 %v3060_v24, %v3041_v11 }
 0x422   : > { %v3080_v13 = vpop.f32.mrf.mxu2 }
 0x423   : > { %v3081_v10 = vadd.f32 %v3080_v13, %v3061_v41 }
 0x44d   : > { %v3100_v29 = vpop.f32.mrf.mxu3 }
 0x44e   : > { %v3101_v62 = vadd.f32 %v3100_v29, %v3081_v10 }
 0x450   : > { %3103 = vst [vmem:[#allocation17] sm:$0x3] %v3101_v62 }
 0x451 PF: > { %p3346_p5 = scmp.eq.s32.totalorder %s3808_s9, 1  ;;  %s3743_s15 = smov [#allocation17]  }
 0x452   : > { %s3110_s21 = sshll.u32 %s3743_s15, 4  ;;  %s3112_s13 = sshll.u32 %s4494_s8, 4  ;;  %s3111_s21 = int_to_ptr.vmem [resolvable:$true] %s3110_s21  ;;  %s3113_s13 = int_to_ptr.hbm [resolvable:$true] %s3112_s13 }
 0x453   : > { %3312 = dma.vmem_to_hbm [thread:$0]  (%p3346_p5), %s3111_s21, 32, %s3113_s13, [#allocation5]  }
 0x454   : > { %3707 = dma.done.wait (%p3346_p5), [#allocation5], 32  }
 0x455   : > { %3709 = vsyncadd (%p3346_p5), [#allocation5], 4294967264 }
 0x456 PF: > { %s4506_s23 = sld [smem:[#allocation27_spill]]  ;;  %p23_p8 = scmp.ge.s32.totalorder %s3811_s10, 4  }
 0x457   : > { %s4507_s27 = smov %s3716_s28  ;;  %s4508_s28 = smov %s3720_s29 }
 0x458   : > { %s4510_s30 = smov %s3811_s10  ;;  %25 = sbr.rel (!%p23_p8) target bundleno = 12 (0xc), region = 139 }
 0x45c   : > { %s4509_s29 = smov %s4506_s23 }
 0x45d   :  { %3126 = vsyncpa [#allocation4], 1 }
 0x45e   :  { %3128 = vsyncpa [#allocation4 + $0x1], 1 }
 0x45f   :  { %3129 = vsyncpa [#allocation7], 1 }
 0x460   :  { %3131 = vsyncpa [#allocation7 + $0x1], 1 }
 0x461   :  { %3132 = vsyncpa [#allocation10], 1 }
 0x462   :  { %3133 = vsyncpa [#allocation13], 1 }
 0x463   :  { %3134 = vsyncpa [#allocation16], 1 }
 0x464   :  { %3135 = vsyncpa [#allocation5], 1 }
 0x465   :  { %3137 = vsyncpa [#allocation5 + $0x1], 1 }

</bundles_post_ra>
